<compile_context>
chip_gen: v7x
topology: tpu7x:2x2x1
jax: 0.10.0
libtpu: 0.0.40
codegen_flags: <defaults>
</compile_context>

<pallas_src>
import functools
import math

import jax
import jax.numpy as jnp
from jax.experimental import pallas as pl
from jax.experimental.pallas import tpu as pltpu

# ------------------------- small BERT config (synthetic) -------------------------
VOCAB = 128
HIDDEN = 128
N_LAYERS = 2
N_HEADS = 4
HEAD_DIM = HIDDEN // N_HEADS
INTERMEDIATE = 4 * HIDDEN
MAX_POS = 32
TYPE_VOCAB = 2
NUM_LABELS = 2
LN_EPS = 1e-12            # HF BertLayerNorm eps
NEG_INF = -10000.0        # HF extended-attention-mask additive value


# ------------------------------ in-kernel helpers ---------------------------------
def _layernorm(y, g, b):
    mean = jnp.mean(y, axis=-1, keepdims=True)
    c = y - mean
    var = jnp.mean(c * c, axis=-1, keepdims=True)
    return c * jax.lax.rsqrt(var + LN_EPS) * g + b


def _erf(x):
    # Abramowitz & Stegun 7.1.26 (max abs err ~1.5e-7): exp/mul/add/where only,
    # so it lowers on VPU/EUP without needing an erf primitive in Mosaic.
    a1, a2, a3, a4, a5 = (0.254829592, -0.284496736, 1.421413741,
                          -1.453152027, 1.061405429)
    p = 0.3275911
    ax = jnp.abs(x)
    t = 1.0 / (1.0 + p * ax)
    poly = ((((a5 * t + a4) * t + a3) * t + a2) * t + a1) * t
    y = 1.0 - poly * jnp.exp(-ax * ax)
    return jnp.where(x >= 0.0, y, -y)


def _gelu_exact(x):
    return 0.5 * x * (1.0 + _erf(x * (1.0 / math.sqrt(2.0))))


# --------------------------- the single fused kernel -------------------------------
def _bert_fused_kernel(*refs, batch, seq, n_layers, scale):
    bs = batch * seq

    ids_ref, mask_ref, we_ref, pe_ref, te_ref, eg_ref, eb_ref = refs[:7]
    layer_refs = refs[7:7 + 12 * n_layers]
    pw_ref, pb_ref, cw_ref, cb_ref = refs[7 + 12 * n_layers:11 + 12 * n_layers]
    o_ref = refs[11 + 12 * n_layers]

    # ---- embeddings: in-kernel one-hot MXU "gather" + pos + type, fused LN ----
    ids = ids_ref[...]                                               # (BS, 1) i32
    vocab_iota = jax.lax.broadcasted_iota(jnp.int32, (bs, VOCAB), 1)
    onehot = (ids == vocab_iota).astype(jnp.float32)                 # (BS, VOCAB)
    we = jnp.dot(onehot, we_ref[...],
                 preferred_element_type=jnp.float32)                 # exact lookup
    pe = jnp.concatenate([pe_ref[...]] * batch, axis=0)              # (BS, H)
    x = _layernorm(we + pe + te_ref[...], eg_ref[...], eb_ref[...])  # (BS, H) f32
    # embedding dropout(0.1) is identity in eval mode

    mask = mask_ref[...]                                             # (BS, BS) additive

    for l in range(n_layers):
        (wqkv, bqkv, wo, bo, l1g, l1b,
         w1, b1, w2, b2, l2g, l2b) = layer_refs[12 * l:12 * (l + 1)]

        # ---- fused Q/K/V projection: one (BS,H)bf16 @ (H,3H)bf16 MXU pass ----
        xb = x.astype(jnp.bfloat16)
        qkv = jnp.dot(xb, wqkv[...],
                      preferred_element_type=jnp.float32) + bqkv[...]   # (BS, 3H)
        # lane-aligned 128-wide splits are free
        q = qkv[:, :HIDDEN]
        k = qkv[:, HIDDEN:2 * HIDDEN]
        v = qkv[:, 2 * HIDDEN:]

        # ---- per-head attention over the folded batch (block-diag mask) ----
        heads = []
        for h in range(N_HEADS):
            lo = h * HEAD_DIM
            hi = lo + HEAD_DIM
            qh = q[:, lo:hi]                                         # (BS, D)
            kh = k[:, lo:hi]                                         # (BS, D)
            vh = v[:, lo:hi]                                         # (BS, D)
            s = jax.lax.dot_general(qh, kh, (((1,), (1,)), ((), ())),
                                    preferred_element_type=jnp.float32)
            s = s * scale + mask                                     # (BS, BS)
            s = s - jnp.max(s, axis=-1, keepdims=True)               # safe softmax
            p = jnp.exp(s)
            p = p / jnp.sum(p, axis=-1, keepdims=True)
            heads.append(jnp.dot(p, vh, preferred_element_type=jnp.float32))
        ctx = jnp.concatenate(heads, axis=-1)                        # (BS, H) in-register

        # ---- output projection + residual + LayerNorm1 ----
        attn = jnp.dot(ctx.astype(jnp.bfloat16), wo[...],
                       preferred_element_type=jnp.float32) + bo[...]
        y = _layernorm(attn + x, l1g[...], l1b[...])                 # attn dropout = id

        # ---- FFN (exact-erf GELU) + residual + LayerNorm2 ----
        h1 = jnp.dot(y.astype(jnp.bfloat16), w1[...],
                     preferred_element_type=jnp.float32) + b1[...]
        h1 = _gelu_exact(h1)
        h2 = jnp.dot(h1.astype(jnp.bfloat16), w2[...],
                     preferred_element_type=jnp.float32) + b2[...]
        x = _layernorm(h2 + y, l2g[...], l2b[...])                   # ffn dropout = id

    # ---- pooler(tanh) + classifier for ALL positions (lane/sublane-dense);
    #      the CLS rows (b*S) are selected in glue. Extra rows are negligible. ----
    pooled = jnp.tanh(jnp.dot(x.astype(jnp.bfloat16), pw_ref[...],
                              preferred_element_type=jnp.float32) + pb_ref[...])
    # dropout(0.1) on pooled_output is identity in eval mode
    o_ref[...] = jnp.dot(pooled.astype(jnp.bfloat16), cw_ref[...],
                         preferred_element_type=jnp.float32) + cb_ref[...]


# ------------------------------ model forward pass --------------------------------
def bert_forward(params, input_ids, attention_mask):
    B, S = input_ids.shape
    BS = B * S

    ids = input_ids.reshape(BS, 1).astype(jnp.int32)

    # HF extended attention mask folded over batch: (BS, BS), block-diagonal;
    # same-batch entries get (1 - mask[key]) * -10000, cross-batch entries -10000.
    ext = (1.0 - attention_mask.astype(jnp.float32)) * NEG_INF        # (B, S)
    batch_idx = jnp.arange(BS, dtype=jnp.int32) // S
    same = batch_idx[:, None] == batch_idx[None, :]
    mask = jnp.where(same, ext.reshape(1, BS), NEG_INF)               # (BS, BS)

    args = [ids, mask, params["word_emb"], params["pos_emb"][:S],
            params["type_emb"][0:1],                                  # token_type_ids = 0
            params["emb_ln_g"], params["emb_ln_b"]]
    for layer in params["layers"]:
        args += [layer[k] for k in ("wqkv", "bqkv", "wo", "bo", "ln1_g", "ln1_b",
                                    "w1", "b1", "w2", "b2", "ln2_g", "ln2_b")]
    args += [params["pooler_w"], params["pooler_b"],
             params["cls_w"], params["cls_b"]]

    kernel = functools.partial(_bert_fused_kernel, batch=B, seq=S,
                               n_layers=len(params["layers"]),
                               scale=1.0 / math.sqrt(HEAD_DIM))

    # every input is a full-array block, VMEM-resident for the whole call
    in_specs = [pl.BlockSpec(a.shape, lambda i, n=a.ndim: (0,) * n) for a in args]

    logits_all = pl.pallas_call(
        kernel,
        out_shape=jax.ShapeDtypeStruct((BS, NUM_LABELS), jnp.float32),
        grid=(1,),
        in_specs=in_specs,
        out_specs=pl.BlockSpec((BS, NUM_LABELS), lambda i: (0, 0)),
        compiler_params=pltpu.CompilerParams(
            dimension_semantics=("arbitrary",)),
    )(*args)

    # CLS-row (position 0 of each sequence) logits: (B, NUM_LABELS)
    return logits_all[0::S]


# --------------------------- deterministic parameter init -------------------------
def init_params(key):
    keys = iter(jax.random.split(key, 64))

    def nrm(shape, dtype=jnp.float32):
        return (0.02 * jax.random.normal(next(keys), shape, jnp.float32)).astype(dtype)

    # matmul weights stored bf16 (halves DMA/VMEM, native MXU issue); embeddings,
    # biases and LayerNorm params stay f32.
    params = {
        "word_emb": nrm((VOCAB, HIDDEN)),
        "pos_emb": nrm((MAX_POS, HIDDEN)),
        "type_emb": nrm((TYPE_VOCAB, HIDDEN)),
        "emb_ln_g": jnp.ones((1, HIDDEN), jnp.float32),
        "emb_ln_b": jnp.zeros((1, HIDDEN), jnp.float32),
        "pooler_w": nrm((HIDDEN, HIDDEN), jnp.bfloat16),
        "pooler_b": jnp.zeros((1, HIDDEN), jnp.float32),
        "cls_w": nrm((HIDDEN, NUM_LABELS), jnp.bfloat16),
        "cls_b": jnp.zeros((1, NUM_LABELS), jnp.float32),
        "layers": [],
    }
    for _ in range(N_LAYERS):
        params["layers"].append({
            # Q/K/V projections fused into a single (H, 3H) weight.
            "wqkv": jnp.concatenate(
                [nrm((HIDDEN, HIDDEN)), nrm((HIDDEN, HIDDEN)), nrm((HIDDEN, HIDDEN))],
                axis=1).astype(jnp.bfloat16),
            "bqkv": jnp.zeros((1, 3 * HIDDEN), jnp.float32),
            "wo": nrm((HIDDEN, HIDDEN), jnp.bfloat16),
            "bo": jnp.zeros((1, HIDDEN), jnp.float32),
            "ln1_g": jnp.ones((1, HIDDEN), jnp.float32),
            "ln1_b": jnp.zeros((1, HIDDEN), jnp.float32),
            "w1": nrm((HIDDEN, INTERMEDIATE), jnp.bfloat16),
            "b1": jnp.zeros((1, INTERMEDIATE), jnp.float32),
            "w2": nrm((INTERMEDIATE, HIDDEN), jnp.bfloat16),
            "b2": jnp.zeros((1, HIDDEN), jnp.float32),
            "ln2_g": jnp.ones((1, HIDDEN), jnp.float32),
            "ln2_b": jnp.zeros((1, HIDDEN), jnp.float32),
        })
    return params


# -------------------------------------- main --------------------------------------
if __name__ == "__main__":
    key = jax.random.PRNGKey(0)
    pkey, ikey = jax.random.split(key)
    params = init_params(pkey)

    B, S = 2, 8
    input_ids = jax.random.randint(ikey, (B, S), 0, VOCAB, dtype=jnp.int32)
    attention_mask = jnp.ones((B, S), jnp.int32).at[1, 6:].set(0)   # sample 1 has padding

    logits = jax.jit(bert_forward)(params, input_ids, attention_mask)
    jax.block_until_ready(logits)
    assert logits.shape == (B, NUM_LABELS) and logits.dtype == jnp.float32
    print("KERNEL_OK")
</pallas_src>

<mosaic_0001>
module attributes {stable_mosaic.version = 11 : i64} {
  func.func @_bert_fused_kernel(%arg0: i32, %arg1: memref<16x1xi32, #tpu.memory_space<vmem>>, %arg2: memref<16x16xf32, #tpu.memory_space<vmem>>, %arg3: memref<128x128xf32, #tpu.memory_space<vmem>>, %arg4: memref<8x128xf32, #tpu.memory_space<vmem>>, %arg5: memref<1x128xf32, #tpu.memory_space<vmem>>, %arg6: memref<1x128xf32, #tpu.memory_space<vmem>>, %arg7: memref<1x128xf32, #tpu.memory_space<vmem>>, %arg8: memref<128x384xbf16, #tpu.memory_space<vmem>>, %arg9: memref<1x384xf32, #tpu.memory_space<vmem>>, %arg10: memref<128x128xbf16, #tpu.memory_space<vmem>>, %arg11: memref<1x128xf32, #tpu.memory_space<vmem>>, %arg12: memref<1x128xf32, #tpu.memory_space<vmem>>, %arg13: memref<1x128xf32, #tpu.memory_space<vmem>>, %arg14: memref<128x512xbf16, #tpu.memory_space<vmem>>, %arg15: memref<1x512xf32, #tpu.memory_space<vmem>>, %arg16: memref<512x128xbf16, #tpu.memory_space<vmem>>, %arg17: memref<1x128xf32, #tpu.memory_space<vmem>>, %arg18: memref<1x128xf32, #tpu.memory_space<vmem>>, %arg19: memref<1x128xf32, #tpu.memory_space<vmem>>, %arg20: memref<128x384xbf16, #tpu.memory_space<vmem>>, %arg21: memref<1x384xf32, #tpu.memory_space<vmem>>, %arg22: memref<128x128xbf16, #tpu.memory_space<vmem>>, %arg23: memref<1x128xf32, #tpu.memory_space<vmem>>, %arg24: memref<1x128xf32, #tpu.memory_space<vmem>>, %arg25: memref<1x128xf32, #tpu.memory_space<vmem>>, %arg26: memref<128x512xbf16, #tpu.memory_space<vmem>>, %arg27: memref<1x512xf32, #tpu.memory_space<vmem>>, %arg28: memref<512x128xbf16, #tpu.memory_space<vmem>>, %arg29: memref<1x128xf32, #tpu.memory_space<vmem>>, %arg30: memref<1x128xf32, #tpu.memory_space<vmem>>, %arg31: memref<1x128xf32, #tpu.memory_space<vmem>>, %arg32: memref<128x128xbf16, #tpu.memory_space<vmem>>, %arg33: memref<1x128xf32, #tpu.memory_space<vmem>>, %arg34: memref<128x2xbf16, #tpu.memory_space<vmem>>, %arg35: memref<1x2xf32, #tpu.memory_space<vmem>>, %arg36: memref<16x2xf32, #tpu.memory_space<vmem>>) attributes {dimension_semantics = [#tpu.dimension_semantics<arbitrary>], iteration_bounds = array<i64: 1>, scalar_prefetch = 0 : i64, scratch_operands = 0 : i64, tpu.core_type = #tpu.core_type<tc>, window_params = [{pipeline_mode = #tpu.pipeline_mode<synchronous>, transform_indices = @transform_0, window_bounds = array<i64: 16, 1>}, {pipeline_mode = #tpu.pipeline_mode<synchronous>, transform_indices = @transform_1, window_bounds = array<i64: 16, 16>}, {pipeline_mode = #tpu.pipeline_mode<synchronous>, transform_indices = @transform_2, window_bounds = array<i64: 128, 128>}, {pipeline_mode = #tpu.pipeline_mode<synchronous>, transform_indices = @transform_3, window_bounds = array<i64: 8, 128>}, {pipeline_mode = #tpu.pipeline_mode<synchronous>, transform_indices = @transform_4, window_bounds = array<i64: 1, 128>}, {pipeline_mode = #tpu.pipeline_mode<synchronous>, transform_indices = @transform_5, window_bounds = array<i64: 1, 128>}, {pipeline_mode = #tpu.pipeline_mode<synchronous>, transform_indices = @transform_6, window_bounds = array<i64: 1, 128>}, {pipeline_mode = #tpu.pipeline_mode<synchronous>, transform_indices = @transform_7, window_bounds = array<i64: 128, 384>}, {pipeline_mode = #tpu.pipeline_mode<synchronous>, transform_indices = @transform_8, window_bounds = array<i64: 1, 384>}, {pipeline_mode = #tpu.pipeline_mode<synchronous>, transform_indices = @transform_9, window_bounds = array<i64: 128, 128>}, {pipeline_mode = #tpu.pipeline_mode<synchronous>, transform_indices = @transform_10, window_bounds = array<i64: 1, 128>}, {pipeline_mode = #tpu.pipeline_mode<synchronous>, transform_indices = @transform_11, window_bounds = array<i64: 1, 128>}, {pipeline_mode = #tpu.pipeline_mode<synchronous>, transform_indices = @transform_12, window_bounds = array<i64: 1, 128>}, {pipeline_mode = #tpu.pipeline_mode<synchronous>, transform_indices = @transform_13, window_bounds = array<i64: 128, 512>}, {pipeline_mode = #tpu.pipeline_mode<synchronous>, transform_indices = @transform_14, window_bounds = array<i64: 1, 512>}, {pipeline_mode = #tpu.pipeline_mode<synchronous>, transform_indices = @transform_15, window_bounds = array<i64: 512, 128>}, {pipeline_mode = #tpu.pipeline_mode<synchronous>, transform_indices = @transform_16, window_bounds = array<i64: 1, 128>}, {pipeline_mode = #tpu.pipeline_mode<synchronous>, transform_indices = @transform_17, window_bounds = array<i64: 1, 128>}, {pipeline_mode = #tpu.pipeline_mode<synchronous>, transform_indices = @transform_18, window_bounds = array<i64: 1, 128>}, {pipeline_mode = #tpu.pipeline_mode<synchronous>, transform_indices = @transform_19, window_bounds = array<i64: 128, 384>}, {pipeline_mode = #tpu.pipeline_mode<synchronous>, transform_indices = @transform_20, window_bounds = array<i64: 1, 384>}, {pipeline_mode = #tpu.pipeline_mode<synchronous>, transform_indices = @transform_21, window_bounds = array<i64: 128, 128>}, {pipeline_mode = #tpu.pipeline_mode<synchronous>, transform_indices = @transform_22, window_bounds = array<i64: 1, 128>}, {pipeline_mode = #tpu.pipeline_mode<synchronous>, transform_indices = @transform_23, window_bounds = array<i64: 1, 128>}, {pipeline_mode = #tpu.pipeline_mode<synchronous>, transform_indices = @transform_24, window_bounds = array<i64: 1, 128>}, {pipeline_mode = #tpu.pipeline_mode<synchronous>, transform_indices = @transform_25, window_bounds = array<i64: 128, 512>}, {pipeline_mode = #tpu.pipeline_mode<synchronous>, transform_indices = @transform_26, window_bounds = array<i64: 1, 512>}, {pipeline_mode = #tpu.pipeline_mode<synchronous>, transform_indices = @transform_27, window_bounds = array<i64: 512, 128>}, {pipeline_mode = #tpu.pipeline_mode<synchronous>, transform_indices = @transform_28, window_bounds = array<i64: 1, 128>}, {pipeline_mode = #tpu.pipeline_mode<synchronous>, transform_indices = @transform_29, window_bounds = array<i64: 1, 128>}, {pipeline_mode = #tpu.pipeline_mode<synchronous>, transform_indices = @transform_30, window_bounds = array<i64: 1, 128>}, {pipeline_mode = #tpu.pipeline_mode<synchronous>, transform_indices = @transform_31, window_bounds = array<i64: 128, 128>}, {pipeline_mode = #tpu.pipeline_mode<synchronous>, transform_indices = @transform_32, window_bounds = array<i64: 1, 128>}, {pipeline_mode = #tpu.pipeline_mode<synchronous>, transform_indices = @transform_33, window_bounds = array<i64: 128, 2>}, {pipeline_mode = #tpu.pipeline_mode<synchronous>, transform_indices = @transform_34, window_bounds = array<i64: 1, 2>}, {pipeline_mode = #tpu.pipeline_mode<synchronous>, transform_indices = @transform_35, window_bounds = array<i64: 16, 2>}]} {
    %c0 = arith.constant 0 : index
    %c0_0 = arith.constant 0 : index
    %0 = vector.load %arg1[%c0, %c0_0] : memref<16x1xi32, #tpu.memory_space<vmem>>, vector<16x1xi32>
    %1 = tpu.iota {dimensions = array<i32: 1>} : vector<16x128xi32>
    %2 = vector.broadcast %0 : vector<16x1xi32> to vector<16x128xi32>
    %3 = arith.cmpi eq, %2, %1 : vector<16x128xi32>
    %4 = arith.extui %3 : vector<16x128xi1> to vector<16x128xi32>
    %5 = arith.sitofp %4 : vector<16x128xi32> to vector<16x128xf32>
    %c0_1 = arith.constant 0 : index
    %c0_2 = arith.constant 0 : index
    %6 = vector.load %arg3[%c0_1, %c0_2] : memref<128x128xf32, #tpu.memory_space<vmem>>, vector<128x128xf32>
    %cst = arith.constant dense<0.000000e+00> : vector<16x128xf32>
    %7 = tpu.matmul %5, %6, %cst {dimension_numbers = #tpu.dot_dimension_numbers<[1], [0], [0], [1], [0, 0, 1, 1], [], []>} : vector<16x128xf32>, vector<128x128xf32>, vector<16x128xf32> -> vector<16x128xf32>
    %c0_3 = arith.constant 0 : index
    %c0_4 = arith.constant 0 : index
    %8 = vector.load %arg4[%c0_3, %c0_4] : memref<8x128xf32, #tpu.memory_space<vmem>>, vector<8x128xf32>
    %9 = tpu.concatenate %8, %8 in 0 : vector<8x128xf32>, vector<8x128xf32> -> vector<16x128xf32>
    %10 = arith.addf %7, %9 : vector<16x128xf32>
    %c0_5 = arith.constant 0 : index
    %c0_6 = arith.constant 0 : index
    %11 = vector.load %arg5[%c0_5, %c0_6] : memref<1x128xf32, #tpu.memory_space<vmem>>, vector<1x128xf32>
    %12 = vector.broadcast %11 : vector<1x128xf32> to vector<16x128xf32>
    %13 = arith.addf %10, %12 : vector<16x128xf32>
    %c0_7 = arith.constant 0 : index
    %c0_8 = arith.constant 0 : index
    %14 = vector.load %arg6[%c0_7, %c0_8] : memref<1x128xf32, #tpu.memory_space<vmem>>, vector<1x128xf32>
    %c0_9 = arith.constant 0 : index
    %c0_10 = arith.constant 0 : index
    %15 = vector.load %arg7[%c0_9, %c0_10] : memref<1x128xf32, #tpu.memory_space<vmem>>, vector<1x128xf32>
    %cst_11 = arith.constant dense<0.000000e+00> : vector<16xf32>
    %16 = vector.multi_reduction <add>, %13, %cst_11 [1] : vector<16x128xf32> to vector<16xf32>
    %17 = vector.shape_cast %16 : vector<16xf32> to vector<16x1xf32>
    %cst_12 = arith.constant 1.280000e+02 : f32
    %18 = vector.broadcast %cst_12 : f32 to vector<16x1xf32>
    %19 = arith.divf %17, %18 : vector<16x1xf32>
    %20 = vector.broadcast %19 : vector<16x1xf32> to vector<16x128xf32>
    %21 = arith.subf %13, %20 : vector<16x128xf32>
    %22 = arith.mulf %21, %21 : vector<16x128xf32>
    %cst_13 = arith.constant dense<0.000000e+00> : vector<16xf32>
    %23 = vector.multi_reduction <add>, %22, %cst_13 [1] : vector<16x128xf32> to vector<16xf32>
    %24 = vector.shape_cast %23 : vector<16xf32> to vector<16x1xf32>
    %cst_14 = arith.constant 1.280000e+02 : f32
    %25 = vector.broadcast %cst_14 : f32 to vector<16x1xf32>
    %26 = arith.divf %24, %25 : vector<16x1xf32>
    %cst_15 = arith.constant 9.99999996E-13 : f32
    %27 = vector.broadcast %cst_15 : f32 to vector<16x1xf32>
    %28 = arith.addf %26, %27 : vector<16x1xf32>
    %29 = math.rsqrt %28 : vector<16x1xf32>
    %30 = vector.broadcast %29 : vector<16x1xf32> to vector<16x128xf32>
    %31 = arith.mulf %21, %30 : vector<16x128xf32>
    %32 = vector.broadcast %14 : vector<1x128xf32> to vector<16x128xf32>
    %33 = arith.mulf %31, %32 : vector<16x128xf32>
    %34 = vector.broadcast %15 : vector<1x128xf32> to vector<16x128xf32>
    %35 = arith.addf %33, %34 : vector<16x128xf32>
    %c0_16 = arith.constant 0 : index
    %c0_17 = arith.constant 0 : index
    %36 = vector.load %arg2[%c0_16, %c0_17] : memref<16x16xf32, #tpu.memory_space<vmem>>, vector<16x16xf32>
    %37 = arith.truncf %35 : vector<16x128xf32> to vector<16x128xbf16>
    %c0_18 = arith.constant 0 : index
    %c0_19 = arith.constant 0 : index
    %38 = vector.load %arg8[%c0_18, %c0_19] : memref<128x384xbf16, #tpu.memory_space<vmem>>, vector<128x384xbf16>
    %cst_20 = arith.constant dense<0.000000e+00> : vector<16x384xf32>
    %39 = tpu.matmul %37, %38, %cst_20 {dimension_numbers = #tpu.dot_dimension_numbers<[1], [0], [0], [1], [0, 0, 1, 1], [], []>} : vector<16x128xbf16>, vector<128x384xbf16>, vector<16x384xf32> -> vector<16x384xf32>
    %c0_21 = arith.constant 0 : index
    %c0_22 = arith.constant 0 : index
    %40 = vector.load %arg9[%c0_21, %c0_22] : memref<1x384xf32, #tpu.memory_space<vmem>>, vector<1x384xf32>
    %41 = vector.broadcast %40 : vector<1x384xf32> to vector<16x384xf32>
    %42 = arith.addf %39, %41 : vector<16x384xf32>
    %43 = vector.extract_strided_slice %42 {offsets = [0, 0], sizes = [16, 128], strides = [1, 1]} : vector<16x384xf32> to vector<16x128xf32>
    %44 = vector.extract_strided_slice %42 {offsets = [0, 128], sizes = [16, 128], strides = [1, 1]} : vector<16x384xf32> to vector<16x128xf32>
    %45 = vector.extract_strided_slice %42 {offsets = [0, 256], sizes = [16, 128], strides = [1, 1]} : vector<16x384xf32> to vector<16x128xf32>
    %46 = vector.extract_strided_slice %43 {offsets = [0, 0], sizes = [16, 32], strides = [1, 1]} : vector<16x128xf32> to vector<16x32xf32>
    %47 = vector.extract_strided_slice %44 {offsets = [0, 0], sizes = [16, 32], strides = [1, 1]} : vector<16x128xf32> to vector<16x32xf32>
    %48 = vector.extract_strided_slice %45 {offsets = [0, 0], sizes = [16, 32], strides = [1, 1]} : vector<16x128xf32> to vector<16x32xf32>
    %cst_23 = arith.constant dense<0.000000e+00> : vector<16x16xf32>
    %49 = tpu.matmul %46, %47, %cst_23 {dimension_numbers = #tpu.dot_dimension_numbers<[1], [1], [0], [0], [0, 0, 1, 0], [], []>} : vector<16x32xf32>, vector<16x32xf32>, vector<16x16xf32> -> vector<16x16xf32>
    %cst_24 = arith.constant 0.176776692 : f32
    %50 = vector.broadcast %cst_24 : f32 to vector<16x16xf32>
    %51 = arith.mulf %49, %50 : vector<16x16xf32>
    %52 = arith.addf %51, %36 : vector<16x16xf32>
    %cst_25 = arith.constant dense<0xFF800000> : vector<16xf32>
    %53 = vector.multi_reduction <maximumf>, %52, %cst_25 [1] : vector<16x16xf32> to vector<16xf32>
    %54 = vector.shape_cast %53 : vector<16xf32> to vector<16x1xf32>
    %55 = vector.broadcast %54 : vector<16x1xf32> to vector<16x16xf32>
    %56 = arith.subf %52, %55 : vector<16x16xf32>
    %57 = math.exp %56 : vector<16x16xf32>
    %cst_26 = arith.constant dense<0.000000e+00> : vector<16xf32>
    %58 = vector.multi_reduction <add>, %57, %cst_26 [1] : vector<16x16xf32> to vector<16xf32>
    %59 = vector.shape_cast %58 : vector<16xf32> to vector<16x1xf32>
    %60 = vector.broadcast %59 : vector<16x1xf32> to vector<16x16xf32>
    %61 = arith.divf %57, %60 : vector<16x16xf32>
    %cst_27 = arith.constant dense<0.000000e+00> : vector<16x32xf32>
    %62 = tpu.matmul %61, %48, %cst_27 {dimension_numbers = #tpu.dot_dimension_numbers<[1], [0], [0], [1], [0, 0, 1, 1], [], []>} : vector<16x16xf32>, vector<16x32xf32>, vector<16x32xf32> -> vector<16x32xf32>
    %63 = vector.extract_strided_slice %43 {offsets = [0, 32], sizes = [16, 32], strides = [1, 1]} : vector<16x128xf32> to vector<16x32xf32>
    %64 = vector.extract_strided_slice %44 {offsets = [0, 32], sizes = [16, 32], strides = [1, 1]} : vector<16x128xf32> to vector<16x32xf32>
    %65 = vector.extract_strided_slice %45 {offsets = [0, 32], sizes = [16, 32], strides = [1, 1]} : vector<16x128xf32> to vector<16x32xf32>
    %cst_28 = arith.constant dense<0.000000e+00> : vector<16x16xf32>
    %66 = tpu.matmul %63, %64, %cst_28 {dimension_numbers = #tpu.dot_dimension_numbers<[1], [1], [0], [0], [0, 0, 1, 0], [], []>} : vector<16x32xf32>, vector<16x32xf32>, vector<16x16xf32> -> vector<16x16xf32>
    %cst_29 = arith.constant 0.176776692 : f32
    %67 = vector.broadcast %cst_29 : f32 to vector<16x16xf32>
    %68 = arith.mulf %66, %67 : vector<16x16xf32>
    %69 = arith.addf %68, %36 : vector<16x16xf32>
    %cst_30 = arith.constant dense<0xFF800000> : vector<16xf32>
    %70 = vector.multi_reduction <maximumf>, %69, %cst_30 [1] : vector<16x16xf32> to vector<16xf32>
    %71 = vector.shape_cast %70 : vector<16xf32> to vector<16x1xf32>
    %72 = vector.broadcast %71 : vector<16x1xf32> to vector<16x16xf32>
    %73 = arith.subf %69, %72 : vector<16x16xf32>
    %74 = math.exp %73 : vector<16x16xf32>
    %cst_31 = arith.constant dense<0.000000e+00> : vector<16xf32>
    %75 = vector.multi_reduction <add>, %74, %cst_31 [1] : vector<16x16xf32> to vector<16xf32>
    %76 = vector.shape_cast %75 : vector<16xf32> to vector<16x1xf32>
    %77 = vector.broadcast %76 : vector<16x1xf32> to vector<16x16xf32>
    %78 = arith.divf %74, %77 : vector<16x16xf32>
    %cst_32 = arith.constant dense<0.000000e+00> : vector<16x32xf32>
    %79 = tpu.matmul %78, %65, %cst_32 {dimension_numbers = #tpu.dot_dimension_numbers<[1], [0], [0], [1], [0, 0, 1, 1], [], []>} : vector<16x16xf32>, vector<16x32xf32>, vector<16x32xf32> -> vector<16x32xf32>
    %80 = vector.extract_strided_slice %43 {offsets = [0, 64], sizes = [16, 32], strides = [1, 1]} : vector<16x128xf32> to vector<16x32xf32>
    %81 = vector.extract_strided_slice %44 {offsets = [0, 64], sizes = [16, 32], strides = [1, 1]} : vector<16x128xf32> to vector<16x32xf32>
    %82 = vector.extract_strided_slice %45 {offsets = [0, 64], sizes = [16, 32], strides = [1, 1]} : vector<16x128xf32> to vector<16x32xf32>
    %cst_33 = arith.constant dense<0.000000e+00> : vector<16x16xf32>
    %83 = tpu.matmul %80, %81, %cst_33 {dimension_numbers = #tpu.dot_dimension_numbers<[1], [1], [0], [0], [0, 0, 1, 0], [], []>} : vector<16x32xf32>, vector<16x32xf32>, vector<16x16xf32> -> vector<16x16xf32>
    %cst_34 = arith.constant 0.176776692 : f32
    %84 = vector.broadcast %cst_34 : f32 to vector<16x16xf32>
    %85 = arith.mulf %83, %84 : vector<16x16xf32>
    %86 = arith.addf %85, %36 : vector<16x16xf32>
    %cst_35 = arith.constant dense<0xFF800000> : vector<16xf32>
    %87 = vector.multi_reduction <maximumf>, %86, %cst_35 [1] : vector<16x16xf32> to vector<16xf32>
    %88 = vector.shape_cast %87 : vector<16xf32> to vector<16x1xf32>
    %89 = vector.broadcast %88 : vector<16x1xf32> to vector<16x16xf32>
    %90 = arith.subf %86, %89 : vector<16x16xf32>
    %91 = math.exp %90 : vector<16x16xf32>
    %cst_36 = arith.constant dense<0.000000e+00> : vector<16xf32>
    %92 = vector.multi_reduction <add>, %91, %cst_36 [1] : vector<16x16xf32> to vector<16xf32>
    %93 = vector.shape_cast %92 : vector<16xf32> to vector<16x1xf32>
    %94 = vector.broadcast %93 : vector<16x1xf32> to vector<16x16xf32>
    %95 = arith.divf %91, %94 : vector<16x16xf32>
    %cst_37 = arith.constant dense<0.000000e+00> : vector<16x32xf32>
    %96 = tpu.matmul %95, %82, %cst_37 {dimension_numbers = #tpu.dot_dimension_numbers<[1], [0], [0], [1], [0, 0, 1, 1], [], []>} : vector<16x16xf32>, vector<16x32xf32>, vector<16x32xf32> -> vector<16x32xf32>
    %97 = vector.extract_strided_slice %43 {offsets = [0, 96], sizes = [16, 32], strides = [1, 1]} : vector<16x128xf32> to vector<16x32xf32>
    %98 = vector.extract_strided_slice %44 {offsets = [0, 96], sizes = [16, 32], strides = [1, 1]} : vector<16x128xf32> to vector<16x32xf32>
    %99 = vector.extract_strided_slice %45 {offsets = [0, 96], sizes = [16, 32], strides = [1, 1]} : vector<16x128xf32> to vector<16x32xf32>
    %cst_38 = arith.constant dense<0.000000e+00> : vector<16x16xf32>
    %100 = tpu.matmul %97, %98, %cst_38 {dimension_numbers = #tpu.dot_dimension_numbers<[1], [1], [0], [0], [0, 0, 1, 0], [], []>} : vector<16x32xf32>, vector<16x32xf32>, vector<16x16xf32> -> vector<16x16xf32>
    %cst_39 = arith.constant 0.176776692 : f32
    %101 = vector.broadcast %cst_39 : f32 to vector<16x16xf32>
    %102 = arith.mulf %100, %101 : vector<16x16xf32>
    %103 = arith.addf %102, %36 : vector<16x16xf32>
    %cst_40 = arith.constant dense<0xFF800000> : vector<16xf32>
    %104 = vector.multi_reduction <maximumf>, %103, %cst_40 [1] : vector<16x16xf32> to vector<16xf32>
    %105 = vector.shape_cast %104 : vector<16xf32> to vector<16x1xf32>
    %106 = vector.broadcast %105 : vector<16x1xf32> to vector<16x16xf32>
    %107 = arith.subf %103, %106 : vector<16x16xf32>
    %108 = math.exp %107 : vector<16x16xf32>
    %cst_41 = arith.constant dense<0.000000e+00> : vector<16xf32>
    %109 = vector.multi_reduction <add>, %108, %cst_41 [1] : vector<16x16xf32> to vector<16xf32>
    %110 = vector.shape_cast %109 : vector<16xf32> to vector<16x1xf32>
    %111 = vector.broadcast %110 : vector<16x1xf32> to vector<16x16xf32>
    %112 = arith.divf %108, %111 : vector<16x16xf32>
    %cst_42 = arith.constant dense<0.000000e+00> : vector<16x32xf32>
    %113 = tpu.matmul %112, %99, %cst_42 {dimension_numbers = #tpu.dot_dimension_numbers<[1], [0], [0], [1], [0, 0, 1, 1], [], []>} : vector<16x16xf32>, vector<16x32xf32>, vector<16x32xf32> -> vector<16x32xf32>
    %114 = tpu.concatenate %62, %79, %96, %113 in 1 : vector<16x32xf32>, vector<16x32xf32>, vector<16x32xf32>, vector<16x32xf32> -> vector<16x128xf32>
    %115 = arith.truncf %114 : vector<16x128xf32> to vector<16x128xbf16>
    %c0_43 = arith.constant 0 : index
    %c0_44 = arith.constant 0 : index
    %116 = vector.load %arg10[%c0_43, %c0_44] : memref<128x128xbf16, #tpu.memory_space<vmem>>, vector<128x128xbf16>
    %cst_45 = arith.constant dense<0.000000e+00> : vector<16x128xf32>
    %117 = tpu.matmul %115, %116, %cst_45 {dimension_numbers = #tpu.dot_dimension_numbers<[1], [0], [0], [1], [0, 0, 1, 1], [], []>} : vector<16x128xbf16>, vector<128x128xbf16>, vector<16x128xf32> -> vector<16x128xf32>
    %c0_46 = arith.constant 0 : index
    %c0_47 = arith.constant 0 : index
    %118 = vector.load %arg11[%c0_46, %c0_47] : memref<1x128xf32, #tpu.memory_space<vmem>>, vector<1x128xf32>
    %119 = vector.broadcast %118 : vector<1x128xf32> to vector<16x128xf32>
    %120 = arith.addf %117, %119 : vector<16x128xf32>
    %121 = arith.addf %120, %35 : vector<16x128xf32>
    %c0_48 = arith.constant 0 : index
    %c0_49 = arith.constant 0 : index
    %122 = vector.load %arg12[%c0_48, %c0_49] : memref<1x128xf32, #tpu.memory_space<vmem>>, vector<1x128xf32>
    %c0_50 = arith.constant 0 : index
    %c0_51 = arith.constant 0 : index
    %123 = vector.load %arg13[%c0_50, %c0_51] : memref<1x128xf32, #tpu.memory_space<vmem>>, vector<1x128xf32>
    %cst_52 = arith.constant dense<0.000000e+00> : vector<16xf32>
    %124 = vector.multi_reduction <add>, %121, %cst_52 [1] : vector<16x128xf32> to vector<16xf32>
    %125 = vector.shape_cast %124 : vector<16xf32> to vector<16x1xf32>
    %cst_53 = arith.constant 1.280000e+02 : f32
    %126 = vector.broadcast %cst_53 : f32 to vector<16x1xf32>
    %127 = arith.divf %125, %126 : vector<16x1xf32>
    %128 = vector.broadcast %127 : vector<16x1xf32> to vector<16x128xf32>
    %129 = arith.subf %121, %128 : vector<16x128xf32>
    %130 = arith.mulf %129, %129 : vector<16x128xf32>
    %cst_54 = arith.constant dense<0.000000e+00> : vector<16xf32>
    %131 = vector.multi_reduction <add>, %130, %cst_54 [1] : vector<16x128xf32> to vector<16xf32>
    %132 = vector.shape_cast %131 : vector<16xf32> to vector<16x1xf32>
    %cst_55 = arith.constant 1.280000e+02 : f32
    %133 = vector.broadcast %cst_55 : f32 to vector<16x1xf32>
    %134 = arith.divf %132, %133 : vector<16x1xf32>
    %cst_56 = arith.constant 9.99999996E-13 : f32
    %135 = vector.broadcast %cst_56 : f32 to vector<16x1xf32>
    %136 = arith.addf %134, %135 : vector<16x1xf32>
    %137 = math.rsqrt %136 : vector<16x1xf32>
    %138 = vector.broadcast %137 : vector<16x1xf32> to vector<16x128xf32>
    %139 = arith.mulf %129, %138 : vector<16x128xf32>
    %140 = vector.broadcast %122 : vector<1x128xf32> to vector<16x128xf32>
    %141 = arith.mulf %139, %140 : vector<16x128xf32>
    %142 = vector.broadcast %123 : vector<1x128xf32> to vector<16x128xf32>
    %143 = arith.addf %141, %142 : vector<16x128xf32>
    %144 = arith.truncf %143 : vector<16x128xf32> to vector<16x128xbf16>
    %c0_57 = arith.constant 0 : index
    %c0_58 = arith.constant 0 : index
    %145 = vector.load %arg14[%c0_57, %c0_58] : memref<128x512xbf16, #tpu.memory_space<vmem>>, vector<128x512xbf16>
    %cst_59 = arith.constant dense<0.000000e+00> : vector<16x512xf32>
    %146 = tpu.matmul %144, %145, %cst_59 {dimension_numbers = #tpu.dot_dimension_numbers<[1], [0], [0], [1], [0, 0, 1, 1], [], []>} : vector<16x128xbf16>, vector<128x512xbf16>, vector<16x512xf32> -> vector<16x512xf32>
    %c0_60 = arith.constant 0 : index
    %c0_61 = arith.constant 0 : index
    %147 = vector.load %arg15[%c0_60, %c0_61] : memref<1x512xf32, #tpu.memory_space<vmem>>, vector<1x512xf32>
    %148 = vector.broadcast %147 : vector<1x512xf32> to vector<16x512xf32>
    %149 = arith.addf %146, %148 : vector<16x512xf32>
    %cst_62 = arith.constant 5.000000e-01 : f32
    %150 = vector.broadcast %cst_62 : f32 to vector<16x512xf32>
    %151 = arith.mulf %150, %149 : vector<16x512xf32>
    %cst_63 = arith.constant 0.707106769 : f32
    %152 = vector.broadcast %cst_63 : f32 to vector<16x512xf32>
    %153 = arith.mulf %149, %152 : vector<16x512xf32>
    %154 = math.absf %153 : vector<16x512xf32>
    %cst_64 = arith.constant 0.327591091 : f32
    %155 = vector.broadcast %cst_64 : f32 to vector<16x512xf32>
    %156 = arith.mulf %155, %154 : vector<16x512xf32>
    %cst_65 = arith.constant 1.000000e+00 : f32
    %157 = vector.broadcast %cst_65 : f32 to vector<16x512xf32>
    %158 = arith.addf %157, %156 : vector<16x512xf32>
    %cst_66 = arith.constant 1.000000e+00 : f32
    %159 = vector.broadcast %cst_66 : f32 to vector<16x512xf32>
    %160 = arith.divf %159, %158 : vector<16x512xf32>
    %cst_67 = arith.constant 1.06140542 : f32
    %161 = vector.broadcast %cst_67 : f32 to vector<16x512xf32>
    %162 = arith.mulf %161, %160 : vector<16x512xf32>
    %cst_68 = arith.constant -1.45315206 : f32
    %163 = vector.broadcast %cst_68 : f32 to vector<16x512xf32>
    %164 = arith.addf %162, %163 : vector<16x512xf32>
    %165 = arith.mulf %164, %160 : vector<16x512xf32>
    %cst_69 = arith.constant 1.42141378 : f32
    %166 = vector.broadcast %cst_69 : f32 to vector<16x512xf32>
    %167 = arith.addf %165, %166 : vector<16x512xf32>
    %168 = arith.mulf %167, %160 : vector<16x512xf32>
    %cst_70 = arith.constant -0.284496725 : f32
    %169 = vector.broadcast %cst_70 : f32 to vector<16x512xf32>
    %170 = arith.addf %168, %169 : vector<16x512xf32>
    %171 = arith.mulf %170, %160 : vector<16x512xf32>
    %cst_71 = arith.constant 0.254829586 : f32
    %172 = vector.broadcast %cst_71 : f32 to vector<16x512xf32>
    %173 = arith.addf %171, %172 : vector<16x512xf32>
    %174 = arith.mulf %173, %160 : vector<16x512xf32>
    %cst_72 = arith.constant 0.000000e+00 : f32
    %175 = vector.broadcast %cst_72 : f32 to vector<16x512xf32>
    %176 = arith.subf %175, %154 : vector<16x512xf32>
    %177 = arith.mulf %176, %154 : vector<16x512xf32>
    %178 = math.exp %177 : vector<16x512xf32>
    %179 = arith.mulf %174, %178 : vector<16x512xf32>
    %cst_73 = arith.constant 1.000000e+00 : f32
    %180 = vector.broadcast %cst_73 : f32 to vector<16x512xf32>
    %181 = arith.subf %180, %179 : vector<16x512xf32>
    %cst_74 = arith.constant 0.000000e+00 : f32
    %182 = vector.broadcast %cst_74 : f32 to vector<16x512xf32>
    %183 = arith.cmpf oge, %153, %182 : vector<16x512xf32>
    %cst_75 = arith.constant 0.000000e+00 : f32
    %184 = vector.broadcast %cst_75 : f32 to vector<16x512xf32>
    %185 = arith.subf %184, %181 : vector<16x512xf32>
    %186 = arith.select %183, %181, %185 : vector<16x512xi1>, vector<16x512xf32>
    %cst_76 = arith.constant 1.000000e+00 : f32
    %187 = vector.broadcast %cst_76 : f32 to vector<16x512xf32>
    %188 = arith.addf %187, %186 : vector<16x512xf32>
    %189 = arith.mulf %151, %188 : vector<16x512xf32>
    %190 = arith.truncf %189 : vector<16x512xf32> to vector<16x512xbf16>
    %c0_77 = arith.constant 0 : index
    %c0_78 = arith.constant 0 : index
    %191 = vector.load %arg16[%c0_77, %c0_78] : memref<512x128xbf16, #tpu.memory_space<vmem>>, vector<512x128xbf16>
    %cst_79 = arith.constant dense<0.000000e+00> : vector<16x128xf32>
    %192 = tpu.matmul %190, %191, %cst_79 {dimension_numbers = #tpu.dot_dimension_numbers<[1], [0], [0], [1], [0, 0, 1, 1], [], []>} : vector<16x512xbf16>, vector<512x128xbf16>, vector<16x128xf32> -> vector<16x128xf32>
    %c0_80 = arith.constant 0 : index
    %c0_81 = arith.constant 0 : index
    %193 = vector.load %arg17[%c0_80, %c0_81] : memref<1x128xf32, #tpu.memory_space<vmem>>, vector<1x128xf32>
    %194 = vector.broadcast %193 : vector<1x128xf32> to vector<16x128xf32>
    %195 = arith.addf %192, %194 : vector<16x128xf32>
    %196 = arith.addf %195, %143 : vector<16x128xf32>
    %c0_82 = arith.constant 0 : index
    %c0_83 = arith.constant 0 : index
    %197 = vector.load %arg18[%c0_82, %c0_83] : memref<1x128xf32, #tpu.memory_space<vmem>>, vector<1x128xf32>
    %c0_84 = arith.constant 0 : index
    %c0_85 = arith.constant 0 : index
    %198 = vector.load %arg19[%c0_84, %c0_85] : memref<1x128xf32, #tpu.memory_space<vmem>>, vector<1x128xf32>
    %cst_86 = arith.constant dense<0.000000e+00> : vector<16xf32>
    %199 = vector.multi_reduction <add>, %196, %cst_86 [1] : vector<16x128xf32> to vector<16xf32>
    %200 = vector.shape_cast %199 : vector<16xf32> to vector<16x1xf32>
    %cst_87 = arith.constant 1.280000e+02 : f32
    %201 = vector.broadcast %cst_87 : f32 to vector<16x1xf32>
    %202 = arith.divf %200, %201 : vector<16x1xf32>
    %203 = vector.broadcast %202 : vector<16x1xf32> to vector<16x128xf32>
    %204 = arith.subf %196, %203 : vector<16x128xf32>
    %205 = arith.mulf %204, %204 : vector<16x128xf32>
    %cst_88 = arith.constant dense<0.000000e+00> : vector<16xf32>
    %206 = vector.multi_reduction <add>, %205, %cst_88 [1] : vector<16x128xf32> to vector<16xf32>
    %207 = vector.shape_cast %206 : vector<16xf32> to vector<16x1xf32>
    %cst_89 = arith.constant 1.280000e+02 : f32
    %208 = vector.broadcast %cst_89 : f32 to vector<16x1xf32>
    %209 = arith.divf %207, %208 : vector<16x1xf32>
    %cst_90 = arith.constant 9.99999996E-13 : f32
    %210 = vector.broadcast %cst_90 : f32 to vector<16x1xf32>
    %211 = arith.addf %209, %210 : vector<16x1xf32>
    %212 = math.rsqrt %211 : vector<16x1xf32>
    %213 = vector.broadcast %212 : vector<16x1xf32> to vector<16x128xf32>
    %214 = arith.mulf %204, %213 : vector<16x128xf32>
    %215 = vector.broadcast %197 : vector<1x128xf32> to vector<16x128xf32>
    %216 = arith.mulf %214, %215 : vector<16x128xf32>
    %217 = vector.broadcast %198 : vector<1x128xf32> to vector<16x128xf32>
    %218 = arith.addf %216, %217 : vector<16x128xf32>
    %219 = arith.truncf %218 : vector<16x128xf32> to vector<16x128xbf16>
    %c0_91 = arith.constant 0 : index
    %c0_92 = arith.constant 0 : index
    %220 = vector.load %arg20[%c0_91, %c0_92] : memref<128x384xbf16, #tpu.memory_space<vmem>>, vector<128x384xbf16>
    %cst_93 = arith.constant dense<0.000000e+00> : vector<16x384xf32>
    %221 = tpu.matmul %219, %220, %cst_93 {dimension_numbers = #tpu.dot_dimension_numbers<[1], [0], [0], [1], [0, 0, 1, 1], [], []>} : vector<16x128xbf16>, vector<128x384xbf16>, vector<16x384xf32> -> vector<16x384xf32>
    %c0_94 = arith.constant 0 : index
    %c0_95 = arith.constant 0 : index
    %222 = vector.load %arg21[%c0_94, %c0_95] : memref<1x384xf32, #tpu.memory_space<vmem>>, vector<1x384xf32>
    %223 = vector.broadcast %222 : vector<1x384xf32> to vector<16x384xf32>
    %224 = arith.addf %221, %223 : vector<16x384xf32>
    %225 = vector.extract_strided_slice %224 {offsets = [0, 0], sizes = [16, 128], strides = [1, 1]} : vector<16x384xf32> to vector<16x128xf32>
    %226 = vector.extract_strided_slice %224 {offsets = [0, 128], sizes = [16, 128], strides = [1, 1]} : vector<16x384xf32> to vector<16x128xf32>
    %227 = vector.extract_strided_slice %224 {offsets = [0, 256], sizes = [16, 128], strides = [1, 1]} : vector<16x384xf32> to vector<16x128xf32>
    %228 = vector.extract_strided_slice %225 {offsets = [0, 0], sizes = [16, 32], strides = [1, 1]} : vector<16x128xf32> to vector<16x32xf32>
    %229 = vector.extract_strided_slice %226 {offsets = [0, 0], sizes = [16, 32], strides = [1, 1]} : vector<16x128xf32> to vector<16x32xf32>
    %230 = vector.extract_strided_slice %227 {offsets = [0, 0], sizes = [16, 32], strides = [1, 1]} : vector<16x128xf32> to vector<16x32xf32>
    %cst_96 = arith.constant dense<0.000000e+00> : vector<16x16xf32>
    %231 = tpu.matmul %228, %229, %cst_96 {dimension_numbers = #tpu.dot_dimension_numbers<[1], [1], [0], [0], [0, 0, 1, 0], [], []>} : vector<16x32xf32>, vector<16x32xf32>, vector<16x16xf32> -> vector<16x16xf32>
    %cst_97 = arith.constant 0.176776692 : f32
    %232 = vector.broadcast %cst_97 : f32 to vector<16x16xf32>
    %233 = arith.mulf %231, %232 : vector<16x16xf32>
    %234 = arith.addf %233, %36 : vector<16x16xf32>
    %cst_98 = arith.constant dense<0xFF800000> : vector<16xf32>
    %235 = vector.multi_reduction <maximumf>, %234, %cst_98 [1] : vector<16x16xf32> to vector<16xf32>
    %236 = vector.shape_cast %235 : vector<16xf32> to vector<16x1xf32>
    %237 = vector.broadcast %236 : vector<16x1xf32> to vector<16x16xf32>
    %238 = arith.subf %234, %237 : vector<16x16xf32>
    %239 = math.exp %238 : vector<16x16xf32>
    %cst_99 = arith.constant dense<0.000000e+00> : vector<16xf32>
    %240 = vector.multi_reduction <add>, %239, %cst_99 [1] : vector<16x16xf32> to vector<16xf32>
    %241 = vector.shape_cast %240 : vector<16xf32> to vector<16x1xf32>
    %242 = vector.broadcast %241 : vector<16x1xf32> to vector<16x16xf32>
    %243 = arith.divf %239, %242 : vector<16x16xf32>
    %cst_100 = arith.constant dense<0.000000e+00> : vector<16x32xf32>
    %244 = tpu.matmul %243, %230, %cst_100 {dimension_numbers = #tpu.dot_dimension_numbers<[1], [0], [0], [1], [0, 0, 1, 1], [], []>} : vector<16x16xf32>, vector<16x32xf32>, vector<16x32xf32> -> vector<16x32xf32>
    %245 = vector.extract_strided_slice %225 {offsets = [0, 32], sizes = [16, 32], strides = [1, 1]} : vector<16x128xf32> to vector<16x32xf32>
    %246 = vector.extract_strided_slice %226 {offsets = [0, 32], sizes = [16, 32], strides = [1, 1]} : vector<16x128xf32> to vector<16x32xf32>
    %247 = vector.extract_strided_slice %227 {offsets = [0, 32], sizes = [16, 32], strides = [1, 1]} : vector<16x128xf32> to vector<16x32xf32>
    %cst_101 = arith.constant dense<0.000000e+00> : vector<16x16xf32>
    %248 = tpu.matmul %245, %246, %cst_101 {dimension_numbers = #tpu.dot_dimension_numbers<[1], [1], [0], [0], [0, 0, 1, 0], [], []>} : vector<16x32xf32>, vector<16x32xf32>, vector<16x16xf32> -> vector<16x16xf32>
    %cst_102 = arith.constant 0.176776692 : f32
    %249 = vector.broadcast %cst_102 : f32 to vector<16x16xf32>
    %250 = arith.mulf %248, %249 : vector<16x16xf32>
    %251 = arith.addf %250, %36 : vector<16x16xf32>
    %cst_103 = arith.constant dense<0xFF800000> : vector<16xf32>
    %252 = vector.multi_reduction <maximumf>, %251, %cst_103 [1] : vector<16x16xf32> to vector<16xf32>
    %253 = vector.shape_cast %252 : vector<16xf32> to vector<16x1xf32>
    %254 = vector.broadcast %253 : vector<16x1xf32> to vector<16x16xf32>
    %255 = arith.subf %251, %254 : vector<16x16xf32>
    %256 = math.exp %255 : vector<16x16xf32>
    %cst_104 = arith.constant dense<0.000000e+00> : vector<16xf32>
    %257 = vector.multi_reduction <add>, %256, %cst_104 [1] : vector<16x16xf32> to vector<16xf32>
    %258 = vector.shape_cast %257 : vector<16xf32> to vector<16x1xf32>
    %259 = vector.broadcast %258 : vector<16x1xf32> to vector<16x16xf32>
    %260 = arith.divf %256, %259 : vector<16x16xf32>
    %cst_105 = arith.constant dense<0.000000e+00> : vector<16x32xf32>
    %261 = tpu.matmul %260, %247, %cst_105 {dimension_numbers = #tpu.dot_dimension_numbers<[1], [0], [0], [1], [0, 0, 1, 1], [], []>} : vector<16x16xf32>, vector<16x32xf32>, vector<16x32xf32> -> vector<16x32xf32>
    %262 = vector.extract_strided_slice %225 {offsets = [0, 64], sizes = [16, 32], strides = [1, 1]} : vector<16x128xf32> to vector<16x32xf32>
    %263 = vector.extract_strided_slice %226 {offsets = [0, 64], sizes = [16, 32], strides = [1, 1]} : vector<16x128xf32> to vector<16x32xf32>
    %264 = vector.extract_strided_slice %227 {offsets = [0, 64], sizes = [16, 32], strides = [1, 1]} : vector<16x128xf32> to vector<16x32xf32>
    %cst_106 = arith.constant dense<0.000000e+00> : vector<16x16xf32>
    %265 = tpu.matmul %262, %263, %cst_106 {dimension_numbers = #tpu.dot_dimension_numbers<[1], [1], [0], [0], [0, 0, 1, 0], [], []>} : vector<16x32xf32>, vector<16x32xf32>, vector<16x16xf32> -> vector<16x16xf32>
    %cst_107 = arith.constant 0.176776692 : f32
    %266 = vector.broadcast %cst_107 : f32 to vector<16x16xf32>
    %267 = arith.mulf %265, %266 : vector<16x16xf32>
    %268 = arith.addf %267, %36 : vector<16x16xf32>
    %cst_108 = arith.constant dense<0xFF800000> : vector<16xf32>
    %269 = vector.multi_reduction <maximumf>, %268, %cst_108 [1] : vector<16x16xf32> to vector<16xf32>
    %270 = vector.shape_cast %269 : vector<16xf32> to vector<16x1xf32>
    %271 = vector.broadcast %270 : vector<16x1xf32> to vector<16x16xf32>
    %272 = arith.subf %268, %271 : vector<16x16xf32>
    %273 = math.exp %272 : vector<16x16xf32>
    %cst_109 = arith.constant dense<0.000000e+00> : vector<16xf32>
    %274 = vector.multi_reduction <add>, %273, %cst_109 [1] : vector<16x16xf32> to vector<16xf32>
    %275 = vector.shape_cast %274 : vector<16xf32> to vector<16x1xf32>
    %276 = vector.broadcast %275 : vector<16x1xf32> to vector<16x16xf32>
    %277 = arith.divf %273, %276 : vector<16x16xf32>
    %cst_110 = arith.constant dense<0.000000e+00> : vector<16x32xf32>
    %278 = tpu.matmul %277, %264, %cst_110 {dimension_numbers = #tpu.dot_dimension_numbers<[1], [0], [0], [1], [0, 0, 1, 1], [], []>} : vector<16x16xf32>, vector<16x32xf32>, vector<16x32xf32> -> vector<16x32xf32>
    %279 = vector.extract_strided_slice %225 {offsets = [0, 96], sizes = [16, 32], strides = [1, 1]} : vector<16x128xf32> to vector<16x32xf32>
    %280 = vector.extract_strided_slice %226 {offsets = [0, 96], sizes = [16, 32], strides = [1, 1]} : vector<16x128xf32> to vector<16x32xf32>
    %281 = vector.extract_strided_slice %227 {offsets = [0, 96], sizes = [16, 32], strides = [1, 1]} : vector<16x128xf32> to vector<16x32xf32>
    %cst_111 = arith.constant dense<0.000000e+00> : vector<16x16xf32>
    %282 = tpu.matmul %279, %280, %cst_111 {dimension_numbers = #tpu.dot_dimension_numbers<[1], [1], [0], [0], [0, 0, 1, 0], [], []>} : vector<16x32xf32>, vector<16x32xf32>, vector<16x16xf32> -> vector<16x16xf32>
    %cst_112 = arith.constant 0.176776692 : f32
    %283 = vector.broadcast %cst_112 : f32 to vector<16x16xf32>
    %284 = arith.mulf %282, %283 : vector<16x16xf32>
    %285 = arith.addf %284, %36 : vector<16x16xf32>
    %cst_113 = arith.constant dense<0xFF800000> : vector<16xf32>
    %286 = vector.multi_reduction <maximumf>, %285, %cst_113 [1] : vector<16x16xf32> to vector<16xf32>
    %287 = vector.shape_cast %286 : vector<16xf32> to vector<16x1xf32>
    %288 = vector.broadcast %287 : vector<16x1xf32> to vector<16x16xf32>
    %289 = arith.subf %285, %288 : vector<16x16xf32>
    %290 = math.exp %289 : vector<16x16xf32>
    %cst_114 = arith.constant dense<0.000000e+00> : vector<16xf32>
    %291 = vector.multi_reduction <add>, %290, %cst_114 [1] : vector<16x16xf32> to vector<16xf32>
    %292 = vector.shape_cast %291 : vector<16xf32> to vector<16x1xf32>
    %293 = vector.broadcast %292 : vector<16x1xf32> to vector<16x16xf32>
    %294 = arith.divf %290, %293 : vector<16x16xf32>
    %cst_115 = arith.constant dense<0.000000e+00> : vector<16x32xf32>
    %295 = tpu.matmul %294, %281, %cst_115 {dimension_numbers = #tpu.dot_dimension_numbers<[1], [0], [0], [1], [0, 0, 1, 1], [], []>} : vector<16x16xf32>, vector<16x32xf32>, vector<16x32xf32> -> vector<16x32xf32>
    %296 = tpu.concatenate %244, %261, %278, %295 in 1 : vector<16x32xf32>, vector<16x32xf32>, vector<16x32xf32>, vector<16x32xf32> -> vector<16x128xf32>
    %297 = arith.truncf %296 : vector<16x128xf32> to vector<16x128xbf16>
    %c0_116 = arith.constant 0 : index
    %c0_117 = arith.constant 0 : index
    %298 = vector.load %arg22[%c0_116, %c0_117] : memref<128x128xbf16, #tpu.memory_space<vmem>>, vector<128x128xbf16>
    %cst_118 = arith.constant dense<0.000000e+00> : vector<16x128xf32>
    %299 = tpu.matmul %297, %298, %cst_118 {dimension_numbers = #tpu.dot_dimension_numbers<[1], [0], [0], [1], [0, 0, 1, 1], [], []>} : vector<16x128xbf16>, vector<128x128xbf16>, vector<16x128xf32> -> vector<16x128xf32>
    %c0_119 = arith.constant 0 : index
    %c0_120 = arith.constant 0 : index
    %300 = vector.load %arg23[%c0_119, %c0_120] : memref<1x128xf32, #tpu.memory_space<vmem>>, vector<1x128xf32>
    %301 = vector.broadcast %300 : vector<1x128xf32> to vector<16x128xf32>
    %302 = arith.addf %299, %301 : vector<16x128xf32>
    %303 = arith.addf %302, %218 : vector<16x128xf32>
    %c0_121 = arith.constant 0 : index
    %c0_122 = arith.constant 0 : index
    %304 = vector.load %arg24[%c0_121, %c0_122] : memref<1x128xf32, #tpu.memory_space<vmem>>, vector<1x128xf32>
    %c0_123 = arith.constant 0 : index
    %c0_124 = arith.constant 0 : index
    %305 = vector.load %arg25[%c0_123, %c0_124] : memref<1x128xf32, #tpu.memory_space<vmem>>, vector<1x128xf32>
    %cst_125 = arith.constant dense<0.000000e+00> : vector<16xf32>
    %306 = vector.multi_reduction <add>, %303, %cst_125 [1] : vector<16x128xf32> to vector<16xf32>
    %307 = vector.shape_cast %306 : vector<16xf32> to vector<16x1xf32>
    %cst_126 = arith.constant 1.280000e+02 : f32
    %308 = vector.broadcast %cst_126 : f32 to vector<16x1xf32>
    %309 = arith.divf %307, %308 : vector<16x1xf32>
    %310 = vector.broadcast %309 : vector<16x1xf32> to vector<16x128xf32>
    %311 = arith.subf %303, %310 : vector<16x128xf32>
    %312 = arith.mulf %311, %311 : vector<16x128xf32>
    %cst_127 = arith.constant dense<0.000000e+00> : vector<16xf32>
    %313 = vector.multi_reduction <add>, %312, %cst_127 [1] : vector<16x128xf32> to vector<16xf32>
    %314 = vector.shape_cast %313 : vector<16xf32> to vector<16x1xf32>
    %cst_128 = arith.constant 1.280000e+02 : f32
    %315 = vector.broadcast %cst_128 : f32 to vector<16x1xf32>
    %316 = arith.divf %314, %315 : vector<16x1xf32>
    %cst_129 = arith.constant 9.99999996E-13 : f32
    %317 = vector.broadcast %cst_129 : f32 to vector<16x1xf32>
    %318 = arith.addf %316, %317 : vector<16x1xf32>
    %319 = math.rsqrt %318 : vector<16x1xf32>
    %320 = vector.broadcast %319 : vector<16x1xf32> to vector<16x128xf32>
    %321 = arith.mulf %311, %320 : vector<16x128xf32>
    %322 = vector.broadcast %304 : vector<1x128xf32> to vector<16x128xf32>
    %323 = arith.mulf %321, %322 : vector<16x128xf32>
    %324 = vector.broadcast %305 : vector<1x128xf32> to vector<16x128xf32>
    %325 = arith.addf %323, %324 : vector<16x128xf32>
    %326 = arith.truncf %325 : vector<16x128xf32> to vector<16x128xbf16>
    %c0_130 = arith.constant 0 : index
    %c0_131 = arith.constant 0 : index
    %327 = vector.load %arg26[%c0_130, %c0_131] : memref<128x512xbf16, #tpu.memory_space<vmem>>, vector<128x512xbf16>
    %cst_132 = arith.constant dense<0.000000e+00> : vector<16x512xf32>
    %328 = tpu.matmul %326, %327, %cst_132 {dimension_numbers = #tpu.dot_dimension_numbers<[1], [0], [0], [1], [0, 0, 1, 1], [], []>} : vector<16x128xbf16>, vector<128x512xbf16>, vector<16x512xf32> -> vector<16x512xf32>
    %c0_133 = arith.constant 0 : index
    %c0_134 = arith.constant 0 : index
    %329 = vector.load %arg27[%c0_133, %c0_134] : memref<1x512xf32, #tpu.memory_space<vmem>>, vector<1x512xf32>
    %330 = vector.broadcast %329 : vector<1x512xf32> to vector<16x512xf32>
    %331 = arith.addf %328, %330 : vector<16x512xf32>
    %cst_135 = arith.constant 5.000000e-01 : f32
    %332 = vector.broadcast %cst_135 : f32 to vector<16x512xf32>
    %333 = arith.mulf %332, %331 : vector<16x512xf32>
    %cst_136 = arith.constant 0.707106769 : f32
    %334 = vector.broadcast %cst_136 : f32 to vector<16x512xf32>
    %335 = arith.mulf %331, %334 : vector<16x512xf32>
    %336 = math.absf %335 : vector<16x512xf32>
    %cst_137 = arith.constant 0.327591091 : f32
    %337 = vector.broadcast %cst_137 : f32 to vector<16x512xf32>
    %338 = arith.mulf %337, %336 : vector<16x512xf32>
    %cst_138 = arith.constant 1.000000e+00 : f32
    %339 = vector.broadcast %cst_138 : f32 to vector<16x512xf32>
    %340 = arith.addf %339, %338 : vector<16x512xf32>
    %cst_139 = arith.constant 1.000000e+00 : f32
    %341 = vector.broadcast %cst_139 : f32 to vector<16x512xf32>
    %342 = arith.divf %341, %340 : vector<16x512xf32>
    %cst_140 = arith.constant 1.06140542 : f32
    %343 = vector.broadcast %cst_140 : f32 to vector<16x512xf32>
    %344 = arith.mulf %343, %342 : vector<16x512xf32>
    %cst_141 = arith.constant -1.45315206 : f32
    %345 = vector.broadcast %cst_141 : f32 to vector<16x512xf32>
    %346 = arith.addf %344, %345 : vector<16x512xf32>
    %347 = arith.mulf %346, %342 : vector<16x512xf32>
    %cst_142 = arith.constant 1.42141378 : f32
    %348 = vector.broadcast %cst_142 : f32 to vector<16x512xf32>
    %349 = arith.addf %347, %348 : vector<16x512xf32>
    %350 = arith.mulf %349, %342 : vector<16x512xf32>
    %cst_143 = arith.constant -0.284496725 : f32
    %351 = vector.broadcast %cst_143 : f32 to vector<16x512xf32>
    %352 = arith.addf %350, %351 : vector<16x512xf32>
    %353 = arith.mulf %352, %342 : vector<16x512xf32>
    %cst_144 = arith.constant 0.254829586 : f32
    %354 = vector.broadcast %cst_144 : f32 to vector<16x512xf32>
    %355 = arith.addf %353, %354 : vector<16x512xf32>
    %356 = arith.mulf %355, %342 : vector<16x512xf32>
    %cst_145 = arith.constant 0.000000e+00 : f32
    %357 = vector.broadcast %cst_145 : f32 to vector<16x512xf32>
    %358 = arith.subf %357, %336 : vector<16x512xf32>
    %359 = arith.mulf %358, %336 : vector<16x512xf32>
    %360 = math.exp %359 : vector<16x512xf32>
    %361 = arith.mulf %356, %360 : vector<16x512xf32>
    %cst_146 = arith.constant 1.000000e+00 : f32
    %362 = vector.broadcast %cst_146 : f32 to vector<16x512xf32>
    %363 = arith.subf %362, %361 : vector<16x512xf32>
    %cst_147 = arith.constant 0.000000e+00 : f32
    %364 = vector.broadcast %cst_147 : f32 to vector<16x512xf32>
    %365 = arith.cmpf oge, %335, %364 : vector<16x512xf32>
    %cst_148 = arith.constant 0.000000e+00 : f32
    %366 = vector.broadcast %cst_148 : f32 to vector<16x512xf32>
    %367 = arith.subf %366, %363 : vector<16x512xf32>
    %368 = arith.select %365, %363, %367 : vector<16x512xi1>, vector<16x512xf32>
    %cst_149 = arith.constant 1.000000e+00 : f32
    %369 = vector.broadcast %cst_149 : f32 to vector<16x512xf32>
    %370 = arith.addf %369, %368 : vector<16x512xf32>
    %371 = arith.mulf %333, %370 : vector<16x512xf32>
    %372 = arith.truncf %371 : vector<16x512xf32> to vector<16x512xbf16>
    %c0_150 = arith.constant 0 : index
    %c0_151 = arith.constant 0 : index
    %373 = vector.load %arg28[%c0_150, %c0_151] : memref<512x128xbf16, #tpu.memory_space<vmem>>, vector<512x128xbf16>
    %cst_152 = arith.constant dense<0.000000e+00> : vector<16x128xf32>
    %374 = tpu.matmul %372, %373, %cst_152 {dimension_numbers = #tpu.dot_dimension_numbers<[1], [0], [0], [1], [0, 0, 1, 1], [], []>} : vector<16x512xbf16>, vector<512x128xbf16>, vector<16x128xf32> -> vector<16x128xf32>
    %c0_153 = arith.constant 0 : index
    %c0_154 = arith.constant 0 : index
    %375 = vector.load %arg29[%c0_153, %c0_154] : memref<1x128xf32, #tpu.memory_space<vmem>>, vector<1x128xf32>
    %376 = vector.broadcast %375 : vector<1x128xf32> to vector<16x128xf32>
    %377 = arith.addf %374, %376 : vector<16x128xf32>
    %378 = arith.addf %377, %325 : vector<16x128xf32>
    %c0_155 = arith.constant 0 : index
    %c0_156 = arith.constant 0 : index
    %379 = vector.load %arg30[%c0_155, %c0_156] : memref<1x128xf32, #tpu.memory_space<vmem>>, vector<1x128xf32>
    %c0_157 = arith.constant 0 : index
    %c0_158 = arith.constant 0 : index
    %380 = vector.load %arg31[%c0_157, %c0_158] : memref<1x128xf32, #tpu.memory_space<vmem>>, vector<1x128xf32>
    %cst_159 = arith.constant dense<0.000000e+00> : vector<16xf32>
    %381 = vector.multi_reduction <add>, %378, %cst_159 [1] : vector<16x128xf32> to vector<16xf32>
    %382 = vector.shape_cast %381 : vector<16xf32> to vector<16x1xf32>
    %cst_160 = arith.constant 1.280000e+02 : f32
    %383 = vector.broadcast %cst_160 : f32 to vector<16x1xf32>
    %384 = arith.divf %382, %383 : vector<16x1xf32>
    %385 = vector.broadcast %384 : vector<16x1xf32> to vector<16x128xf32>
    %386 = arith.subf %378, %385 : vector<16x128xf32>
    %387 = arith.mulf %386, %386 : vector<16x128xf32>
    %cst_161 = arith.constant dense<0.000000e+00> : vector<16xf32>
    %388 = vector.multi_reduction <add>, %387, %cst_161 [1] : vector<16x128xf32> to vector<16xf32>
    %389 = vector.shape_cast %388 : vector<16xf32> to vector<16x1xf32>
    %cst_162 = arith.constant 1.280000e+02 : f32
    %390 = vector.broadcast %cst_162 : f32 to vector<16x1xf32>
    %391 = arith.divf %389, %390 : vector<16x1xf32>
    %cst_163 = arith.constant 9.99999996E-13 : f32
    %392 = vector.broadcast %cst_163 : f32 to vector<16x1xf32>
    %393 = arith.addf %391, %392 : vector<16x1xf32>
    %394 = math.rsqrt %393 : vector<16x1xf32>
    %395 = vector.broadcast %394 : vector<16x1xf32> to vector<16x128xf32>
    %396 = arith.mulf %386, %395 : vector<16x128xf32>
    %397 = vector.broadcast %379 : vector<1x128xf32> to vector<16x128xf32>
    %398 = arith.mulf %396, %397 : vector<16x128xf32>
    %399 = vector.broadcast %380 : vector<1x128xf32> to vector<16x128xf32>
    %400 = arith.addf %398, %399 : vector<16x128xf32>
    %401 = arith.truncf %400 : vector<16x128xf32> to vector<16x128xbf16>
    %c0_164 = arith.constant 0 : index
    %c0_165 = arith.constant 0 : index
    %402 = vector.load %arg32[%c0_164, %c0_165] : memref<128x128xbf16, #tpu.memory_space<vmem>>, vector<128x128xbf16>
    %cst_166 = arith.constant dense<0.000000e+00> : vector<16x128xf32>
    %403 = tpu.matmul %401, %402, %cst_166 {dimension_numbers = #tpu.dot_dimension_numbers<[1], [0], [0], [1], [0, 0, 1, 1], [], []>} : vector<16x128xbf16>, vector<128x128xbf16>, vector<16x128xf32> -> vector<16x128xf32>
    %c0_167 = arith.constant 0 : index
    %c0_168 = arith.constant 0 : index
    %404 = vector.load %arg33[%c0_167, %c0_168] : memref<1x128xf32, #tpu.memory_space<vmem>>, vector<1x128xf32>
    %405 = vector.broadcast %404 : vector<1x128xf32> to vector<16x128xf32>
    %406 = arith.addf %403, %405 : vector<16x128xf32>
    %407 = math.tanh %406 : vector<16x128xf32>
    %408 = arith.truncf %407 : vector<16x128xf32> to vector<16x128xbf16>
    %c0_169 = arith.constant 0 : index
    %c0_170 = arith.constant 0 : index
    %409 = vector.load %arg34[%c0_169, %c0_170] : memref<128x2xbf16, #tpu.memory_space<vmem>>, vector<128x2xbf16>
    %cst_171 = arith.constant dense<0.000000e+00> : vector<16x2xf32>
    %410 = tpu.matmul %408, %409, %cst_171 {dimension_numbers = #tpu.dot_dimension_numbers<[1], [0], [0], [1], [0, 0, 1, 1], [], []>} : vector<16x128xbf16>, vector<128x2xbf16>, vector<16x2xf32> -> vector<16x2xf32>
    %c0_172 = arith.constant 0 : index
    %c0_173 = arith.constant 0 : index
    %411 = vector.load %arg35[%c0_172, %c0_173] : memref<1x2xf32, #tpu.memory_space<vmem>>, vector<1x2xf32>
    %412 = vector.broadcast %411 : vector<1x2xf32> to vector<16x2xf32>
    %413 = arith.addf %410, %412 : vector<16x2xf32>
    %c0_174 = arith.constant 0 : index
    %c0_175 = arith.constant 0 : index
    %414 = vector.load %arg36[%c0_174, %c0_175] : memref<16x2xf32, #tpu.memory_space<vmem>>, vector<16x2xf32>
    tpu.vector_store %arg36[%c0_174, %c0_175], %413 {strides = array<i32>} : memref<16x2xf32, #tpu.memory_space<vmem>>, vector<16x2xf32>,
    return
  }
  func.func @transform_0(%arg0: i32) -> (i32, i32) {
    %c0_i32 = arith.constant 0 : i32
    %c0_i32_0 = arith.constant 0 : i32
    %c0_i32_1 = arith.constant 0 : i32
    return %c0_i32, %c0_i32_0 : i32, i32
  }
  func.func @transform_1(%arg0: i32) -> (i32, i32) {
    %c0_i32 = arith.constant 0 : i32
    %c0_i32_0 = arith.constant 0 : i32
    %c0_i32_1 = arith.constant 0 : i32
    return %c0_i32, %c0_i32_0 : i32, i32
  }
  func.func @transform_2(%arg0: i32) -> (i32, i32) {
    %c0_i32 = arith.constant 0 : i32
    %c0_i32_0 = arith.constant 0 : i32
    %c0_i32_1 = arith.constant 0 : i32
    return %c0_i32, %c0_i32_0 : i32, i32
  }
  func.func @transform_3(%arg0: i32) -> (i32, i32) {
    %c0_i32 = arith.constant 0 : i32
    %c0_i32_0 = arith.constant 0 : i32
    %c0_i32_1 = arith.constant 0 : i32
    return %c0_i32, %c0_i32_0 : i32, i32
  }
  func.func @transform_4(%arg0: i32) -> (i32, i32) {
    %c0_i32 = arith.constant 0 : i32
    %c0_i32_0 = arith.constant 0 : i32
    %c0_i32_1 = arith.constant 0 : i32
    return %c0_i32, %c0_i32_0 : i32, i32
  }
  func.func @transform_5(%arg0: i32) -> (i32, i32) {
    %c0_i32 = arith.constant 0 : i32
    %c0_i32_0 = arith.constant 0 : i32
    %c0_i32_1 = arith.constant 0 : i32
    return %c0_i32, %c0_i32_0 : i32, i32
  }
  func.func @transform_6(%arg0: i32) -> (i32, i32) {
    %c0_i32 = arith.constant 0 : i32
    %c0_i32_0 = arith.constant 0 : i32
    %c0_i32_1 = arith.constant 0 : i32
    return %c0_i32, %c0_i32_0 : i32, i32
  }
  func.func @transform_7(%arg0: i32) -> (i32, i32) {
    %c0_i32 = arith.constant 0 : i32
    %c0_i32_0 = arith.constant 0 : i32
    %c0_i32_1 = arith.constant 0 : i32
    return %c0_i32, %c0_i32_0 : i32, i32
  }
  func.func @transform_8(%arg0: i32) -> (i32, i32) {
    %c0_i32 = arith.constant 0 : i32
    %c0_i32_0 = arith.constant 0 : i32
    %c0_i32_1 = arith.constant 0 : i32
    return %c0_i32, %c0_i32_0 : i32, i32
  }
  func.func @transform_9(%arg0: i32) -> (i32, i32) {
    %c0_i32 = arith.constant 0 : i32
    %c0_i32_0 = arith.constant 0 : i32
    %c0_i32_1 = arith.constant 0 : i32
    return %c0_i32, %c0_i32_0 : i32, i32
  }
  func.func @transform_10(%arg0: i32) -> (i32, i32) {
    %c0_i32 = arith.constant 0 : i32
    %c0_i32_0 = arith.constant 0 : i32
    %c0_i32_1 = arith.constant 0 : i32
    return %c0_i32, %c0_i32_0 : i32, i32
  }
  func.func @transform_11(%arg0: i32) -> (i32, i32) {
    %c0_i32 = arith.constant 0 : i32
    %c0_i32_0 = arith.constant 0 : i32
    %c0_i32_1 = arith.constant 0 : i32
    return %c0_i32, %c0_i32_0 : i32, i32
  }
  func.func @transform_12(%arg0: i32) -> (i32, i32) {
    %c0_i32 = arith.constant 0 : i32
    %c0_i32_0 = arith.constant 0 : i32
    %c0_i32_1 = arith.constant 0 : i32
    return %c0_i32, %c0_i32_0 : i32, i32
  }
  func.func @transform_13(%arg0: i32) -> (i32, i32) {
    %c0_i32 = arith.constant 0 : i32
    %c0_i32_0 = arith.constant 0 : i32
    %c0_i32_1 = arith.constant 0 : i32
    return %c0_i32, %c0_i32_0 : i32, i32
  }
  func.func @transform_14(%arg0: i32) -> (i32, i32) {
    %c0_i32 = arith.constant 0 : i32
    %c0_i32_0 = arith.constant 0 : i32
    %c0_i32_1 = arith.constant 0 : i32
    return %c0_i32, %c0_i32_0 : i32, i32
  }
  func.func @transform_15(%arg0: i32) -> (i32, i32) {
    %c0_i32 = arith.constant 0 : i32
    %c0_i32_0 = arith.constant 0 : i32
    %c0_i32_1 = arith.constant 0 : i32
    return %c0_i32, %c0_i32_0 : i32, i32
  }
  func.func @transform_16(%arg0: i32) -> (i32, i32) {
    %c0_i32 = arith.constant 0 : i32
    %c0_i32_0 = arith.constant 0 : i32
    %c0_i32_1 = arith.constant 0 : i32
    return %c0_i32, %c0_i32_0 : i32, i32
  }
  func.func @transform_17(%arg0: i32) -> (i32, i32) {
    %c0_i32 = arith.constant 0 : i32
    %c0_i32_0 = arith.constant 0 : i32
    %c0_i32_1 = arith.constant 0 : i32
    return %c0_i32, %c0_i32_0 : i32, i32
  }
  func.func @transform_18(%arg0: i32) -> (i32, i32) {
    %c0_i32 = arith.constant 0 : i32
    %c0_i32_0 = arith.constant 0 : i32
    %c0_i32_1 = arith.constant 0 : i32
    return %c0_i32, %c0_i32_0 : i32, i32
  }
  func.func @transform_19(%arg0: i32) -> (i32, i32) {
    %c0_i32 = arith.constant 0 : i32
    %c0_i32_0 = arith.constant 0 : i32
    %c0_i32_1 = arith.constant 0 : i32
    return %c0_i32, %c0_i32_0 : i32, i32
  }
  func.func @transform_20(%arg0: i32) -> (i32, i32) {
    %c0_i32 = arith.constant 0 : i32
    %c0_i32_0 = arith.constant 0 : i32
    %c0_i32_1 = arith.constant 0 : i32
    return %c0_i32, %c0_i32_0 : i32, i32
  }
  func.func @transform_21(%arg0: i32) -> (i32, i32) {
    %c0_i32 = arith.constant 0 : i32
    %c0_i32_0 = arith.constant 0 : i32
    %c0_i32_1 = arith.constant 0 : i32
    return %c0_i32, %c0_i32_0 : i32, i32
  }
  func.func @transform_22(%arg0: i32) -> (i32, i32) {
    %c0_i32 = arith.constant 0 : i32
    %c0_i32_0 = arith.constant 0 : i32
    %c0_i32_1 = arith.constant 0 : i32
    return %c0_i32, %c0_i32_0 : i32, i32
  }
  func.func @transform_23(%arg0: i32) -> (i32, i32) {
    %c0_i32 = arith.constant 0 : i32
    %c0_i32_0 = arith.constant 0 : i32
    %c0_i32_1 = arith.constant 0 : i32
    return %c0_i32, %c0_i32_0 : i32, i32
  }
  func.func @transform_24(%arg0: i32) -> (i32, i32) {
    %c0_i32 = arith.constant 0 : i32
    %c0_i32_0 = arith.constant 0 : i32
    %c0_i32_1 = arith.constant 0 : i32
    return %c0_i32, %c0_i32_0 : i32, i32
  }
  func.func @transform_25(%arg0: i32) -> (i32, i32) {
    %c0_i32 = arith.constant 0 : i32
    %c0_i32_0 = arith.constant 0 : i32
    %c0_i32_1 = arith.constant 0 : i32
    return %c0_i32, %c0_i32_0 : i32, i32
  }
  func.func @transform_26(%arg0: i32) -> (i32, i32) {
    %c0_i32 = arith.constant 0 : i32
    %c0_i32_0 = arith.constant 0 : i32
    %c0_i32_1 = arith.constant 0 : i32
    return %c0_i32, %c0_i32_0 : i32, i32
  }
  func.func @transform_27(%arg0: i32) -> (i32, i32) {
    %c0_i32 = arith.constant 0 : i32
    %c0_i32_0 = arith.constant 0 : i32
    %c0_i32_1 = arith.constant 0 : i32
    return %c0_i32, %c0_i32_0 : i32, i32
  }
  func.func @transform_28(%arg0: i32) -> (i32, i32) {
    %c0_i32 = arith.constant 0 : i32
    %c0_i32_0 = arith.constant 0 : i32
    %c0_i32_1 = arith.constant 0 : i32
    return %c0_i32, %c0_i32_0 : i32, i32
  }
  func.func @transform_29(%arg0: i32) -> (i32, i32) {
    %c0_i32 = arith.constant 0 : i32
    %c0_i32_0 = arith.constant 0 : i32
    %c0_i32_1 = arith.constant 0 : i32
    return %c0_i32, %c0_i32_0 : i32, i32
  }
  func.func @transform_30(%arg0: i32) -> (i32, i32) {
    %c0_i32 = arith.constant 0 : i32
    %c0_i32_0 = arith.constant 0 : i32
    %c0_i32_1 = arith.constant 0 : i32
    return %c0_i32, %c0_i32_0 : i32, i32
  }
  func.func @transform_31(%arg0: i32) -> (i32, i32) {
    %c0_i32 = arith.constant 0 : i32
    %c0_i32_0 = arith.constant 0 : i32
    %c0_i32_1 = arith.constant 0 : i32
    return %c0_i32, %c0_i32_0 : i32, i32
  }
  func.func @transform_32(%arg0: i32) -> (i32, i32) {
    %c0_i32 = arith.constant 0 : i32
    %c0_i32_0 = arith.constant 0 : i32
    %c0_i32_1 = arith.constant 0 : i32
    return %c0_i32, %c0_i32_0 : i32, i32
  }
  func.func @transform_33(%arg0: i32) -> (i32, i32) {
    %c0_i32 = arith.constant 0 : i32
    %c0_i32_0 = arith.constant 0 : i32
    %c0_i32_1 = arith.constant 0 : i32
    return %c0_i32, %c0_i32_0 : i32, i32
  }
  func.func @transform_34(%arg0: i32) -> (i32, i32) {
    %c0_i32 = arith.constant 0 : i32
    %c0_i32_0 = arith.constant 0 : i32
    %c0_i32_1 = arith.constant 0 : i32
    return %c0_i32, %c0_i32_0 : i32, i32
  }
  func.func @transform_35(%arg0: i32) -> (i32, i32) {
    %c0_i32 = arith.constant 0 : i32
    %c0_i32_0 = arith.constant 0 : i32
    %c0_i32_1 = arith.constant 0 : i32
    return %c0_i32, %c0_i32_0 : i32, i32
  }
}

</mosaic_0001>

<bundles_post_ra>
// kernel: bert_forward.1
= control target key start
LH: loop header
LB: loop body
LE: loop exit
PB: predicated region body
PF: predicated region fallthrough
CT: control target
= control target key end

     0   :  { %s6681_s6 = smov 1   ;;  %s6682_s10 = smov 2   ;;  %s7705_s0 = inlined_call_operand.smem [shape: u32[36], index: -1, kind: input, shape index: {}] }
   0x1   :  { %s6747_s5 = sld [smem:[%s7705_s0]]   ;;  %s6683_s14 = smov 3  }
   0x2   :  { %s6752_s9 = sld [smem:[%s7705_s0 + %s6681_s6]]   ;;  %s6684_s18 = smov 4  }
   0x3   :  { %s6757_s13 = sld [smem:[%s7705_s0 + %s6682_s10]]   ;;  %s6685_s22 = smov 5  }
   0x4   :  { %s6762_s17 = sld [smem:[%s7705_s0 + %s6683_s14]]   ;;  %s6686_s26 = smov 6  }
   0x5   :  { %s6767_s21 = sld [smem:[%s7705_s0 + %s6684_s18]]   ;;  %s6687_s30 = smov 7  }
   0x6   :  { %s6772_s25 = sld [smem:[%s7705_s0 + %s6685_s22]]   ;;  %s6688_s4 = smov 8  }
   0x7   :  { %s6777_s29 = sld [smem:[%s7705_s0 + %s6686_s26]]   ;;  %s6689_s10 = smov 9  }
   0x8   :  { %7708 = sst [smem:[#allocation21_spill]] %s6752_s9  ;;  %s6690_s15 = smov 10  }
   0x9   :  { %s6782_s3 = sld [smem:[%s7705_s0 + %s6687_s30]]   ;;  %s6691_s20 = smov 11  }
   0xa   :  { %s6787_s8 = sld [smem:[%s7705_s0 + %s6688_s4]]   ;;  %s6692_s26 = smov 12  }
   0xb   :  { %s6792_s14 = sld [smem:[%s7705_s0 + %s6689_s10]]   ;;  %s6693_s1 = smov 13  }
   0xc   :  { %s6797_s19 = sld [smem:[%s7705_s0 + %s6690_s15]]   ;;  %s6694_s7 = smov 14  }
   0xd   :  { %s6802_s24 = sld [smem:[%s7705_s0 + %s6691_s20]]   ;;  %s6695_s15 = smov 15  }
   0xe   :  { %s6807_s30 = sld [smem:[%s7705_s0 + %s6692_s26]]   ;;  %s6696_s22 = smov 16  }
   0xf   :  { %s6812_s6 = sld [smem:[%s7705_s0 + %s6693_s1]]   ;;  %s6697_s28 = smov 17  }
  0x10   :  { %7709 = sst [smem:[#allocation22_spill]] %s6787_s8 }
  0x11   :  { %s6817_s12 = sld [smem:[%s7705_s0 + %s6694_s7]]   ;;  %s6698_s7 = smov 18  }
  0x12   :  { %7710 = sst [smem:[#allocation23_spill]] %s6797_s19 }
  0x13   :  { %7711 = sst [smem:[#allocation24_spill]] %s6802_s24 }
  0x14   :  { %7712 = sst [smem:[#allocation25_spill]] %s6807_s30 }
  0x15   :  { %s6822_s20 = sld [smem:[%s7705_s0 + %s6695_s15]]   ;;  %s6699_s15 = smov 19  }
  0x16   :  { %s6827_s27 = sld [smem:[%s7705_s0 + %s6696_s22]]   ;;  %s6700_s22 = smov 20  }
  0x17   :  { %7713 = sst [smem:[#allocation26_spill]] %s6817_s12 }
  0x18   :  { %s6832_s4 = sld [smem:[%s7705_s0 + %s6697_s28]]   ;;  %s6701_s28 = smov 21  }
  0x19   :  { %s6837_s12 = sld [smem:[%s7705_s0 + %s6698_s7]]   ;;  %s6702_s7 = smov 22  }
  0x1a   :  { %s6842_s30 = sld [smem:[%s7705_s0 + %s6699_s15]]   ;;  %s6703_s15 = smov 23  }
  0x1c   :  { %7714 = sst [smem:[#allocation27_spill]] %s6827_s27 }
  0x1d   :  { %s6847_s27 = sld [smem:[%s7705_s0 + %s6700_s22]]   ;;  %s6704_s22 = smov 24  }
  0x1e   :  { %7715 = sst [smem:[#allocation28_spill]] %s6832_s4 }
  0x1f   :  { %7716 = sst [smem:[#allocation29_spill]] %s6837_s12 }
  0x20   :  { %7717 = sst [smem:[#allocation30_spill]] %s6842_s30 }
  0x21   :  { %s6852_s4 = sld [smem:[%s7705_s0 + %s6701_s28]]   ;;  %s6705_s28 = smov 25  }
  0x22   :  { %s6857_s12 = sld [smem:[%s7705_s0 + %s6702_s7]]   ;;  %s6706_s7 = smov 26  }
  0x23   :  { %7718 = sst [smem:[#allocation31_spill]] %s6847_s27 }
  0x24   :  { %s6862_s30 = sld [smem:[%s7705_s0 + %s6703_s15]]   ;;  %s6707_s15 = smov 27  }
  0x25   :  { %s6867_s27 = sld [smem:[%s7705_s0 + %s6704_s22]]   ;;  %s6708_s22 = smov 28  }
  0x26   :  { %s6872_s24 = sld [smem:[%s7705_s0 + %s6705_s28]]   ;;  %s6709_s28 = smov 29  }
  0x27   :  { %s6892_s19 = sld [smem:[%s7705_s0 + %s6709_s28]]   ;;  %s6713_s28 = smov 33  }
  0x28   :  { %7719 = sst [smem:[#allocation32_spill]] %s6857_s12 }
  0x29   :  { %s6877_s12 = sld [smem:[%s7705_s0 + %s6706_s7]]   ;;  %s6710_s7 = smov 30  }
  0x2a   :  { %7720 = sst [smem:[#allocation33_spill]] %s6862_s30 }
  0x2b   :  { %7721 = sst [smem:[#allocation34_spill]] %s6867_s27 }
  0x2c   :  { %s6882_s30 = sld [smem:[%s7705_s0 + %s6707_s15]]   ;;  %s6711_s15 = smov 31  }
  0x2d   :  { %s6887_s27 = sld [smem:[%s7705_s0 + %s6708_s22]]   ;;  %s6712_s22 = smov 32  }
  0x2e   :  { %7724 = sst [smem:[#allocation37_spill]] %s6892_s19 }
  0x2f   :  { %7722 = sst [smem:[#allocation35_spill]] %s6877_s12 }
  0x30   :  { %s6897_s12 = sld [smem:[%s7705_s0 + %s6710_s7]]   ;;  %s6714_s7 = smov 34  }
  0x31   :  { %s6902_s9 = sld [smem:[%s7705_s0 + %s6711_s15]]   ;;  %s6715_s15 = smov 35  }
  0x32   :  { %s6912_s19 = sld [smem:[%s7705_s0 + %s6713_s28]]  }
  0x33   :  { %7723 = sst [smem:[#allocation36_spill]] %s6887_s27 }
  0x34   :  { %s6907_s27 = sld [smem:[%s7705_s0 + %s6712_s22]]  }
  0x35   :  { %s6922_s8 = sld [smem:[%s7705_s0 + %s6715_s15]]  }
  0x36   :  { %7725 = sst [smem:[#allocation38_spill]] %s6897_s12 }
  0x37   :  { %s6917_s12 = sld [smem:[%s7705_s0 + %s6714_s7]]  }
  0x38   :  { %76 = vsyncpa [#allocation3], 0 }
  0x39   :  { %77 = vsyncpa [#allocation5], 0 }
  0x3a   :  { %78 = vsyncpa [#allocation8], 0 }
  0x3b   :  { %79 = vsyncpa [#allocation11], 0 }
  0x3c   :  { %80 = vsyncpa [#allocation14], 0  ;;  %s6716_s22 = smov [#allocation4]   ;;  %s6473_s26 = scalar_lea.hbm %s6782_s3, 3072 }
  0x3d   :  { %s110_s23 = sshll.u32 %s6716_s22, 4  ;;  %p6474_p0 = scmp.ne.s32.totalorder %s6782_s3, %s6473_s26  ;;  %s111_s23 = int_to_ptr.vmem [resolvable:$true] %s110_s23 }
  0x3e   :  { %p6477_p1 = scmp.lt.u32.totalorder %s6473_s26, %s6782_s3 }
  0x40   :  { %p6479_p2 = pnand %p6477_p1, %p6474_p0 }
  0x42   :  { %6482 = shalt.err (!%p6479_p2)
}
  0x43   :  { %s6483_s28 = scalar_lea.vmem %s111_s23, 3072  ;;  %p6488_p4 = scmp.lt.s32.totalorder %s111_s23, %s111_s23 }
  0x44   :  { %p6484_p3 = scmp.ne.s32.totalorder %s111_s23, %s6483_s28  ;;  %p6489_p5 = scmp.lt.s32.totalorder %s6483_s28, %s6483_s28 }
  0x46   :  { %p6490_p6 = por %p6489_p5, %p6488_p4 }
  0x48   :  { %p6491_p7 = pnand %p6490_p6, %p6484_p3 }
  0x4a   :  { %6494 = shalt.err (!%p6491_p7)
}
  0x4b   :  { %s6717_s0 = smov 192   ;;  %s6718_s1 = smov 12  }
  0x4c   :  { %116 = dma.hbm_to_vmem [thread:$0]  %s6782_s3, 3072, %s111_s23, [#allocation5], %s6717_s0, %s6717_s0, %s6718_s1  }
  0x4d   :  { %s6719_s2 = smov [#allocation7]   ;;  %s6495_s10 = scalar_lea.hbm %s6812_s6, 4096 }
  0x4e   :  { %s142_s7 = sshll.u32 %s6719_s2, 4  ;;  %p6496_p8 = scmp.ne.s32.totalorder %s6812_s6, %s6495_s10  ;;  %s143_s7 = int_to_ptr.vmem [resolvable:$true] %s142_s7 }
  0x4f   :  { %p6499_p9 = scmp.lt.u32.totalorder %s6495_s10, %s6812_s6 }
  0x51   :  { %p6501_p10 = pnand %p6499_p9, %p6496_p8 }
  0x53   :  { %6504 = shalt.err (!%p6501_p10)
}
  0x54   :  { %s6505_s11 = scalar_lea.vmem %s143_s7, 4096  ;;  %p6510_p12 = scmp.lt.s32.totalorder %s143_s7, %s143_s7 }
  0x55   :  { %p6506_p11 = scmp.ne.s32.totalorder %s143_s7, %s6505_s11  ;;  %p6511_p13 = scmp.lt.s32.totalorder %s6505_s11, %s6505_s11 }
  0x57   :  { %p6512_p0 = por %p6511_p13, %p6510_p12 }
  0x59   :  { %p6513_p1 = pnand %p6512_p0, %p6506_p11 }
  0x5b   :  { %6516 = shalt.err (!%p6513_p1)
}
  0x5c   :  { %s6720_s15 = smov 256   ;;  %s6721_s3 = smov 16  }
  0x5d   :  { %148 = dma.hbm_to_vmem [thread:$0]  %s6812_s6, 4096, %s143_s7, [#allocation8], %s6720_s15, %s6720_s15, %s6721_s3  }
  0x5e   :  { %s6722_s16 = smov [#allocation10]   ;;  %s6723_s22 = smov [#allocation13]  }
  0x5f   :  { %s178_s18 = sshll.u32 %s6722_s16, 4  ;;  %s210_s23 = sshll.u32 %s6723_s22, 4  ;;  %s179_s18 = int_to_ptr.vmem [resolvable:$true] %s178_s18  ;;  %s6935_s23 = int_to_ptr.vmem [resolvable:$true] %s210_s23 }
  0x60   :  { %s6517_s26 = scalar_lea.hbm %s6852_s4, 1024 }
  0x61   :  { %p6518_p2 = scmp.ne.s32.totalorder %s6852_s4, %s6517_s26  ;;  %p6521_p3 = scmp.lt.u32.totalorder %s6517_s26, %s6852_s4 }
  0x63   :  { %p6523_p4 = pnand %p6521_p3, %p6518_p2 }
  0x65   :  { %6526 = shalt.err (!%p6523_p4)
}
  0x66   :  { %s6527_s28 = scalar_lea.vmem %s179_s18, 1024  ;;  %p6532_p6 = scmp.lt.s32.totalorder %s179_s18, %s179_s18 }
  0x67   :  { %p6528_p5 = scmp.ne.s32.totalorder %s179_s18, %s6527_s28  ;;  %p6533_p7 = scmp.lt.s32.totalorder %s6527_s28, %s6527_s28 }
  0x69   :  { %p6534_p8 = por %p6533_p7, %p6532_p6 }
  0x6b   :  { %p6535_p9 = pnand %p6534_p8, %p6528_p5 }
  0x6d   :  { %6538 = shalt.err (!%p6535_p9)
}
  0x6e   :  { %s6724_s6 = smov 64   ;;  %s6725_s0 = smov 4  }
  0x6f   :  { %184 = dma.hbm_to_vmem [thread:$0]  %s6852_s4, 1024, %s179_s18, [#allocation11], %s6724_s6, %s6724_s6, %s6725_s0  }
  0x70   :  { %s6539_s1 = scalar_lea.hbm %s6882_s30, 4096 }
  0x71   :  { %p6540_p10 = scmp.ne.s32.totalorder %s6882_s30, %s6539_s1  ;;  %p6543_p11 = scmp.lt.u32.totalorder %s6539_s1, %s6882_s30 }
  0x73   :  { %p6545_p12 = pnand %p6543_p11, %p6540_p10 }
  0x75   :  { %6548 = shalt.err (!%p6545_p12)
}
  0x76   :  { %s6549_s2 = scalar_lea.vmem %s6935_s23, 4096  ;;  %p6554_p0 = scmp.lt.s32.totalorder %s6935_s23, %s6935_s23 }
  0x77   :  { %p6550_p13 = scmp.ne.s32.totalorder %s6935_s23, %s6549_s2  ;;  %p6555_p1 = scmp.lt.s32.totalorder %s6549_s2, %s6549_s2 }
  0x79   :  { %p6556_p2 = por %p6555_p1, %p6554_p0 }
  0x7b   :  { %p6557_p3 = pnand %p6556_p2, %p6550_p13 }
  0x7d   :  { %6560 = shalt.err (!%p6557_p3)
}
  0x7e   :  { %216 = dma.hbm_to_vmem [thread:$0]  %s6882_s30, 4096, %s6935_s23, [#allocation14], %s6724_s6, %s6724_s6, %s6725_s0  }
  0x7f   :  { %s6726_s4 = smov [#allocation2]   ;;  %s6561_s10 = scalar_lea.hbm %s6757_s13, 2048 }
  0x80   :  { %s90_s7 = sshll.u32 %s6726_s4, 4  ;;  %p6562_p4 = scmp.ne.s32.totalorder %s6757_s13, %s6561_s10  ;;  %s91_s7 = int_to_ptr.vmem [resolvable:$true] %s90_s7 }
  0x81   :  { %p6565_p5 = scmp.lt.u32.totalorder %s6561_s10, %s6757_s13 }
  0x83   :  { %p6567_p6 = pnand %p6565_p5, %p6562_p4 }
  0x85   :  { %6570 = shalt.err (!%p6567_p6)
}
  0x86   :  { %s6571_s11 = scalar_lea.vmem %s91_s7, 2048  ;;  %p6576_p8 = scmp.lt.s32.totalorder %s91_s7, %s91_s7 }
  0x87   :  { %p6572_p7 = scmp.ne.s32.totalorder %s91_s7, %s6571_s11  ;;  %p6577_p9 = scmp.lt.s32.totalorder %s6571_s11, %s6571_s11 }
  0x89   :  { %p6578_p10 = por %p6577_p9, %p6576_p8 }
  0x8b   :  { %p6579_p11 = pnand %p6578_p10, %p6572_p7 }
  0x8d   :  { %6582 = shalt.err (!%p6579_p11)
}
  0x8e   :  { %s6727_s16 = smov 128   ;;  %s6728_s30 = smov 8  }
  0x8f   :  { %96 = dma.hbm_to_vmem [thread:$0]  %s6757_s13, 2048, %s91_s7, [#allocation3], %s6727_s16, %s6727_s16, %s6728_s30  }
  0x90   :  { %s6729_s18 = smov [#allocation6]   ;;  %s6730_s23 = smov [#allocation9]  }
  0x91   :  { %s124_s22 = sshll.u32 %s6729_s18, 4  ;;  %s156_s26 = sshll.u32 %s6730_s23, 4  ;;  %s125_s22 = int_to_ptr.vmem [resolvable:$true] %s124_s22  ;;  %s157_s26 = int_to_ptr.vmem [resolvable:$true] %s156_s26 }
  0x92   :  { %s6583_s28 = scalar_lea.hbm %s6792_s14, 1024 }
  0x93   :  { %p6584_p12 = scmp.ne.s32.totalorder %s6792_s14, %s6583_s28  ;;  %p6587_p13 = scmp.lt.u32.totalorder %s6583_s28, %s6792_s14 }
  0x95   :  { %p6589_p0 = pnand %p6587_p13, %p6584_p12 }
  0x97   :  { %6592 = shalt.err (!%p6589_p0)
}
  0x98   :  { %s6593_s1 = scalar_lea.vmem %s125_s22, 1024  ;;  %p6598_p2 = scmp.lt.s32.totalorder %s125_s22, %s125_s22 }
  0x99   :  { %p6594_p1 = scmp.ne.s32.totalorder %s125_s22, %s6593_s1  ;;  %p6599_p3 = scmp.lt.s32.totalorder %s6593_s1, %s6593_s1 }
  0x9b   :  { %p6600_p4 = por %p6599_p3, %p6598_p2 }
  0x9d   :  { %p6601_p5 = pnand %p6600_p4, %p6594_p1 }
  0x9f   :  { %6604 = shalt.err (!%p6601_p5)
}
  0xa0   :  { %130 = dma.hbm_to_vmem [thread:$0]  %s6792_s14, 1024, %s125_s22, [#allocation5], %s6724_s6, %s6724_s6, %s6725_s0  }
  0xa1   :  { %s6605_s13 = scalar_lea.hbm %s6822_s20, 4096 }
  0xa2   :  { %p6606_p6 = scmp.ne.s32.totalorder %s6822_s20, %s6605_s13  ;;  %p6609_p7 = scmp.lt.u32.totalorder %s6605_s13, %s6822_s20 }
  0xa4   :  { %p6611_p8 = pnand %p6609_p7, %p6606_p6 }
  0xa6   :  { %6614 = shalt.err (!%p6611_p8)
}
  0xa7   :  { %s6615_s2 = scalar_lea.vmem %s157_s26, 4096  ;;  %p6620_p10 = scmp.lt.s32.totalorder %s157_s26, %s157_s26 }
  0xa8   :  { %p6616_p9 = scmp.ne.s32.totalorder %s157_s26, %s6615_s2  ;;  %p6621_p11 = scmp.lt.s32.totalorder %s6615_s2, %s6615_s2 }
  0xaa   :  { %p6622_p12 = por %p6621_p11, %p6620_p10 }
  0xac   :  { %p6623_p13 = pnand %p6622_p12, %p6616_p9 }
  0xae   :  { %6626 = shalt.err (!%p6623_p13)
}
  0xaf   :  { %162 = dma.hbm_to_vmem [thread:$0]  %s6822_s20, 4096, %s157_s26, [#allocation8], %s6724_s6, %s6724_s6, %s6725_s0  }
  0xb0   :  { %s6731_s14 = smov [#allocation12]   ;;  %s6732_s7 = smov [#allocation15]  }
  0xb1   :  { %s196_s4 = sshll.u32 %s6731_s14, 4  ;;  %s228_s10 = sshll.u32 %s6732_s7, 4  ;;  %s197_s4 = int_to_ptr.vmem [resolvable:$true] %s196_s4  ;;  %s229_s10 = int_to_ptr.vmem [resolvable:$true] %s228_s10 }
  0xb2   :  { %s6627_s11 = scalar_lea.hbm %s6872_s24, 4096 }
  0xb3   :  { %p6628_p0 = scmp.ne.s32.totalorder %s6872_s24, %s6627_s11  ;;  %p6631_p1 = scmp.lt.u32.totalorder %s6627_s11, %s6872_s24 }
  0xb5   :  { %p6633_p2 = pnand %p6631_p1, %p6628_p0 }
  0xb7   :  { %6636 = shalt.err (!%p6633_p2)
}
  0xb8   :  { %s6637_s16 = scalar_lea.vmem %s197_s4, 4096  ;;  %p6642_p4 = scmp.lt.s32.totalorder %s197_s4, %s197_s4 }
  0xb9   :  { %p6638_p3 = scmp.ne.s32.totalorder %s197_s4, %s6637_s16  ;;  %p6643_p5 = scmp.lt.s32.totalorder %s6637_s16, %s6637_s16 }
  0xbb   :  { %p6644_p6 = por %p6643_p5, %p6642_p4 }
  0xbd   :  { %p6645_p7 = pnand %p6644_p6, %p6638_p3 }
  0xbf   :  { %6648 = shalt.err (!%p6645_p7)
}
  0xc0   :  { %202 = dma.hbm_to_vmem [thread:$0]  %s6872_s24, 4096, %s197_s4, [#allocation11], %s6720_s15, %s6720_s15, %s6721_s3  }
  0xc1   :  { %s6649_s20 = scalar_lea.hbm %s6902_s9, 1024 }
  0xc2   :  { %p6650_p8 = scmp.ne.s32.totalorder %s6902_s9, %s6649_s20  ;;  %p6653_p9 = scmp.lt.u32.totalorder %s6649_s20, %s6902_s9 }
  0xc4   :  { %p6655_p10 = pnand %p6653_p9, %p6650_p8 }
  0xc6   :  { %6658 = shalt.err (!%p6655_p10)
}
  0xc7   :  { %s6659_s30 = scalar_lea.vmem %s229_s10, 1024  ;;  %p6664_p12 = scmp.lt.s32.totalorder %s229_s10, %s229_s10 }
  0xc8   :  { %p6660_p11 = scmp.ne.s32.totalorder %s229_s10, %s6659_s30  ;;  %p6665_p13 = scmp.lt.s32.totalorder %s6659_s30, %s6659_s30 }
  0xca   :  { %p6666_p0 = por %p6665_p13, %p6664_p12 }
  0xcc   :  { %p6667_p1 = pnand %p6666_p0, %p6660_p11 }
  0xce   :  { %6670 = shalt.err (!%p6667_p1)
}
  0xcf   :  { %234 = dma.hbm_to_vmem [thread:$0]  %s6902_s9, 1024, %s229_s10, [#allocation14], %s6724_s6, %s6724_s6, %s6725_s0  }
  0xd0   :  { %6671 = dma.done.wait [#allocation3], 2048  }
  0xd1   :  { %6672 = vsyncadd [#allocation3], 4294965248 }
  0xd2   :  { %6673 = dma.done.wait [#allocation5], 4096  }
  0xd3   :  { %6674 = vsyncadd [#allocation5], 4294963200 }
  0xd4   :  { %6675 = dma.done.wait [#allocation8], 8192  }
  0xd5   :  { %6676 = vsyncadd [#allocation8], 4294959104 }
  0xd6   :  { %6677 = dma.done.wait [#allocation11], 5120  }
  0xd7   :  { %6678 = vsyncadd [#allocation11], 4294962176 }
  0xd8   :  { %6679 = dma.done.wait [#allocation14], 5120  }
  0xd9   :  { %6680 = vsyncadd [#allocation14], 4294962176  ;;  %v6733_v0 = vmov 0   ;;  %v269_v1 = vld [vmem:[%s6747_s5] sm:$0xff]  ;;  %v286_v3 = vld [vmem:[#allocation2 + $0x8] sm:$0xff]  ;;  %v271_v27 = vlaneseq  ;;  %v6734_v30 = vmov 1.0  }
  0xda   :  { %5972 = vset.pattern.permute.xlu0 %v6733_v0  ;;  %639 = vmatprep.mubr.bf16.mxu1 %v6733_v0  ;;  %v285_v2 = vld [vmem:[#allocation2] sm:$0xff]  ;;  %v287_v4 = vld [vmem:[#allocation2 + $0x10] sm:$0xff]  ;;  %v288_v5 = vld [vmem:[#allocation2 + $0x18] sm:$0xff]  ;;  %v6735_v42 = vmov 0.0   ;;  %vm6736_vm2 = vmmov 0   ;;  %vm691_vm3 = vcmask 261120  }
  0xdb   :  { %274 = vperm.xlu0 %5972, %v269_v1   ;;  %v270_v6 = vld [vmem:[%s6747_s5 + $0x8] sm:$0xff]  ;;  %v5802_v7 = vpack.c.bf16 %v286_v3, %v285_v2  ;;  %v5806_v8 = vpack.c.bf16 %v288_v5, %v287_v4  ;;  %v289_v9 = vld [vmem:[#allocation2 + $0x20] sm:$0xff]  ;;  %v291_v11 = vld [vmem:[#allocation2 + $0x30] sm:$0xff]  ;;  %v272_v28 = vand.u32 127, %v271_v27  ;;  %s7726_s5 = sld [smem:[#allocation22_spill]]  ;;  %s6737_s9 = smov 96  }
  0xdc   :  { %v290_v10 = vld [vmem:[#allocation2 + $0x28] sm:$0xff]  ;;  %v292_v12 = vld [vmem:[#allocation2 + $0x38] sm:$0xff]  ;;  %v293_v14 = vld [vmem:[#allocation2 + $0x40] sm:$0xff]  ;;  %vm783_vm5 = vcmask 130048   ;;  %vm1527_vm6 = vcmask 523264   ;;  %vm1530_vm7 = vcmask 785408  }
  0xdd   :  { %5803 = vmatprep.subr.bf16.mxu0 %v5802_v7  ;;  %v5810_v13 = vpack.c.bf16 %v290_v10, %v289_v9  ;;  %v294_v15 = vld [vmem:[#allocation2 + $0x48] sm:$0xff]  ;;  %v5814_v16 = vpack.c.bf16 %v292_v12, %v291_v11  ;;  %v295_v17 = vld [vmem:[#allocation2 + $0x50] sm:$0xff]  ;;  %v296_v18 = vld [vmem:[#allocation2 + $0x58] sm:$0xff]  ;;  %s7732_s24 = sld [smem:[#allocation25_spill]]  ;;  %s7733_s15 = sld [smem:[#allocation26_spill]] }
  0xde   :  { %5805 = vmatpush3.bf16.msra.mxu0 %v5802_v7  ;;  %v5818_v19 = vpack.c.bf16 %v294_v15, %v293_v14  ;;  %v297_v20 = vld [vmem:[#allocation2 + $0x60] sm:$0xff]  ;;  %v298_v21 = vld [vmem:[#allocation2 + $0x68] sm:$0xff]  ;;  %v5822_v22 = vpack.c.bf16 %v296_v18, %v295_v17  ;;  %v299_v23 = vld [vmem:[#allocation2 + $0x70] sm:$0xff]  ;;  %s7734_s3 = sld [smem:[#allocation27_spill]]  ;;  %s7735_s0 = sld [smem:[#allocation30_spill]] }
  0xdf   :  { %277 = vperm.xlu0 %5972, %v270_v6   ;;  %5807 = vmatprep.subr.bf16.mxu0 %v5806_v8  ;;  %v300_v24 = vld [vmem:[#allocation2 + $0x78] sm:$0xff]  ;;  %v5826_v25 = vpack.c.bf16 %v298_v21, %v297_v20  ;;  %v301_v32 = vld [vmem:[%s6762_s17] sm:$0xff]  ;;  %v6066_v43 = vld [vmem:[#allocation4 + $0x8] ss:$12 sps:$4 sm:$0xff]   ;;  %s7727_s17 = sld [smem:[#allocation21_spill]]  ;;  %s7736_s18 = sld [smem:[#allocation28_spill]] }
  0xe0   :  { %v5830_v26 = vpack.c.bf16 %v300_v24, %v299_v23  ;;  %v5038_v35 = vld [vmem:[%s6767_s21] ss:$0 sm:$0xff]  ;;  %v6063_v40 = vld [vmem:[#allocation4 + $0x4] ss:$12 sps:$4 sm:$0xff]   ;;  %v6067_v44 = vld [vmem:[#allocation4 + $0x1c] ss:$12 sps:$4 sm:$0xff]  }
  0xe1   :  { %v6065_v41 = vld [vmem:[#allocation4] ss:$12 sps:$4 sm:$0xff]   ;;  %607 = vmatprep.subr.bf16.mxu1 %v6063_v40  ;;  %v6069_v53 = vld [vmem:[#allocation4 + $0x18] ss:$12 sps:$4 sm:$0xff]   ;;  %v6073_v56 = vld [vmem:[#allocation4 + $0x30] ss:$12 sps:$4 sm:$0xff]  }
  0xe2   :  { %5809 = vmatpush3.bf16.msra.mxu0 %v5806_v8  ;;  %608 = vmatpush1.bf16.msra.mxu1 %v6065_v41  ;;  %v6070_v54 = vld [vmem:[#allocation4 + $0x20] ss:$12 sps:$4 sm:$0xff]   ;;  %v6074_v57 = vld [vmem:[#allocation4 + $0x38] ss:$12 sps:$4 sm:$0xff]   ;;  %v6077_v59 = vld [vmem:[#allocation4 + $0x48] ss:$12 sps:$4 sm:$0xff]  }
  0xe3   :  { %5811 = vmatprep.subr.bf16.mxu0 %v5810_v13  ;;  %609 = vmatprep.subr.bf16.mxu1 %v6067_v44  ;;  %v6071_v55 = vld [vmem:[#allocation4 + $0x34] ss:$12 sps:$4 sm:$0xff]   ;;  %v6075_v58 = vld [vmem:[#allocation4 + $0x4c] ss:$12 sps:$4 sm:$0xff]   ;;  %v6078_v60 = vld [vmem:[#allocation4 + $0x50] ss:$12 sps:$4 sm:$0xff]  }
  0xe4   :  { %v6079_v61 = vld [vmem:[#allocation4 + $0x64] ss:$12 sps:$4 sm:$0xff]   ;;  %v6081_v62 = vld [vmem:[#allocation4 + $0x60] ss:$12 sps:$4 sm:$0xff]   ;;  %v6082_v63 = vld [vmem:[#allocation4 + $0x68] ss:$12 sps:$4 sm:$0xff]  }
  0xe5   :  { %v6083_v1 = vld [vmem:[#allocation4 + $0x7c] ss:$12 sps:$4 sm:$0xff]   ;;  %v6085_v2 = vld [vmem:[#allocation4 + $0x78] ss:$12 sps:$4 sm:$0xff]   ;;  %v6086_v3 = vld [vmem:[#allocation4 + $0x80] ss:$12 sps:$4 sm:$0xff]  }
  0xe6   :  { %5813 = vmatpush3.bf16.msra.mxu0 %v5810_v13  ;;  %610 = vmatpush1.bf16.msra.mxu1 %v6069_v53  ;;  %v6087_v4 = vld [vmem:[#allocation4 + $0x94] ss:$12 sps:$4 sm:$0xff]   ;;  %v6089_v5 = vld [vmem:[#allocation4 + $0x90] ss:$12 sps:$4 sm:$0xff]   ;;  %v6090_v6 = vld [vmem:[#allocation4 + $0x98] ss:$12 sps:$4 sm:$0xff]  }
  0xe7   :  { %5815 = vmatprep.subr.bf16.mxu0 %v5814_v16  ;;  %611 = vmatprep.subr.bf16.mxu1 %v6071_v55  ;;  %v6091_v7 = vld [vmem:[#allocation4 + $0xac] ss:$12 sps:$4 sm:$0xff]   ;;  %v6093_v8 = vld [vmem:[#allocation4 + $0xa8] ss:$12 sps:$4 sm:$0xff]   ;;  %v6094_v9 = vld [vmem:[#allocation4 + $0xb0] ss:$12 sps:$4 sm:$0xff]  }
  0xe8   :  { %v5039_v18 = vld [vmem:[%s6772_s25] ss:$0 sm:$0xff]  ;;  %vm7050_vm4 = vmpackc.low %vm691_vm3, %vm691_vm3  ;;  %s6738_s21 = smov 32   ;;  %s7730_s25 = sld [smem:[#allocation23_spill]] }
  0xe9   :  { %s7737_s22 = sld [smem:[#allocation29_spill]]  ;;  %s7738_s23 = sld [smem:[#allocation31_spill]] }
  0xea   :  { %5817 = vmatpush3.bf16.msra.mxu0 %v5814_v16  ;;  %612 = vmatpush1.bf16.msra.mxu1 %v6073_v56  ;;  %s7740_s26 = sld [smem:[#allocation33_spill]]  ;;  %s7741_s28 = sld [smem:[#allocation34_spill]] }
  0xeb   :  { %5819 = vmatprep.subr.bf16.mxu0 %v5818_v19  ;;  %613 = vmatprep.subr.bf16.mxu1 %v6075_v58  ;;  %s7742_s1 = sld [smem:[#allocation35_spill]]  ;;  %s7743_s13 = sld [smem:[#allocation36_spill]] }
  0xec   :  { %s7744_s2 = sld [smem:[#allocation37_spill]]  ;;  %s7745_s14 = sld [smem:[#allocation38_spill]] }
  0xee   :  { %5821 = vmatpush3.bf16.msra.mxu0 %v5818_v19  ;;  %614 = vmatpush1.bf16.msra.mxu1 %v6077_v59 }
  0xef   :  { %5823 = vmatprep.subr.bf16.mxu0 %v5822_v22  ;;  %615 = vmatprep.subr.bf16.mxu1 %v6079_v61 }
  0xf2   :  { %5825 = vmatpush3.bf16.msra.mxu0 %v5822_v22  ;;  %616 = vmatpush1.bf16.msra.mxu1 %v6081_v62  ;;  %v5040_v22 = vld [vmem:[%s6777_s29] ss:$0 sm:$0xff]  ;;  %s7731_s29 = sld [smem:[#allocation24_spill]] }
  0xf3   :  { %5827 = vmatprep.subr.bf16.mxu0 %v5826_v25  ;;  %617 = vmatprep.subr.bf16.mxu1 %v6083_v1 }
  0xf6   :  { %5829 = vmatpush3.bf16.msra.mxu0 %v5826_v25  ;;  %618 = vmatpush1.bf16.msra.mxu1 %v6085_v2 }
  0xf7   :  { %5831 = vmatprep.subr.bf16.mxu0 %v5830_v26  ;;  %619 = vmatprep.subr.bf16.mxu1 %v6087_v4 }
  0xfa   :  { %5833 = vmatpush3.bf16.msra.mxu0 %v5830_v26  ;;  %620 = vmatpush1.bf16.msra.mxu1 %v6089_v5 }
  0xfb   :  { %5570 = vmatprep.subr.bf16.mxu0 %v6735_v42  ;;  %621 = vmatprep.subr.bf16.mxu1 %v6091_v7 }
  0xfe   :  { %622 = vmatpush1.bf16.msra.mxu1 %v6093_v8 }
 0x15a   :  { %v275_v29 = vpop.permute.xlu0 %274 }
 0x15b   :  { %vm279_vm0 = vcmp.eq.s32.totalorder %v275_v29, %v272_v28 }
 0x15c   :  { %5567 = vmatprep.mubr.msk.f32.mxu0 %vm279_vm0, %v6734_v30 }
 0x15e   :  { %v278_v31 = vpop.permute.xlu0 %277 }
 0x15f   :  { %vm280_vm1 = vcmp.eq.s32.totalorder %v278_v31, %v272_v28  ;;  %v7027_v28 = vshrl.u32 %v271_v27, 7 }
 0x160   :  { %5568 = vmatmul.mubr.msk.f32.vlgmr.msra.gmra.mrb[0].mxu0 %vm280_vm1, %v6734_v30  ;;  %v462_v30 = vld [vmem:[%s7726_s5] sm:$0x7] }
 0x161   :  { %5571 = vmatpush3.bf16.msra.mxu0 %v6066_v43  ;;  %5586 = vmatprep.mubr.msk.bf16.mxu0 %vm6736_vm2, %v6735_v42  ;;  %v7030_v29 = vsub.s32 0, %v7027_v28  ;;  %v7034_v31 = vsub.s32 2, %v7027_v28 }
 0x162   :  { %5572 = vmatprep.subr.bf16.mxu0 %v6735_v42 }
 0x165   :  { %5573 = vmatpush3.bf16.msra.mxu0 %v6070_v54 }
 0x166   :  { %5574 = vmatprep.subr.bf16.mxu0 %v6735_v42 }
 0x169   :  { %5575 = vmatpush3.bf16.msra.mxu0 %v6074_v57  ;;  %v7067_v57 = vld [vmem:[%s7727_s17] sm:$0xff] }
 0x16a   :  { %5576 = vmatprep.subr.bf16.mxu0 %v6735_v42 }
 0x16d   :  { %5577 = vmatpush3.bf16.msra.mxu0 %v6078_v60  ;;  %v7070_v60 = vld [vmem:[%s7727_s17 + $0x8] sm:$0xff] }
 0x16e   :  { %5578 = vmatprep.subr.bf16.mxu0 %v6735_v42 }
 0x171   :  { %5579 = vmatpush3.bf16.msra.mxu0 %v6082_v63 }
 0x172   :  { %5580 = vmatprep.subr.bf16.mxu0 %v6735_v42 }
 0x175   :  { %5581 = vmatpush3.bf16.msra.mxu0 %v6086_v3 }
 0x176   :  { %5582 = vmatprep.subr.bf16.mxu0 %v6735_v42 }
 0x179   :  { %5583 = vmatpush3.bf16.msra.mxu0 %v6090_v6 }
 0x17a   :  { %5584 = vmatprep.subr.bf16.mxu0 %v6735_v42 }
 0x17d   :  { %5585 = vmatpush3.bf16.msra.mxu0 %v6094_v9 }
 0x17e   :  { %5646 = vmatprep.subr.bf16.mxu0 %v6735_v42 }
 0x233   :  { %v5569_v33 = vpop.f32.mrb[0].mxu0 }
 0x234   :  { %v368_v34 = vpop.f32.mrb[1].mxu0  ;;  %v374_v37 = vadd.f32 %v5569_v33, %v301_v32  ;;  %v467_v33 = vrot.slane %v462_v30, %v7030_v29 }
 0x235   :  { %v369_v36 = vadd.f32 %v368_v34, %v301_v32  ;;  %v7037_v32 = vsub.s32 1, %v7027_v28  ;;  %v475_v34 = vrot.slane %v462_v30, %v7034_v31 }
 0x236   :  { %v385_v39 = vadd.f32 %v5038_v35, %v374_v37 }
 0x237   :  { %v384_v38 = vadd.f32 %v5038_v35, %v369_v36  ;;  %v471_v37 = vrot.slane %v462_v30, %v7037_v32 }
 0x239   :  { %388 = vadd.xlane.f32.xlu1 %v384_v38 }
 0x23d   :  { %390 = vadd.xlane.f32.xlu1 %v385_v39 }
 0x2c6   :  { %v389_v45 = vpop.xlane.xlu1 %388 }
 0x2c7   :  { %v393_v46 = vmul.f32 0.0078125, %v389_v45 }
 0x2c9   :  { %v6997_v47 = vsub.f32 %v384_v38, %v393_v46 }
 0x2ca   :  { %v391_v48 = vpop.xlane.xlu1 %390 }
 0x2cb   :  { %v394_v49 = vmul.f32 0.0078125, %v391_v48  ;;  %v397_v50 = vmul.f32 %v6997_v47, %v6997_v47 }
 0x2cd   :  { %v7001_v51 = vsub.f32 %v385_v39, %v394_v49  ;;  %399 = vadd.xlane.f32.xlu0 %v397_v50 }
 0x2cf   :  { %v398_v52 = vmul.f32 %v7001_v51, %v7001_v51 }
 0x2d1   :  { %401 = vadd.xlane.f32.xlu1 %v398_v52 }
 0x35a   :  { %v400_v10 = vpop.xlane.xlu0 %399 }
 0x35b   :  { %v403_v11 = vmul.f32 0.0078125, %v400_v10 }
 0x35d   :  { %v405_v12 = vadd.f32 1e-12, %v403_v11 }
 0x35e   :  { %v402_v13 = vpop.xlane.xlu1 %401 }
 0x35f   :  { %6319 = vrsqrt.f32 %v405_v12  ;;  %v404_v14 = vmul.f32 0.0078125, %v402_v13 }
 0x361   :  { %v406_v15 = vadd.f32 1e-12, %v404_v14 }
 0x363   :  { %6321 = vrsqrt.f32 %v406_v15 }
 0x369   :  { %v6320_v16 = vpop.eup %6319 }
 0x36a   :  { %v409_v17 = vmul.f32 %v6320_v16, %v6997_v47 }
 0x36c   :  { %v417_v21 = vmul.f32 %v5039_v18, %v409_v17 }
 0x36d   :  { %v6322_v19 = vpop.eup %6321 }
 0x36e   :  { %v410_v20 = vmul.f32 %v6322_v19, %v7001_v51  ;;  %v7018_v24 = vadd.f32 %v5040_v22, %v417_v21 }
 0x370   :  { %v418_v23 = vmul.f32 %v5039_v18, %v410_v20 }
 0x372   :  { %v7020_v25 = vadd.f32 %v5040_v22, %v418_v23 }
 0x374   :  { %v429_v26 = vpack.c.bf16 %v7020_v25, %v7018_v24 }
 0x376   :  { %640 = vmatmul.mubr.bf16.vlgmr.msra.gmra.mrb[0].mxu1 %v429_v26  ;;  %5587 = vmatmul.mubr.bf16.vlgmr.msra.gmra.mrb[4].mxu0 %v429_v26 }
 0x377   :  { %5662 = vmatprep.mubr.msk.bf16.mxu0 %vm6736_vm2, %v6735_v42 }
 0x449   :  { %v641_v35 = vpop.f32.mrb[0].mxu1  ;;  %v684_v36 = vpop.f32.mrb[4].mxu0 }
 0x44a   :  { %v7042_v27 = vadd.f32 %v641_v35, %v467_v33  ;;  %v643_v38 = vpop.f32.mrb[1].mxu1  ;;  %v5588_v39 = vpop.f32.mrb[5].mxu0  ;;  %v685_v43 = vadd.f32 %v684_v36, %v475_v34 }
 0x44b   :  { %v645_v40 = vpop.f32.mrb[2].mxu1  ;;  %v687_v41 = vpop.f32.mrb[6].mxu0  ;;  %v644_v47 = vadd.f32 %v643_v38, %v471_v37 }
 0x44c   :  { %v688_v44 = vadd.f32 %v687_v41, %v475_v34  ;;  %v647_v45 = vpop.f32.mrb[3].mxu1  ;;  %v5589_v46 = vpop.f32.mrb[7].mxu0  ;;  %887 = vrot.lane.b32.xlu0 %v7042_v27, %s6737_s9  ;;  %5594 = vmatprep.mubr.msk.f32.mxu1 %vm691_vm3, %v7042_v27  ;;  %v7062_v54 = vadd.f32 %v645_v40, %v467_v33 }
 0x44d   :  { %v648_v48 = vadd.f32 %v647_v45, %v471_v37 }
 0x44e   :  { %v5840_v50 = vpack.c.bf16 %v688_v44, %v685_v43  ;;  %v7054_v51 = vpack.i.bf16 %v688_v44, %v685_v43 }
 0x44f   :  { %v5834_v52 = vpack.c.bf16 %v648_v48, %v644_v47  ;;  %v7056_v53 = vpack.i.bf16 %v648_v48, %v644_v47 }
 0x451   :  { %5836 = vmatprep.subr.msk.bf16.mxu1 %vm7050_vm4, %v5834_v52 }
 0x452   :  { %5839 = vmatpush3.bf16.xpose.msk.msra.mxu1 %vm7050_vm4, %v5834_v52 }
 0x453   :  { %5841 = vmatprep.subr.bf16.mxu1 %v5840_v50 }
 0x459   :  { %5595 = vmatmul.mubr.msk.f32.vlgmr.msra.gmra.mrb[4].mxu1 %vm691_vm3, %v7062_v54 }
 0x45a   :  { %5843 = vmatpush3.bf16.msra.mxu1 %v5840_v50 }
 0x4be   :  { %v888_v22 = vpop.permute.xlu0 %887 }
 0x52c   :  { %v5596_v55 = vpop.f32.mrb[4].mxu1 }
 0x52d   :  { %v770_v56 = vpop.f32.mrb[5].mxu1  ;;  %v780_v58 = vmul.f32 0.17677669, %v5596_v55 }
 0x52e   :  { %v779_v59 = vmul.f32 0.17677669, %v770_v56 }
 0x52f   :  { %v782_v63 = vadd.f32 %v780_v58, %v7070_v60 }
 0x530   :  { %v781_v61 = vadd.f32 %v779_v59, %v7067_v57 }
 0x531   :  { %v787_v1 = vsel %vm783_vm5, %v782_v63, -inf }
 0x532   :  { %v784_v62 = vsel %vm783_vm5, %v781_v61, -inf }
 0x533   :  { %785 = vmax.xlane.f32.xlu1 %v784_v62 }
 0x537   :  { %788 = vmax.xlane.f32.xlu1 %v787_v1 }
 0x548   :  { %5974 = vrot.lane.b32.xlu1 %v7056_v53, %s6737_s9 }
 0x5c0   :  { %v786_v2 = vpop.xlane.xlu1 %785 }
 0x5c1   :  { %v790_v3 = vsub.f32 %v781_v61, %v786_v2 }
 0x5c3   :  { %v792_v6 = vmul.f32 1.442695, %v790_v3 }
 0x5c4   :  { %v789_v4 = vpop.xlane.xlu1 %788 }
 0x5c5   :  { %v791_v5 = vsub.f32 %v782_v63, %v789_v4 }
 0x5c7   :  { %v794_v7 = vmul.f32 1.442695, %v791_v5 }
 0x5c8   :  { %v5975_v8 = vpop.permute.xlu1 %5974 }
 0x5c9   :  { %6323 = vpow2.f32 %v794_v7  ;;  %v5977_v9 = vunpack.i.h.bf16 %v5975_v8  ;;  %v5976_v10 = vunpack.i.l.bf16 %v5975_v8 }
 0x5ca   :  { %6325 = vpow2.f32 %v792_v6 }
 0x5cb   :  { %v5844_v11 = vpack.c.bf16 %v5977_v9, %v5976_v10 }
 0x5cd   :  { %5846 = vmatprep.subr.msk.bf16.mxu1 %vm7050_vm4, %v5844_v11 }
 0x5d3   :  { %v6324_v12 = vpop.eup %6323 }
 0x5d4   :  { %v799_v13 = vsel %vm783_vm5, %v6324_v12, 0.0  ;;  %v6326_v14 = vpop.eup %6325 }
 0x5d5   :  { %800 = vadd.xlane.f32.xlu1 %v799_v13  ;;  %v796_v15 = vsel %vm783_vm5, %v6326_v14, 0.0 }
 0x5d9   :  { %797 = vadd.xlane.f32.xlu1 %v796_v15 }
 0x5ea   :  { %889 = vrot.lane.b32.xlu1 %v7062_v54, %s6737_s9 }
 0x662   :  { %v801_v16 = vpop.xlane.xlu1 %800 }
 0x663   :  { %6327 = vrcp.f32 %v801_v16 }
 0x666   :  { %v798_v17 = vpop.xlane.xlu1 %797 }
 0x667   :  { %6329 = vrcp.f32 %v798_v17 }
 0x66a   :  { %v890_v23 = vpop.permute.xlu1 %889 }
 0x66d   :  { %v6328_v18 = vpop.eup %6327 }
 0x66e   :  { %v805_v21 = vmul.f32 %v6328_v18, %v6324_v12 }
 0x671   :  { %v6330_v19 = vpop.eup %6329 }
 0x672   :  { %v803_v20 = vmul.f32 %v6330_v19, %v6326_v14 }
 0x674   :  { %5601 = vmatprep.mubr.msk.f32.mxu1 %vm783_vm5, %v803_v20 }
 0x675   :  { %5602 = vmatmul.mubr.msk.f32.vlgmr.msra.gmra.mrb[6].mxu1 %vm783_vm5, %v805_v21 }
 0x676   :  { %5849 = vmatpush3.bf16.xpose.msk.msra.mxu1 %vm7050_vm4, %v5844_v11  ;;  %5608 = vmatprep.mubr.msk.f32.mxu1 %vm691_vm3, %v888_v22 }
 0x67d   :  { %5609 = vmatmul.mubr.msk.f32.vlgmr.msra.gmra.mrb[8].mxu1 %vm691_vm3, %v890_v23 }
 0x748   :  { %v7090_v26 = vpop.f32.mrb[6].mxu1 }
 0x749   :  { %v7092_v30 = vpop.f32.mrb[7].mxu1 }
 0x750   :  { %v5610_v33 = vpop.f32.mrb[8].mxu1 }
 0x751   :  { %v979_v34 = vmul.f32 0.17677669, %v5610_v33  ;;  %v969_v35 = vpop.f32.mrb[9].mxu1 }
 0x752   :  { %v978_v36 = vmul.f32 0.17677669, %v969_v35 }
 0x753   :  { %v981_v37 = vadd.f32 %v979_v34, %v7070_v60 }
 0x754   :  { %v980_v38 = vadd.f32 %v978_v36, %v7067_v57 }
 0x755   :  { %v985_v39 = vsel %vm783_vm5, %v981_v37, -inf }
 0x756   :  { %986 = vmax.xlane.f32.xlu0 %v985_v39  ;;  %v982_v40 = vsel %vm783_vm5, %v980_v38, -inf }
 0x757   :  { %983 = vmax.xlane.f32.xlu1 %v982_v40 }
 0x768   :  { %5984 = vrot.lane.b32.xlu1 %v7056_v53, %s6724_s6 }
 0x76c   :  { %5979 = vrot.lane.b32.xlu0 %v7054_v51, %s6737_s9 }
 0x770   :  { %1095 = vrot.lane.b32.xlu0 %v7062_v54, %s6724_s6 }
 0x7e3   :  { %v987_v41 = vpop.xlane.xlu0 %986 }
 0x7e4   :  { %v989_v43 = vsub.f32 %v981_v37, %v987_v41  ;;  %v984_v44 = vpop.xlane.xlu1 %983 }
 0x7e5   :  { %v988_v45 = vsub.f32 %v980_v38, %v984_v44 }
 0x7e6   :  { %v992_v46 = vmul.f32 1.442695, %v989_v43 }
 0x7e7   :  { %v990_v47 = vmul.f32 1.442695, %v988_v45  ;;  %v5980_v48 = vpop.permute.xlu0 %5979 }
 0x7e8   :  { %6331 = vpow2.f32 %v992_v46  ;;  %v5982_v50 = vunpack.i.h.bf16 %v5980_v48  ;;  %v5981_v52 = vunpack.i.l.bf16 %v5980_v48  ;;  %v5985_v55 = vpop.permute.xlu1 %5984 }
 0x7e9   :  { %v5987_v56 = vunpack.i.h.bf16 %v5985_v55  ;;  %v5986_v58 = vunpack.i.l.bf16 %v5985_v55  ;;  %6333 = vpow2.f32 %v990_v47 }
 0x7ea   :  { %v5850_v59 = vpack.c.bf16 %v5982_v50, %v5981_v52 }
 0x7eb   :  { %v5854_v61 = vpack.c.bf16 %v5987_v56, %v5986_v58  ;;  %v1096_v10 = vpop.permute.xlu0 %1095 }
 0x7ec   :  { %5851 = vmatprep.subr.bf16.mxu1 %v5850_v59 }
 0x7ed   :  { %5853 = vmatpush3.bf16.msra.mxu1 %v5850_v59 }
 0x7ee   :  { %5856 = vmatprep.subr.msk.bf16.mxu1 %vm7050_vm4, %v5854_v61 }
 0x7f2   :  { %v6332_v62 = vpop.eup %6331 }
 0x7f3   :  { %v997_v63 = vsel %vm783_vm5, %v6332_v62, 0.0  ;;  %v6334_v1 = vpop.eup %6333 }
 0x7f4   :  { %998 = vadd.xlane.f32.xlu1 %v997_v63  ;;  %v994_v2 = vsel %vm783_vm5, %v6334_v1, 0.0 }
 0x7f8   :  { %995 = vadd.xlane.f32.xlu1 %v994_v2 }
 0x809   :  { %1093 = vrot.lane.b32.xlu1 %v7042_v27, %s6724_s6 }
 0x881   :  { %v999_v3 = vpop.xlane.xlu1 %998 }
 0x882   :  { %6335 = vrcp.f32 %v999_v3 }
 0x885   :  { %v996_v4 = vpop.xlane.xlu1 %995 }
 0x886   :  { %6337 = vrcp.f32 %v996_v4 }
 0x889   :  { %v1094_v9 = vpop.permute.xlu1 %1093 }
 0x88c   :  { %v6336_v5 = vpop.eup %6335 }
 0x88d   :  { %v1003_v8 = vmul.f32 %v6336_v5, %v6332_v62 }
 0x890   :  { %v6338_v6 = vpop.eup %6337 }
 0x891   :  { %v1001_v7 = vmul.f32 %v6338_v6, %v6334_v1 }
 0x893   :  { %5615 = vmatprep.mubr.msk.f32.mxu1 %vm783_vm5, %v1001_v7 }
 0x894   :  { %5616 = vmatmul.mubr.msk.f32.vlgmr.msra.gmra.mrb[10].mxu1 %vm783_vm5, %v1003_v8 }
 0x895   :  { %5859 = vmatpush3.bf16.xpose.msk.msra.mxu1 %vm7050_vm4, %v5854_v61  ;;  %5622 = vmatprep.mubr.msk.f32.mxu1 %vm691_vm3, %v1094_v9 }
 0x89c   :  { %5623 = vmatmul.mubr.msk.f32.vlgmr.msra.gmra.mrb[12].mxu1 %vm691_vm3, %v1096_v10 }
 0x967   :  { %v7116_v11 = vpop.f32.mrb[10].mxu1 }
 0x968   :  { %v7118_v12 = vpop.f32.mrb[11].mxu1 }
 0x969   :  { %v6003_v13 = vpack.i.bf16 %v7116_v11, %v7118_v12  ;;  %v6096_v12 = vld [vmem:[#allocation6 + $0x8] sm:$0xff]  }
 0x96f   :  { %v5624_v14 = vpop.f32.mrb[12].mxu1 }
 0x970   :  { %v1185_v15 = vmul.f32 0.17677669, %v5624_v14  ;;  %v1175_v16 = vpop.f32.mrb[13].mxu1 }
 0x971   :  { %v1184_v17 = vmul.f32 0.17677669, %v1175_v16 }
 0x972   :  { %v1187_v18 = vadd.f32 %v1185_v15, %v7070_v60 }
 0x973   :  { %v1186_v19 = vadd.f32 %v1184_v17, %v7067_v57 }
 0x974   :  { %v1191_v20 = vsel %vm783_vm5, %v1187_v18, -inf }
 0x975   :  { %1192 = vmax.xlane.f32.xlu0 %v1191_v20  ;;  %v1188_v21 = vsel %vm783_vm5, %v1186_v19, -inf }
 0x976   :  { %1189 = vmax.xlane.f32.xlu1 %v1188_v21 }
 0xa02   :  { %v1193_v22 = vpop.xlane.xlu0 %1192 }
 0xa03   :  { %v1195_v23 = vsub.f32 %v1187_v18, %v1193_v22  ;;  %v1190_v33 = vpop.xlane.xlu1 %1189 }
 0xa04   :  { %v1194_v34 = vsub.f32 %v1186_v19, %v1190_v33 }
 0xa05   :  { %v1198_v35 = vmul.f32 1.442695, %v1195_v23 }
 0xa06   :  { %v1196_v36 = vmul.f32 1.442695, %v1194_v34 }
 0xa07   :  { %6339 = vpow2.f32 %v1198_v35 }
 0xa08   :  { %6341 = vpow2.f32 %v1196_v36 }
 0xa11   :  { %v6340_v37 = vpop.eup %6339 }
 0xa12   :  { %v6342_v38 = vpop.eup %6341  ;;  %v1203_v39 = vsel %vm783_vm5, %v6340_v37, 0.0 }
 0xa13   :  { %1204 = vadd.xlane.f32.xlu1 %v1203_v39  ;;  %v1200_v40 = vsel %vm783_vm5, %v6342_v38, 0.0  ;;  %v6099_v39 = vld [vmem:[#allocation6 + $0x20] sm:$0xff]  }
 0xa14   :  { %1201 = vadd.xlane.f32.xlu0 %v1200_v40  ;;  %v6100_v40 = vld [vmem:[#allocation6 + $0x28] sm:$0xff]  }
 0xa24   :  { %5994 = vrot.lane.b32.xlu1 %v7056_v53, %s6738_s21 }
 0xa28   :  { %1297 = vrot.lane.b32.xlu1 %v7042_v27, %s6738_s21 }
 0xa2a   :  { %5989 = vrot.lane.b32.xlu0 %v7054_v51, %s6724_s6 }
 0xa2e   :  { %1299 = vrot.lane.b32.xlu0 %v7062_v54, %s6738_s21 }
 0xaa0   :  { %v1205_v41 = vpop.xlane.xlu1 %1204 }
 0xaa1   :  { %6343 = vrcp.f32 %v1205_v41  ;;  %v1202_v43 = vpop.xlane.xlu0 %1201  ;;  %v6101_v41 = vld [vmem:[#allocation6 + $0x30] sm:$0xff]  }
 0xaa2   :  { %6345 = vrcp.f32 %v1202_v43  ;;  %v6102_v43 = vld [vmem:[#allocation6 + $0x38] sm:$0xff]  }
 0xaa4   :  { %v5995_v44 = vpop.permute.xlu1 %5994 }
 0xaa5   :  { %v5990_v45 = vpop.permute.xlu0 %5989  ;;  %v5997_v46 = vunpack.i.h.bf16 %v5995_v44  ;;  %v5996_v47 = vunpack.i.l.bf16 %v5995_v44 }
 0xaa6   :  { %v5992_v48 = vunpack.i.h.bf16 %v5990_v45  ;;  %v5991_v50 = vunpack.i.l.bf16 %v5990_v45 }
 0xaa7   :  { %v5864_v52 = vpack.c.bf16 %v5997_v46, %v5996_v47 }
 0xaa8   :  { %v5860_v53 = vpack.c.bf16 %v5992_v48, %v5991_v50  ;;  %v1298_v58 = vpop.permute.xlu1 %1297 }
 0xaa9   :  { %v1300_v59 = vpop.permute.xlu0 %1299 }
 0xaaa   :  { %5861 = vmatprep.subr.bf16.mxu1 %v5860_v53 }
 0xaab   :  { %v6344_v27 = vpop.eup %6343  ;;  %5863 = vmatpush3.bf16.msra.mxu1 %v5860_v53 }
 0xaac   :  { %v6346_v55 = vpop.eup %6345  ;;  %5866 = vmatprep.subr.msk.bf16.mxu1 %vm7050_vm4, %v5864_v52  ;;  %v1209_v56 = vmul.f32 %v6344_v27, %v6340_v37 }
 0xaad   :  { %v1207_v54 = vmul.f32 %v6346_v55, %v6342_v38  ;;  %v6098_v38 = vld [vmem:[#allocation6 + $0x18] sm:$0xff]  }
 0xaaf   :  { %5629 = vmatprep.mubr.msk.f32.mxu1 %vm783_vm5, %v1207_v54 }
 0xab0   :  { %5630 = vmatmul.mubr.msk.f32.vlgmr.msra.gmra.mrb[14].mxu1 %vm783_vm5, %v1209_v56 }
 0xab1   :  { %5636 = vmatprep.mubr.msk.f32.mxu1 %vm691_vm3, %v1298_v58 }
 0xab4   :  { %5869 = vmatpush3.bf16.xpose.msk.msra.mxu1 %vm7050_vm4, %v5864_v52 }
 0xabb   :  { %5637 = vmatmul.mubr.msk.f32.vlgmr.msra.gmra.mrb[16].mxu1 %vm691_vm3, %v1300_v59 }
 0xb83   :  { %v5631_v61 = vpop.f32.mrb[14].mxu1 }
 0xb84   :  { %v1288_v62 = vpop.f32.mrb[15].mxu1 }
 0xb85   :  { %v6008_v63 = vpack.i.bf16 %v5631_v61, %v1288_v62 }
 0xb8e   :  { %v5638_v1 = vpop.f32.mrb[16].mxu1 }
 0xb8f   :  { %v1389_v2 = vmul.f32 0.17677669, %v5638_v1  ;;  %v1379_v3 = vpop.f32.mrb[17].mxu1 }
 0xb90   :  { %v1388_v4 = vmul.f32 0.17677669, %v1379_v3  ;;  %v5089_v3 = vld [vmem:[%s7730_s25] ss:$0 sm:$0xff] }
 0xb91   :  { %v1391_v5 = vadd.f32 %v1389_v2, %v7070_v60 }
 0xb92   :  { %v1390_v6 = vadd.f32 %v1388_v4, %v7067_v57 }
 0xb93   :  { %v1395_v7 = vsel %vm783_vm5, %v1391_v5, -inf }
 0xb94   :  { %1396 = vmax.xlane.f32.xlu0 %v1395_v7  ;;  %v1392_v8 = vsel %vm783_vm5, %v1390_v6, -inf }
 0xb95   :  { %1393 = vmax.xlane.f32.xlu1 %v1392_v8 }
 0xc21   :  { %v1397_v9 = vpop.xlane.xlu0 %1396 }
 0xc22   :  { %v1399_v10 = vsub.f32 %v1391_v5, %v1397_v9  ;;  %v1394_v14 = vpop.xlane.xlu1 %1393 }
 0xc23   :  { %v1398_v15 = vsub.f32 %v1390_v6, %v1394_v14  ;;  %v6105_v14 = vld [vmem:[#allocation7 + $0x4] ss:$16 sps:$4 sm:$0xff]  }
 0xc24   :  { %v1402_v16 = vmul.f32 1.442695, %v1399_v10  ;;  %v6103_v10 = vld [vmem:[#allocation7] ss:$16 sps:$4 sm:$0xff]  }
 0xc25   :  { %v1400_v17 = vmul.f32 1.442695, %v1398_v15  ;;  %v6106_v15 = vld [vmem:[#allocation7 + $0x8] ss:$16 sps:$4 sm:$0xff]  }
 0xc26   :  { %6347 = vpow2.f32 %v1402_v16  ;;  %v6108_v16 = vld [vmem:[#allocation7 + $0xc] ss:$16 sps:$4 sm:$0xff]  }
 0xc27   :  { %6349 = vpow2.f32 %v1400_v17  ;;  %v6111_v17 = vld [vmem:[#allocation7 + $0x24] ss:$16 sps:$4 sm:$0xff]  }
 0xc30   :  { %v6348_v18 = vpop.eup %6347 }
 0xc31   :  { %v6350_v19 = vpop.eup %6349  ;;  %v1407_v60 = vsel %vm783_vm5, %v6348_v18, 0.0 }
 0xc32   :  { %1408 = vadd.xlane.f32.xlu1 %v1407_v60  ;;  %v1404_v57 = vsel %vm783_vm5, %v6350_v19, 0.0  ;;  %v6112_v60 = vld [vmem:[#allocation7 + $0x28] ss:$16 sps:$4 sm:$0xff]  }
 0xc33   :  { %1405 = vadd.xlane.f32.xlu0 %v1404_v57 }
 0xc43   :  { %6004 = vrot.lane.b32.xlu1 %v6003_v13, %s6738_s21  ;;  %v6097_v13 = vld [vmem:[#allocation6 + $0x10] sm:$0xff]  }
 0xc47   :  { %6009 = vrot.lane.b32.xlu1 %v6008_v63, %s6724_s6 }
 0xc49   :  { %5999 = vrot.lane.b32.xlu0 %v7054_v51, %s6738_s21  ;;  %v6095_v51 = vld [vmem:[#allocation6] sm:$0xff]  }
 0xc4a   :  { %5647 = vmatpush3.bf16.msra.mxu0 %v6095_v51  ;;  %v6126_v51 = vld [vmem:[#allocation7 + $0x6c] ss:$16 sps:$4 sm:$0xff]  }
 0xc4b   :  { %5648 = vmatprep.subr.bf16.mxu0 %v6735_v42 }
 0xc4e   :  { %5649 = vmatpush3.bf16.msra.mxu0 %v6096_v12  ;;  %v6121_v12 = vld [vmem:[#allocation7 + $0x60] ss:$16 sps:$4 sm:$0xff]  }
 0xc4f   :  { %5650 = vmatprep.subr.bf16.mxu0 %v6735_v42 }
 0xc52   :  { %5651 = vmatpush3.bf16.msra.mxu0 %v6097_v13  ;;  %v6124_v13 = vld [vmem:[#allocation7 + $0x68] ss:$16 sps:$4 sm:$0xff]  }
 0xc53   :  { %5652 = vmatprep.subr.bf16.mxu0 %v6735_v42 }
 0xc56   :  { %5653 = vmatpush3.bf16.msra.mxu0 %v6098_v38  ;;  %v6129_v38 = vld [vmem:[#allocation7 + $0x84] ss:$16 sps:$4 sm:$0xff]  }
 0xc57   :  { %5654 = vmatprep.subr.bf16.mxu0 %v6735_v42 }
 0xc5a   :  { %5655 = vmatpush3.bf16.msra.mxu0 %v6099_v39  ;;  %v6132_v39 = vld [vmem:[#allocation7 + $0x8c] ss:$16 sps:$4 sm:$0xff]  }
 0xc5b   :  { %5656 = vmatprep.subr.bf16.mxu0 %v6735_v42 }
 0xc5e   :  { %5657 = vmatpush3.bf16.msra.mxu0 %v6100_v40  ;;  %v6127_v40 = vld [vmem:[#allocation7 + $0x80] ss:$16 sps:$4 sm:$0xff]  }
 0xc5f   :  { %5658 = vmatprep.subr.bf16.mxu0 %v6735_v42 }
 0xc62   :  { %5659 = vmatpush3.bf16.msra.mxu0 %v6101_v41  ;;  %v6130_v41 = vld [vmem:[#allocation7 + $0x88] ss:$16 sps:$4 sm:$0xff]  }
 0xc63   :  { %5660 = vmatprep.subr.bf16.mxu0 %v6735_v42 }
 0xc66   :  { %5661 = vmatpush3.bf16.msra.mxu0 %v6102_v43  ;;  %v6135_v43 = vld [vmem:[#allocation7 + $0xa4] ss:$16 sps:$4 sm:$0xff]  }
 0xc67   :  { %1946 = vmatprep.subr.bf16.mxu0 %v6108_v16  ;;  %v6154_v16 = vld [vmem:[#allocation9 + $0x80] sm:$0xff]  }
 0xcbf   :  { %v1409_v20 = vpop.xlane.xlu1 %1408 }
 0xcc0   :  { %6351 = vrcp.f32 %v1409_v20  ;;  %v1406_v21 = vpop.xlane.xlu0 %1405 }
 0xcc1   :  { %6353 = vrcp.f32 %v1406_v21 }
 0xcc3   :  { %v6005_v47 = vpop.permute.xlu1 %6004 }
 0xcc4   :  { %v6000_v22 = vpop.permute.xlu0 %5999  ;;  %v6007_v50 = vunpack.i.h.bf16 %v6005_v47  ;;  %v6006_v53 = vunpack.i.l.bf16 %v6005_v47  ;;  %v6141_v47 = vld [vmem:[#allocation7 + $0xc4] ss:$16 sps:$4 sm:$0xff]  }
 0xcc5   :  { %v6002_v23 = vunpack.i.h.bf16 %v6000_v22  ;;  %v6001_v33 = vunpack.i.l.bf16 %v6000_v22 }
 0xcc6   :  { %v1526_v54 = vsel %vm691_vm3, %v7090_v26, %v6007_v50  ;;  %v1525_v56 = vsel %vm691_vm3, %v7092_v30, %v6006_v53  ;;  %v6139_v50 = vld [vmem:[#allocation7 + $0xc0] ss:$16 sps:$4 sm:$0xff]   ;;  %v6142_v53 = vld [vmem:[#allocation7 + $0xc8] ss:$16 sps:$4 sm:$0xff]  }
 0xcc7   :  { %v5870_v34 = vpack.c.bf16 %v6002_v23, %v6001_v33  ;;  %v6010_v48 = vpop.permute.xlu1 %6009 }
 0xcc8   :  { %v6012_v52 = vunpack.i.h.bf16 %v6010_v48  ;;  %v6011_v27 = vunpack.i.l.bf16 %v6010_v48  ;;  %v6144_v48 = vld [vmem:[#allocation7 + $0xcc] ss:$16 sps:$4 sm:$0xff]  }
 0xcc9   :  { %5871 = vmatprep.subr.bf16.mxu1 %v5870_v34 }
 0xcca   :  { %v6352_v35 = vpop.eup %6351  ;;  %5873 = vmatpush3.bf16.msra.mxu1 %v5870_v34  ;;  %v1528_v61 = vsel %vm1527_vm6, %v1525_v56, %v6011_v27  ;;  %v1529_v62 = vsel %vm1527_vm6, %v1526_v54, %v6012_v52  ;;  %v6117_v34 = vld [vmem:[#allocation7 + $0x44] ss:$16 sps:$4 sm:$0xff]   ;;  %v6145_v27 = vld [vmem:[#allocation7 + $0xe0] ss:$16 sps:$4 sm:$0xff]   ;;  %v6150_v54 = vld [vmem:[#allocation7 + $0xec] ss:$16 sps:$4 sm:$0xff]  }
 0xccb   :  { %v6354_v36 = vpop.eup %6353  ;;  %v1413_v11 = vmul.f32 %v6352_v35, %v6348_v18  ;;  %1903 = vmatprep.subr.bf16.mxu1 %v6105_v14  ;;  %v6114_v18 = vld [vmem:[#allocation7 + $0x2c] ss:$16 sps:$4 sm:$0xff]   ;;  %v6147_v52 = vld [vmem:[#allocation7 + $0xe4] ss:$16 sps:$4 sm:$0xff]  }
 0xccc   :  { %v1411_v37 = vmul.f32 %v6354_v36, %v6350_v19  ;;  %v6109_v19 = vld [vmem:[#allocation7 + $0x20] ss:$16 sps:$4 sm:$0xff]   ;;  %v6120_v35 = vld [vmem:[#allocation7 + $0x4c] ss:$16 sps:$4 sm:$0xff]  }
 0xccd   :  { %v6115_v36 = vld [vmem:[#allocation7 + $0x40] ss:$16 sps:$4 sm:$0xff]  }
 0xcce   :  { %5643 = vmatprep.mubr.msk.f32.mxu1 %vm783_vm5, %v1411_v37  ;;  %v6118_v37 = vld [vmem:[#allocation7 + $0x48] ss:$16 sps:$4 sm:$0xff]   ;;  %v6152_v14 = vld [vmem:[#allocation9 + $0xc0] sm:$0xff]  }
 0xccf   :  { %5644 = vmatmul.mubr.msk.f32.vlgmr.msra.gmra.mrb[18].mxu1 %vm783_vm5, %v1413_v11  ;;  %v6123_v11 = vld [vmem:[#allocation7 + $0x64] ss:$16 sps:$4 sm:$0xff]  }
 0xcd0   :  { %1935 = vmatprep.mubr.bf16.mxu1 %v6733_v0  ;;  %1904 = vmatpush1.bf16.msra.mxu1 %v6103_v10  ;;  %v6151_v10 = vld [vmem:[#allocation9 + $0x40] sm:$0xff]  }
 0xcd1   :  { %1905 = vmatprep.subr.bf16.mxu1 %v6111_v17  ;;  %v6155_v17 = vld [vmem:[#allocation9 + $0x48] sm:$0xff]  }
 0xcd4   :  { %1906 = vmatpush1.bf16.msra.mxu1 %v6109_v19  ;;  %v6157_v19 = vld [vmem:[#allocation9 + $0x8] sm:$0xff]  }
 0xcd5   :  { %1907 = vmatprep.subr.bf16.mxu1 %v6117_v34  ;;  %v6167_v34 = vld [vmem:[#allocation9 + $0x60] sm:$0xff]  }
 0xcd8   :  { %1908 = vmatpush1.bf16.msra.mxu1 %v6115_v36  ;;  %v6169_v36 = vld [vmem:[#allocation9 + $0x20] sm:$0xff]  }
 0xcd9   :  { %1909 = vmatprep.subr.bf16.mxu1 %v6123_v11  ;;  %v6171_v11 = vld [vmem:[#allocation9 + $0x68] sm:$0xff]  }
 0xcdc   :  { %1910 = vmatpush1.bf16.msra.mxu1 %v6121_v12  ;;  %v6173_v12 = vld [vmem:[#allocation9 + $0x28] sm:$0xff]  }
 0xcdd   :  { %1911 = vmatprep.subr.bf16.mxu1 %v6129_v38  ;;  %v6175_v38 = vld [vmem:[#allocation9 + $0x70] sm:$0xff]  }
 0xce0   :  { %1912 = vmatpush1.bf16.msra.mxu1 %v6127_v40  ;;  %v6177_v40 = vld [vmem:[#allocation9 + $0x30] sm:$0xff]  }
 0xce1   :  { %1913 = vmatprep.subr.bf16.mxu1 %v6135_v43  ;;  %v6179_v43 = vld [vmem:[#allocation9 + $0x78] sm:$0xff]  }
 0xda2   :  { %v5645_v44 = vpop.f32.mrb[18].mxu1 }
 0xda3   :  { %v1492_v45 = vpop.f32.mrb[19].mxu1 }
 0xda4   :  { %v6013_v46 = vpack.i.bf16 %v5645_v44, %v1492_v45  ;;  %v6138_v44 = vld [vmem:[#allocation7 + $0xac] ss:$16 sps:$4 sm:$0xff]   ;;  %v6133_v45 = vld [vmem:[#allocation7 + $0xa0] ss:$16 sps:$4 sm:$0xff]  }
 0xda5   :  { %1914 = vmatpush1.bf16.msra.mxu1 %v6133_v45  ;;  %v6181_v45 = vld [vmem:[#allocation9 + $0x38] sm:$0xff]  }
 0xda6   :  { %6014 = vrot.lane.b32.xlu0 %v6013_v46, %s6737_s9  ;;  %v6136_v46 = vld [vmem:[#allocation7 + $0xa8] ss:$16 sps:$4 sm:$0xff]   ;;  %1915 = vmatprep.subr.bf16.mxu1 %v6141_v47  ;;  %v1721_v47 = vld [vmem:[%s7733_s15] sm:$0xf] }
 0xda9   :  { %1916 = vmatpush1.bf16.msra.mxu1 %v6139_v50  ;;  %v1726_v50 = vrot.slane %v1721_v47, %v7030_v29 }
 0xdaa   :  { %1917 = vmatprep.subr.bf16.mxu1 %v6147_v52  ;;  %v1730_v52 = vrot.slane %v1721_v47, %v7037_v32 }
 0xdad   :  { %1918 = vmatpush1.bf16.msra.mxu1 %v6145_v27 }
 0xdae   :  { %5379 = vmatprep.subr.bf16.mxu1 %v6151_v10 }
 0xe18   :  { %v6015_v55 = vpop.permute.xlu0 %6014 }
 0xe19   :  { %v6017_v58 = vunpack.i.h.bf16 %v6015_v55  ;;  %v6016_v59 = vunpack.i.l.bf16 %v6015_v55  ;;  %v6148_v55 = vld [vmem:[#allocation7 + $0xe8] ss:$16 sps:$4 sm:$0xff]  }
 0xe1b   :  { %v1531_v63 = vsel %vm1530_vm7, %v1528_v61, %v6016_v59  ;;  %v1532_v1 = vsel %vm1530_vm7, %v1529_v62, %v6017_v58 }
 0xe1c   :  { %v1533_v2 = vpack.c.bf16 %v1532_v1, %v1531_v63 }
 0xe1e   :  { %5663 = vmatmul.mubr.bf16.vlgmr.msra.gmra.mrb[8].mxu0 %v1533_v2  ;;  %v5098_v2 = vld [vmem:[%s7731_s29] ss:$0 sm:$0xff] }
 0xe1f   :  { %1978 = vmatprep.mubr.bf16.mxu0 %v6733_v0  ;;  %1947 = vmatpush1.bf16.msra.mxu0 %v6106_v15  ;;  %v6153_v15 = vld [vmem:[#allocation9] sm:$0xff]  }
 0xe20   :  { %1948 = vmatprep.subr.bf16.mxu0 %v6114_v18  ;;  %v6156_v18 = vld [vmem:[#allocation9 + $0xc8] sm:$0xff]  }
 0xe23   :  { %1949 = vmatpush1.bf16.msra.mxu0 %v6112_v60  ;;  %v6158_v60 = vld [vmem:[#allocation9 + $0x88] sm:$0xff]  }
 0xe24   :  { %1950 = vmatprep.subr.bf16.mxu0 %v6120_v35  ;;  %v6168_v35 = vld [vmem:[#allocation9 + $0xe0] sm:$0xff]  }
 0xe27   :  { %1951 = vmatpush1.bf16.msra.mxu0 %v6118_v37  ;;  %v6170_v37 = vld [vmem:[#allocation9 + $0xa0] sm:$0xff]  }
 0xe28   :  { %1952 = vmatprep.subr.bf16.mxu0 %v6126_v51  ;;  %v6172_v51 = vld [vmem:[#allocation9 + $0xe8] sm:$0xff]  }
 0xe2b   :  { %1953 = vmatpush1.bf16.msra.mxu0 %v6124_v13  ;;  %v6174_v13 = vld [vmem:[#allocation9 + $0xa8] sm:$0xff]  }
 0xe2c   :  { %1954 = vmatprep.subr.bf16.mxu0 %v6132_v39  ;;  %v6176_v39 = vld [vmem:[#allocation9 + $0xf0] sm:$0xff]  }
 0xe2f   :  { %1955 = vmatpush1.bf16.msra.mxu0 %v6130_v41  ;;  %v6178_v41 = vld [vmem:[#allocation9 + $0xb0] sm:$0xff]  }
 0xe30   :  { %1956 = vmatprep.subr.bf16.mxu0 %v6138_v44  ;;  %v6180_v44 = vld [vmem:[#allocation9 + $0xf8] sm:$0xff]  }
 0xe33   :  { %1957 = vmatpush1.bf16.msra.mxu0 %v6136_v46  ;;  %v6182_v46 = vld [vmem:[#allocation9 + $0xb8] sm:$0xff]  }
 0xe34   :  { %1958 = vmatprep.subr.bf16.mxu0 %v6144_v48  ;;  %v1737_v48 = vsub.s32 3, %v7027_v28 }
 0xe36   :  { %v1738_v27 = vrot.slane %v1721_v47, %v1737_v48 }
 0xe37   :  { %1959 = vmatpush1.bf16.msra.mxu0 %v6142_v53  ;;  %v1734_v53 = vrot.slane %v1721_v47, %v7034_v31 }
 0xe38   :  { %1960 = vmatprep.subr.bf16.mxu0 %v6150_v54 }
 0xe3b   :  { %1961 = vmatpush1.bf16.msra.mxu0 %v6148_v55 }
 0xe3c   :  { %5401 = vmatprep.subr.bf16.mxu0 %v6152_v14 }
 0xef1   :  { %v1639_v4 = vpop.f32.mrb[8].mxu0 }
 0xef2   :  { %v1640_v26 = vadd.f32 %v5089_v3, %v1639_v4  ;;  %v5664_v5 = vpop.f32.mrb[9].mxu0 }
 0xef3   :  { %v1642_v6 = vpop.f32.mrb[10].mxu0 }
 0xef4   :  { %v1643_v30 = vadd.f32 %v5089_v3, %v1642_v6  ;;  %v5665_v7 = vpop.f32.mrb[11].mxu0  ;;  %v1646_v8 = vadd.f32 %v1640_v26, %v7018_v24  ;;  %v5099_v6 = vld [vmem:[%s7732_s24] ss:$0 sm:$0xff] }
 0xef6   :  { %1650 = vadd.xlane.f32.xlu1 %v1646_v8  ;;  %v1647_v9 = vadd.f32 %v1643_v30, %v7020_v25 }
 0xef8   :  { %1652 = vadd.xlane.f32.xlu0 %v1647_v9 }
 0xf83   :  { %v1651_v24 = vpop.xlane.xlu1 %1650 }
 0xf84   :  { %v1654_v57 = vmul.f32 0.0078125, %v1651_v24  ;;  %v6159_v24 = vld [vmem:[#allocation9 + $0x50] sm:$0xff]  }
 0xf85   :  { %v1653_v25 = vpop.xlane.xlu0 %1652 }
 0xf86   :  { %v7180_v20 = vsub.f32 %v1646_v8, %v1654_v57  ;;  %v1655_v21 = vmul.f32 0.0078125, %v1653_v25  ;;  %v6160_v57 = vld [vmem:[#allocation9 + $0xd0] sm:$0xff]  }
 0xf87   :  { %v6161_v25 = vld [vmem:[#allocation9 + $0x10] sm:$0xff]  }
 0xf88   :  { %v7182_v22 = vsub.f32 %v1647_v9, %v1655_v21  ;;  %v1658_v23 = vmul.f32 %v7180_v20, %v7180_v20  ;;  %v6163_v21 = vld [vmem:[#allocation9 + $0x58] sm:$0xff]  }
 0xf8a   :  { %1660 = vadd.xlane.f32.xlu0 %v1658_v23  ;;  %v1659_v33 = vmul.f32 %v7182_v22, %v7182_v22  ;;  %v6165_v23 = vld [vmem:[#allocation9 + $0x18] sm:$0xff]  }
 0xf8c   :  { %1662 = vadd.xlane.f32.xlu1 %v1659_v33  ;;  %v6166_v33 = vld [vmem:[#allocation9 + $0x98] sm:$0xff]  }
0x1017   :  { %v1661_v56 = vpop.xlane.xlu0 %1660 }
0x1018   :  { %v1664_v58 = vmul.f32 0.0078125, %v1661_v56 }
0x1019   :  { %v1663_v59 = vpop.xlane.xlu1 %1662 }
0x101a   :  { %v1666_v61 = vadd.f32 1e-12, %v1664_v58  ;;  %v1665_v62 = vmul.f32 0.0078125, %v1663_v59 }
0x101c   :  { %6355 = vrsqrt.f32 %v1666_v61  ;;  %v1667_v63 = vadd.f32 1e-12, %v1665_v62 }
0x101e   :  { %6357 = vrsqrt.f32 %v1667_v63 }
0x1026   :  { %v6356_v1 = vpop.eup %6355 }
0x1027   :  { %v1670_v3 = vmul.f32 %v6356_v1, %v7180_v20  ;;  %v6162_v20 = vld [vmem:[#allocation9 + $0x90] sm:$0xff]  }
0x1028   :  { %v6358_v4 = vpop.eup %6357 }
0x1029   :  { %v1671_v26 = vmul.f32 %v6358_v4, %v7182_v22  ;;  %v1678_v5 = vmul.f32 %v5098_v2, %v1670_v3  ;;  %v6164_v22 = vld [vmem:[#allocation9 + $0xd8] sm:$0xff]  }
0x102b   :  { %v1679_v30 = vmul.f32 %v5098_v2, %v1671_v26  ;;  %v7192_v7 = vadd.f32 %v5099_v6, %v1678_v5 }
0x102d   :  { %v7194_v8 = vadd.f32 %v5099_v6, %v1679_v30 }
0x102f   :  { %v1688_v9 = vpack.c.bf16 %v7194_v8, %v7192_v7 }
0x1031   :  { %1936 = vmatmul.mubr.bf16.vlgmr.msra.gmra.mrb[20].mxu1 %v1688_v9  ;;  %1979 = vmatmul.mubr.bf16.vlgmr.msra.gmra.mrb[12].mxu0 %v1688_v9 }
0x1032   :  { %5380 = vmatpush3.bf16.msra.mxu1 %v6153_v15  ;;  %5402 = vmatpush3.bf16.msra.mxu0 %v6154_v16 }
0x1033   :  { %5381 = vmatprep.subr.bf16.mxu1 %v6155_v17  ;;  %5403 = vmatprep.subr.bf16.mxu0 %v6156_v18 }
0x1036   :  { %5382 = vmatpush3.bf16.msra.mxu1 %v6157_v19  ;;  %5404 = vmatpush3.bf16.msra.mxu0 %v6158_v60 }
0x1037   :  { %5383 = vmatprep.subr.bf16.mxu1 %v6159_v24  ;;  %5405 = vmatprep.subr.bf16.mxu0 %v6160_v57 }
0x103a   :  { %5384 = vmatpush3.bf16.msra.mxu1 %v6161_v25  ;;  %5406 = vmatpush3.bf16.msra.mxu0 %v6162_v20 }
0x103b   :  { %5385 = vmatprep.subr.bf16.mxu1 %v6163_v21  ;;  %5407 = vmatprep.subr.bf16.mxu0 %v6164_v22 }
0x103e   :  { %5386 = vmatpush3.bf16.msra.mxu1 %v6165_v23  ;;  %5408 = vmatpush3.bf16.msra.mxu0 %v6166_v33 }
0x103f   :  { %5387 = vmatprep.subr.bf16.mxu1 %v6167_v34  ;;  %5409 = vmatprep.subr.bf16.mxu0 %v6168_v35 }
0x1042   :  { %5388 = vmatpush3.bf16.msra.mxu1 %v6169_v36  ;;  %5410 = vmatpush3.bf16.msra.mxu0 %v6170_v37 }
0x1043   :  { %5389 = vmatprep.subr.bf16.mxu1 %v6171_v11  ;;  %5411 = vmatprep.subr.bf16.mxu0 %v6172_v51 }
0x1046   :  { %5390 = vmatpush3.bf16.msra.mxu1 %v6173_v12  ;;  %5412 = vmatpush3.bf16.msra.mxu0 %v6174_v13 }
0x1047   :  { %5391 = vmatprep.subr.bf16.mxu1 %v6175_v38  ;;  %5413 = vmatprep.subr.bf16.mxu0 %v6176_v39 }
0x104a   :  { %5392 = vmatpush3.bf16.msra.mxu1 %v6177_v40  ;;  %5414 = vmatpush3.bf16.msra.mxu0 %v6178_v41 }
0x104b   :  { %5393 = vmatprep.subr.bf16.mxu1 %v6179_v43  ;;  %5415 = vmatprep.subr.bf16.mxu0 %v6180_v44 }
0x104e   :  { %5394 = vmatpush3.bf16.msra.mxu1 %v6181_v45  ;;  %5416 = vmatpush3.bf16.msra.mxu0 %v6182_v46 }
0x104f   :  { %5666 = vmatprep.subr.bf16.mxu0 %v6735_v42 }
0x1104   :  { %v1937_v55 = vpop.f32.mrb[20].mxu1  ;;  %v1980_v54 = vpop.f32.mrb[12].mxu0 }
0x1105   :  { %v7206_v56 = vadd.f32 %v1937_v55, %v1726_v50  ;;  %v7208_v58 = vadd.f32 %v1980_v54, %v1734_v53  ;;  %v1939_v59 = vpop.f32.mrb[21].mxu1  ;;  %v1982_v61 = vpop.f32.mrb[13].mxu0 }
0x1106   :  { %v7210_v62 = vadd.f32 %v1939_v59, %v1730_v52  ;;  %v7212_v63 = vadd.f32 %v1982_v61, %v1738_v27  ;;  %v1941_v1 = vpop.f32.mrb[22].mxu1  ;;  %v1984_v2 = vpop.f32.mrb[14].mxu0 }
0x1107   :  { %v7215_v3 = vmul.f32 0.70710677, %v7206_v56  ;;  %v7218_v4 = vmul.f32 0.70710677, %v7208_v58  ;;  %v1943_v60 = vpop.f32.mrb[23].mxu1  ;;  %v1986_v24 = vpop.f32.mrb[15].mxu0  ;;  %v7230_v25 = vadd.f32 %v1941_v1, %v1726_v50  ;;  %v7232_v20 = vadd.f32 %v1984_v2, %v1734_v53 }
0x1108   :  { %v7221_v26 = vmul.f32 0.70710677, %v7210_v62  ;;  %v7224_v5 = vmul.f32 0.70710677, %v7212_v63  ;;  %v7237_v23 = vadd.f32 %v1943_v60, %v1730_v52  ;;  %v7243_v36 = vadd.f32 %v1986_v24, %v1738_v27 }
0x1109   :  { %v2005_v6 = vand.u32 2147483647, %v7215_v3  ;;  %v2007_v30 = vand.u32 2147483647, %v7218_v4  ;;  %v7235_v22 = vmul.f32 0.70710677, %v7230_v25 }
0x110a   :  { %v2006_v9 = vand.u32 2147483647, %v7221_v26  ;;  %v2008_v10 = vand.u32 2147483647, %v7224_v5  ;;  %v7240_v34 = vmul.f32 0.70710677, %v7232_v20 }
0x110b   :  { %v2013_v14 = vmul.f32 0.3275911, %v2005_v6  ;;  %v2015_v15 = vmul.f32 0.3275911, %v2007_v30  ;;  %v2117_v33 = vsub.f32 0.0, %v2005_v6  ;;  %v2119_v37 = vsub.f32 0.0, %v2007_v30 }
0x110c   :  { %v2014_v16 = vmul.f32 0.3275911, %v2006_v9  ;;  %v2016_v19 = vmul.f32 0.3275911, %v2008_v10  ;;  %v2009_v35 = vand.u32 2147483647, %v7235_v22 }
0x110d   :  { %v2021_v17 = vadd.f32 1.0, %v2013_v14  ;;  %v2023_v18 = vadd.f32 1.0, %v2015_v15  ;;  %v2118_v11 = vsub.f32 0.0, %v2006_v9  ;;  %v2011_v51 = vand.u32 2147483647, %v7240_v34 }
0x110e   :  { %v2022_v57 = vadd.f32 1.0, %v2014_v16  ;;  %v2024_v21 = vadd.f32 1.0, %v2016_v19  ;;  %v7247_v12 = vmul.f32 0.70710677, %v7237_v23  ;;  %v2120_v13 = vsub.f32 0.0, %v2008_v10 }
0x110f   :  { %6359 = vrcp.f32 %v2021_v17  ;;  %v2017_v38 = vmul.f32 0.3275911, %v2009_v35  ;;  %v2125_v39 = vmul.f32 %v2117_v33, %v2005_v6  ;;  %v2019_v40 = vmul.f32 0.3275911, %v2011_v51 }
0x1110   :  { %6361 = vrcp.f32 %v2023_v18  ;;  %v2010_v41 = vand.u32 2147483647, %v7247_v12  ;;  %v7251_v44 = vmul.f32 0.70710677, %v7243_v36  ;;  %v2127_v45 = vmul.f32 %v2119_v37, %v2007_v30 }
0x1111   :  { %6363 = vrcp.f32 %v2022_v57  ;;  %v2025_v43 = vadd.f32 1.0, %v2017_v38  ;;  %v2126_v46 = vmul.f32 %v2118_v11, %v2006_v9  ;;  %v2027_v47 = vadd.f32 1.0, %v2019_v40 }
0x1112   :  { %6365 = vrcp.f32 %v2024_v21  ;;  %v2018_v50 = vmul.f32 0.3275911, %v2010_v41  ;;  %v2128_v52 = vmul.f32 %v2120_v13, %v2008_v10  ;;  %v2121_v27 = vsub.f32 0.0, %v2009_v35 }
0x1113   :  { %6367 = vrcp.f32 %v2025_v43  ;;  %v7256_v55 = vand.u32 2147483647, %v7251_v44  ;;  %v2133_v61 = vmul.f32 1.442695, %v2125_v39  ;;  %v2123_v6 = vsub.f32 0.0, %v2011_v51 }
0x1114   :  { %6369 = vrcp.f32 %v2027_v47  ;;  %v2026_v1 = vadd.f32 1.0, %v2018_v50  ;;  %v2137_v14 = vmul.f32 1.442695, %v2127_v45  ;;  %v2129_v16 = vmul.f32 %v2121_v27, %v2009_v35 }
0x1115   :  { %v2020_v30 = vmul.f32 0.3275911, %v7256_v55  ;;  %v2135_v60 = vmul.f32 1.442695, %v2126_v46  ;;  %v2139_v24 = vmul.f32 1.442695, %v2128_v52  ;;  %v2131_v33 = vmul.f32 %v2123_v6, %v2011_v51 }
0x1116   :  { %6371 = vrcp.f32 %v2026_v1  ;;  %v2122_v37 = vsub.f32 0.0, %v2010_v41  ;;  %v2141_v39 = vmul.f32 1.442695, %v2129_v16  ;;  %vm2165_vm8 = vcmp.ge.f32.partialorder %v7215_v3, 0.0 }
0x1117   :  { %v2028_v17 = vadd.f32 1.0, %v2020_v30  ;;  %6373 = vpow2.f32 %v2133_v61  ;;  %v2145_v51 = vmul.f32 1.442695, %v2131_v33  ;;  %v2124_v30 = vsub.f32 0.0, %v7256_v55 }
0x1118   :  { %v2130_v50 = vmul.f32 %v2122_v37, %v2010_v41  ;;  %vm2167_vm9 = vcmp.ge.f32.partialorder %v7218_v4, 0.0  ;;  %vm2166_vm10 = vcmp.ge.f32.partialorder %v7221_v26, 0.0  ;;  %vm2169_vm11 = vcmp.ge.f32.partialorder %v7235_v22, 0.0 }
0x1119   :  { %v7253_v53 = vpop.eup %6359  ;;  %6375 = vrcp.f32 %v2028_v17  ;;  %vm2171_vm12 = vcmp.ge.f32.partialorder %v7240_v34, 0.0  ;;  %vm2170_vm13 = vcmp.ge.f32.partialorder %v7247_v12, 0.0  ;;  %vm2168_vm14 = vcmp.ge.f32.partialorder %v7224_v5, 0.0 }
0x111a   :  { %v7258_v54 = vpop.eup %6361  ;;  %v2045_v59 = vmul.f32 1.0614054, %v7253_v53  ;;  %6377 = vpow2.f32 %v2137_v14  ;;  %vm2172_vm15 = vcmp.ge.f32.partialorder %v7251_v44, 0.0  ;;  %v1996_v5 = vmul.f32 0.5, %v7243_v36 }
0x111b   :  { %v2047_v2 = vmul.f32 1.0614054, %v7258_v54  ;;  %v7263_v10 = vpop.eup %6363  ;;  %6379 = vpow2.f32 %v2135_v60 }
0x111c   :  { %v2053_v9 = vadd.f32 -1.4531521, %v2045_v59  ;;  %v2046_v19 = vmul.f32 1.0614054, %v7263_v10  ;;  %v7267_v57 = vpop.eup %6365  ;;  %6381 = vpow2.f32 %v2139_v24 }
0x111d   :  { %v2055_v15 = vadd.f32 -1.4531521, %v2047_v2  ;;  %v2048_v38 = vmul.f32 1.0614054, %v7267_v57  ;;  %v7273_v46 = vpop.eup %6367  ;;  %6383 = vpow2.f32 %v2141_v39 }
0x111e   :  { %v2061_v18 = vmul.f32 %v7253_v53, %v2053_v9  ;;  %v2054_v13 = vadd.f32 -1.4531521, %v2046_v19  ;;  %v7276_v52 = vpop.eup %6369  ;;  %v2049_v1 = vmul.f32 1.0614054, %v7273_v46  ;;  %6385 = vpow2.f32 %v2145_v51 }
0x111f   :  { %v2063_v21 = vmul.f32 %v7258_v54, %v2055_v15  ;;  %v2056_v45 = vadd.f32 -1.4531521, %v2048_v38  ;;  %v2051_v6 = vmul.f32 1.0614054, %v7276_v52  ;;  %v2143_v19 = vmul.f32 1.442695, %v2130_v50 }
0x1120   :  { %v2069_v11 = vadd.f32 1.4214138, %v2061_v18  ;;  %v2062_v43 = vmul.f32 %v7263_v10, %v2054_v13  ;;  %v2057_v41 = vadd.f32 -1.4531521, %v2049_v1  ;;  %v7284_v16 = vpop.eup %6371 }
0x1121   :  { %v2071_v35 = vadd.f32 1.4214138, %v2063_v21  ;;  %v2064_v61 = vmul.f32 %v7267_v57, %v2056_v45  ;;  %v2059_v18 = vadd.f32 -1.4531521, %v2051_v6  ;;  %v6374_v37 = vpop.eup %6373  ;;  %v2050_v38 = vmul.f32 1.0614054, %v7284_v16 }
0x1122   :  { %v2077_v40 = vmul.f32 %v7253_v53, %v2069_v11  ;;  %v2070_v59 = vadd.f32 1.4214138, %v2062_v43  ;;  %v2065_v33 = vmul.f32 %v7273_v46, %v2057_v41  ;;  %6387 = vpow2.f32 %v2143_v19 }
0x1123   :  { %v2079_v47 = vmul.f32 %v7258_v54, %v2071_v35  ;;  %v2072_v15 = vadd.f32 1.4214138, %v2064_v61  ;;  %v2067_v13 = vmul.f32 %v7276_v52, %v2059_v18  ;;  %v2132_v35 = vmul.f32 %v2124_v30, %v7256_v55  ;;  %v7292_v39 = vpop.eup %6375 }
0x1124   :  { %v2085_v27 = vadd.f32 -0.28449672, %v2077_v40  ;;  %v2078_v14 = vmul.f32 %v7263_v10, %v2070_v59  ;;  %v6378_v51 = vpop.eup %6377  ;;  %v2058_v59 = vadd.f32 -1.4531521, %v2050_v38  ;;  %v2052_v61 = vmul.f32 1.0614054, %v7292_v39 }
0x1125   :  { %v2087_v2 = vadd.f32 -0.28449672, %v2079_v47  ;;  %v2080_v21 = vmul.f32 %v7267_v57, %v2072_v15  ;;  %v2073_v47 = vadd.f32 1.4214138, %v2065_v33  ;;  %v6380_v1 = vpop.eup %6379  ;;  %v2147_v38 = vmul.f32 1.442695, %v2132_v35 }
0x1126   :  { %v2093_v9 = vmul.f32 %v7253_v53, %v2085_v27  ;;  %v2086_v24 = vadd.f32 -0.28449672, %v2078_v14  ;;  %v2075_v27 = vadd.f32 1.4214138, %v2067_v13  ;;  %v2066_v15 = vmul.f32 %v7284_v16, %v2058_v59 }
0x1127   :  { %v2095_v17 = vmul.f32 %v7258_v54, %v2087_v2  ;;  %v2088_v45 = vadd.f32 -0.28449672, %v2080_v21  ;;  %v2081_v30 = vmul.f32 %v7273_v46, %v2073_v47  ;;  %v2060_v41 = vadd.f32 -1.4531521, %v2052_v61 }
0x1128   :  { %v2101_v60 = vadd.f32 0.2548296, %v2093_v9  ;;  %v2094_v43 = vmul.f32 %v7263_v10, %v2086_v24  ;;  %v6382_v9 = vpop.eup %6381  ;;  %v2083_v14 = vmul.f32 %v7276_v52, %v2075_v27  ;;  %v2074_v21 = vadd.f32 1.4214138, %v2066_v15 }
0x1129   :  { %v2103_v11 = vadd.f32 0.2548296, %v2095_v17  ;;  %v2096_v55 = vmul.f32 %v7267_v57, %v2088_v45  ;;  %v2089_v18 = vadd.f32 -0.28449672, %v2081_v30  ;;  %v2068_v33 = vmul.f32 %v7292_v39, %v2060_v41 }
0x112a   :  { %v2109_v40 = vmul.f32 %v7253_v53, %v2101_v60  ;;  %v2102_v6 = vadd.f32 0.2548296, %v2094_v43  ;;  %v6384_v60 = vpop.eup %6383  ;;  %v2091_v24 = vadd.f32 -0.28449672, %v2083_v14  ;;  %v2082_v47 = vmul.f32 %v7284_v16, %v2074_v21 }
0x112b   :  { %v2111_v50 = vmul.f32 %v7258_v54, %v2103_v11  ;;  %v2104_v17 = vadd.f32 0.2548296, %v2096_v55  ;;  %v2097_v13 = vmul.f32 %v7273_v46, %v2089_v18  ;;  %v1989_v27 = vmul.f32 0.5, %v7206_v56 }
0x112c   :  { %v2149_v2 = vmul.f32 %v6374_v37, %v2109_v40  ;;  %v2110_v54 = vmul.f32 %v7263_v10, %v2102_v6  ;;  %v6386_v40 = vpop.eup %6385  ;;  %v2099_v45 = vmul.f32 %v7276_v52, %v2091_v24  ;;  %v2076_v10 = vadd.f32 1.4214138, %v2068_v33 }
0x112d   :  { %v2151_v53 = vmul.f32 %v6378_v51, %v2111_v50  ;;  %v2112_v51 = vmul.f32 %v7267_v57, %v2104_v17  ;;  %v2105_v50 = vadd.f32 0.2548296, %v2097_v13  ;;  %v2090_v59 = vadd.f32 -0.28449672, %v2082_v47  ;;  %v6388_v17 = vpop.eup %6387 }
0x112e   :  { %v2157_v37 = vsub.f32 1.0, %v2149_v2  ;;  %v2150_v43 = vmul.f32 %v6380_v1, %v2110_v54  ;;  %v2107_v19 = vadd.f32 0.2548296, %v2099_v45  ;;  %6389 = vpow2.f32 %v2147_v38 }
0x112f   :  { %v2159_v11 = vsub.f32 1.0, %v2151_v53  ;;  %v2113_v6 = vmul.f32 %v7273_v46, %v2105_v50  ;;  %v2098_v55 = vmul.f32 %v7284_v16, %v2090_v59  ;;  %v2084_v30 = vmul.f32 %v7292_v39, %v2076_v10 }
0x1130   :  { %v2173_v61 = vsub.f32 0.0, %v2157_v37  ;;  %v2158_v35 = vsub.f32 1.0, %v2150_v43  ;;  %v2115_v1 = vmul.f32 %v7276_v52, %v2107_v19  ;;  %v1991_v53 = vmul.f32 0.5, %v7208_v58 }
0x1131   :  { %v2175_v2 = vsub.f32 0.0, %v2159_v11  ;;  %v1990_v57 = vmul.f32 0.5, %v7210_v62  ;;  %v2152_v14 = vmul.f32 %v6382_v9, %v2112_v51  ;;  %v2153_v56 = vmul.f32 %v6384_v60, %v2113_v6 }
0x1132   :  { %v2155_v15 = vmul.f32 %v6386_v40, %v2115_v1  ;;  %v2106_v41 = vadd.f32 0.2548296, %v2098_v55  ;;  %v2092_v54 = vadd.f32 -0.28449672, %v2084_v30  ;;  %v2181_v46 = vsel %vm2165_vm8, %v2157_v37, %v2173_v61 }
0x1133   :  { %v2161_v52 = vsub.f32 1.0, %v2153_v56  ;;  %v2183_v18 = vsel %vm2167_vm9, %v2159_v11, %v2175_v2  ;;  %v2174_v24 = vsub.f32 0.0, %v2158_v35  ;;  %v2160_v62 = vsub.f32 1.0, %v2152_v14 }
0x1134   :  { %v2163_v21 = vsub.f32 1.0, %v2155_v15  ;;  %v2114_v58 = vmul.f32 %v7284_v16, %v2106_v41  ;;  %v1993_v9 = vmul.f32 0.5, %v7230_v25  ;;  %v2100_v3 = vmul.f32 %v7292_v39, %v2092_v54 }
0x1135   :  { %v2177_v60 = vsub.f32 0.0, %v2161_v52  ;;  %v2189_v33 = vadd.f32 1.0, %v2181_v46  ;;  %v2191_v13 = vadd.f32 1.0, %v2183_v18  ;;  %v2182_v40 = vsel %vm2166_vm10, %v2158_v35, %v2174_v24 }
0x1136   :  { %v2179_v37 = vsub.f32 0.0, %v2163_v21  ;;  %v2154_v4 = vmul.f32 %v6388_v17, %v2114_v58  ;;  %v2108_v11 = vadd.f32 0.2548296, %v2100_v3  ;;  %v2176_v47 = vsub.f32 0.0, %v2160_v62  ;;  %v5132_v17 = vld [vmem:[%s7734_s3] ss:$0 sm:$0xff] }
0x1137   :  { %v2185_v38 = vsel %vm2169_vm11, %v2161_v52, %v2177_v60  ;;  %v1995_v10 = vmul.f32 0.5, %v7232_v20  ;;  %v2197_v50 = vmul.f32 %v2189_v33, %v1989_v27  ;;  %v2199_v34 = vmul.f32 %v2191_v13, %v1991_v53 }
0x1138   :  { %v2193_v16 = vadd.f32 1.0, %v2185_v38  ;;  %v2187_v43 = vsel %vm2171_vm12, %v2163_v21, %v2179_v37  ;;  %v2162_v45 = vsub.f32 1.0, %v2154_v4  ;;  %v6390_v25 = vpop.eup %6389  ;;  %v2116_v22 = vmul.f32 %v7292_v39, %v2108_v11 }
0x1139   :  { %v2195_v51 = vadd.f32 1.0, %v2187_v43  ;;  %v2190_v61 = vadd.f32 1.0, %v2182_v40  ;;  %v1994_v35 = vmul.f32 0.5, %v7237_v23  ;;  %v2184_v55 = vsel %vm2168_vm14, %v2160_v62, %v2176_v47  ;;  %v6183_v40 = vld [vmem:[%s7735_s0] ss:$12 sps:$4 sm:$0xff]  }
0x113a   :  { %v2201_v19 = vmul.f32 %v2193_v16, %v1993_v9  ;;  %v2178_v59 = vsub.f32 0.0, %v2162_v45  ;;  %v2156_v26 = vmul.f32 %v6390_v25, %v2116_v22  ;;  %v2192_v15 = vadd.f32 1.0, %v2184_v55  ;;  %v6185_v16 = vld [vmem:[%s7735_s0 + $0x4] ss:$12 sps:$4 sm:$0xff]   ;;  %v6186_v43 = vld [vmem:[%s7735_s0 + $0x8] ss:$12 sps:$4 sm:$0xff]  }
0x113b   :  { %v2203_v2 = vmul.f32 %v2195_v51, %v1995_v10  ;;  %v2198_v39 = vmul.f32 %v2190_v61, %v1990_v57  ;;  %v1992_v41 = vmul.f32 0.5, %v7212_v63  ;;  %2774 = vmatprep.subr.bf16.mxu1 %v6185_v16  ;;  %v6190_v25 = vld [vmem:[%s7735_s0 + $0x20] ss:$12 sps:$4 sm:$0xff]   ;;  %v6187_v47 = vld [vmem:[%s7735_s0 + $0x18] ss:$12 sps:$4 sm:$0xff]  }
0x113c   :  { %v2205_v6 = vpack.c.bf16 %v2201_v19, %v2197_v50  ;;  %v2186_v1 = vsel %vm2170_vm13, %v2162_v45, %v2178_v59  ;;  %v2164_v14 = vsub.f32 1.0, %v2156_v26  ;;  %v6189_v45 = vld [vmem:[%s7735_s0 + $0x1c] ss:$12 sps:$4 sm:$0xff]   ;;  %v6197_v26 = vld [vmem:[%s7735_s0 + $0x4c] ss:$12 sps:$4 sm:$0xff]  }
0x113d   :  { %v2207_v20 = vpack.c.bf16 %v2203_v2, %v2199_v34  ;;  %v2194_v30 = vadd.f32 1.0, %v2186_v1  ;;  %v2200_v23 = vmul.f32 %v2192_v15, %v1992_v41  ;;  %v6193_v34 = vld [vmem:[%s7735_s0 + $0x34] ss:$12 sps:$4 sm:$0xff]   ;;  %v6191_v61 = vld [vmem:[%s7735_s0 + $0x30] ss:$12 sps:$4 sm:$0xff]  }
0x113e   :  { %v2180_v56 = vsub.f32 0.0, %v2164_v14  ;;  %v6194_v2 = vld [vmem:[%s7735_s0 + $0x38] ss:$12 sps:$4 sm:$0xff]   ;;  %v6199_v55 = vld [vmem:[%s7735_s0 + $0x60] ss:$12 sps:$4 sm:$0xff]  }
0x113f   :  { %v2202_v27 = vmul.f32 %v2194_v30, %v1994_v35  ;;  %v6198_v35 = vld [vmem:[%s7735_s0 + $0x50] ss:$12 sps:$4 sm:$0xff]   ;;  %v6210_v15 = vld [vmem:[%s7735_s0 + $0x98] ss:$12 sps:$4 sm:$0xff]  }
0x1140   :  { %v2188_v12 = vsel %vm2172_vm15, %v2164_v14, %v2180_v56  ;;  %v6201_v1 = vld [vmem:[%s7735_s0 + $0x64] ss:$12 sps:$4 sm:$0xff]   ;;  %v6205_v30 = vld [vmem:[%s7735_s0 + $0x7c] ss:$12 sps:$4 sm:$0xff]   ;;  %v6209_v56 = vld [vmem:[%s7735_s0 + $0x94] ss:$12 sps:$4 sm:$0xff]  }
0x1141   :  { %v2206_v53 = vpack.c.bf16 %v2202_v27, %v2198_v39  ;;  %v2196_v54 = vadd.f32 1.0, %v2188_v12  ;;  %v6203_v14 = vld [vmem:[%s7735_s0 + $0x78] ss:$12 sps:$4 sm:$0xff]   ;;  %v6206_v39 = vld [vmem:[%s7735_s0 + $0x80] ss:$12 sps:$4 sm:$0xff]  }
0x1142   :  { %v6207_v27 = vld [vmem:[%s7735_s0 + $0x90] ss:$12 sps:$4 sm:$0xff]   ;;  %v6213_v12 = vld [vmem:[%s7735_s0 + $0xac] ss:$12 sps:$4 sm:$0xff]  }
0x1143   :  { %2504 = vmatprep.mubr.bf16.mxu1 %v2206_v53  ;;  %v2204_v46 = vmul.f32 %v2196_v54, %v1996_v5  ;;  %v6211_v53 = vld [vmem:[%s7735_s0 + $0xa8] ss:$12 sps:$4 sm:$0xff]   ;;  %v6214_v41 = vld [vmem:[%s7735_s0 + $0xb0] ss:$12 sps:$4 sm:$0xff]  }
0x1144   :  { %2505 = vmatmul.mubr.bf16.vlgmr.msra.gmra.mrb[24].mxu1 %v2205_v6  ;;  %v6195_v6 = vld [vmem:[%s7735_s0 + $0x48] ss:$12 sps:$4 sm:$0xff]  }
0x1145   :  { %2806 = vmatprep.mubr.bf16.mxu1 %v6733_v0  ;;  %v2208_v57 = vpack.c.bf16 %v2204_v46, %v2200_v23  ;;  %2775 = vmatpush1.bf16.msra.mxu1 %v6183_v40 }
0x1146   :  { %2776 = vmatprep.subr.bf16.mxu1 %v6189_v45 }
0x1147   :  { %2545 = vmatprep.mubr.bf16.mxu0 %v2208_v57 }
0x1148   :  { %2546 = vmatmul.mubr.bf16.vlgmr.msra.gmra.mrb[16].mxu0 %v2207_v20  ;;  %v6202_v20 = vld [vmem:[%s7735_s0 + $0x68] ss:$12 sps:$4 sm:$0xff]  }
0x1149   :  { %5682 = vmatprep.mubr.msk.bf16.mxu0 %vm6736_vm2, %v6735_v42  ;;  %5667 = vmatpush3.bf16.msra.mxu0 %v6186_v43 }
0x114a   :  { %5668 = vmatprep.subr.bf16.mxu0 %v6735_v42  ;;  %2777 = vmatpush1.bf16.msra.mxu1 %v6187_v47 }
0x114b   :  { %2778 = vmatprep.subr.bf16.mxu1 %v6193_v34 }
0x114d   :  { %5669 = vmatpush3.bf16.msra.mxu0 %v6190_v25 }
0x114e   :  { %5670 = vmatprep.subr.bf16.mxu0 %v6735_v42  ;;  %2779 = vmatpush1.bf16.msra.mxu1 %v6191_v61 }
0x114f   :  { %2780 = vmatprep.subr.bf16.mxu1 %v6197_v26 }
0x1151   :  { %5671 = vmatpush3.bf16.msra.mxu0 %v6194_v2 }
0x1152   :  { %5672 = vmatprep.subr.bf16.mxu0 %v6735_v42  ;;  %2781 = vmatpush1.bf16.msra.mxu1 %v6195_v6 }
0x1153   :  { %2782 = vmatprep.subr.bf16.mxu1 %v6201_v1 }
0x1155   :  { %5673 = vmatpush3.bf16.msra.mxu0 %v6198_v35  ;;  %v7402_v35 = vld [vmem:[%s7727_s17 + $0x8] sm:$0xff] }
0x1156   :  { %5674 = vmatprep.subr.bf16.mxu0 %v6735_v42  ;;  %2783 = vmatpush1.bf16.msra.mxu1 %v6199_v55  ;;  %v7406_v55 = vld [vmem:[%s7727_s17] sm:$0xff] }
0x1157   :  { %2784 = vmatprep.subr.bf16.mxu1 %v6205_v30 }
0x1159   :  { %5675 = vmatpush3.bf16.msra.mxu0 %v6202_v20 }
0x115a   :  { %5676 = vmatprep.subr.bf16.mxu0 %v6735_v42  ;;  %2785 = vmatpush1.bf16.msra.mxu1 %v6203_v14 }
0x115b   :  { %2786 = vmatprep.subr.bf16.mxu1 %v6209_v56 }
0x115d   :  { %5677 = vmatpush3.bf16.msra.mxu0 %v6206_v39 }
0x115e   :  { %5678 = vmatprep.subr.bf16.mxu0 %v6735_v42  ;;  %2787 = vmatpush1.bf16.msra.mxu1 %v6207_v27 }
0x115f   :  { %2788 = vmatprep.subr.bf16.mxu1 %v6213_v12 }
0x1161   :  { %5679 = vmatpush3.bf16.msra.mxu0 %v6210_v15 }
0x1162   :  { %5680 = vmatprep.subr.bf16.mxu0 %v6735_v42  ;;  %2789 = vmatpush1.bf16.msra.mxu1 %v6211_v53 }
0x1165   :  { %5681 = vmatpush3.bf16.msra.mxu0 %v6214_v41 }
0x1166   :  { %5742 = vmatprep.subr.bf16.mxu0 %v6735_v42 }
0x1217   :  { %v5395_v44 = vpop.f32.mrb[24].mxu1 }
0x1218   :  { %v5396_v52 = vpop.f32.mrb[25].mxu1 }
0x1219   :  { %v5397_v18 = vadd.f32 %v5396_v52, %v5395_v44  ;;  %v5398_v63 = vpop.f32.mrb[26].mxu1 }
0x121a   :  { %v5399_v24 = vpop.f32.mrb[27].mxu1 }
0x121b   :  { %v5400_v36 = vadd.f32 %v5399_v24, %v5398_v63  ;;  %v5417_v21 = vpop.f32.mrb[16].mxu0  ;;  %v2507_v58 = vadd.f32 %v5397_v18, %v5132_v17 }
0x121c   :  { %v5418_v62 = vpop.f32.mrb[17].mxu0 }
0x121d   :  { %v5419_v9 = vadd.f32 %v5418_v62, %v5417_v21  ;;  %v5420_v60 = vpop.f32.mrb[18].mxu0  ;;  %v2510_v3 = vadd.f32 %v5400_v36, %v5132_v17  ;;  %v5165_v17 = vld [vmem:[%s7736_s18] ss:$0 sm:$0xff] }
0x121e   :  { %v5421_v33 = vpop.f32.mrb[19].mxu0  ;;  %v5166_v21 = vld [vmem:[%s7737_s22] ss:$0 sm:$0xff] }
0x121f   :  { %v2548_v37 = vadd.f32 %v5419_v9, %v2507_v58  ;;  %v5422_v4 = vadd.f32 %v5421_v33, %v5420_v60 }
0x1221   :  { %v2551_v13 = vadd.f32 %v5422_v4, %v2510_v3  ;;  %v2554_v38 = vadd.f32 %v2548_v37, %v7192_v7  ;;  %v2629_v3 = vld [vmem:[%s7738_s23] sm:$0x7] }
0x1222   :  { %v2634_v33 = vrot.slane %v2629_v3, %v7030_v29  ;;  %v2642_v37 = vrot.slane %v2629_v3, %v7034_v31 }
0x1223   :  { %2558 = vadd.xlane.f32.xlu0 %v2554_v38  ;;  %v2555_v11 = vadd.f32 %v2551_v13, %v7194_v8 }
0x1225   :  { %2560 = vadd.xlane.f32.xlu1 %v2555_v11 }
0x12b0   :  { %v2559_v7 = vpop.xlane.xlu0 %2558 }
0x12b1   :  { %v2562_v8 = vmul.f32 0.0078125, %v2559_v7 }
0x12b2   :  { %v2561_v10 = vpop.xlane.xlu1 %2560 }
0x12b3   :  { %v2564_v51 = vsub.f32 %v2554_v38, %v2562_v8  ;;  %v2563_v22 = vmul.f32 0.0078125, %v2561_v10  ;;  %v2638_v38 = vrot.slane %v2629_v3, %v7037_v32 }
0x12b5   :  { %v2565_v50 = vsub.f32 %v2555_v11, %v2563_v22  ;;  %v2566_v19 = vmul.f32 %v2564_v51, %v2564_v51 }
0x12b7   :  { %2568 = vadd.xlane.f32.xlu0 %v2566_v19  ;;  %v2567_v59 = vmul.f32 %v2565_v50, %v2565_v50 }
0x12b9   :  { %2570 = vadd.xlane.f32.xlu1 %v2567_v59 }
0x1344   :  { %v2569_v5 = vpop.xlane.xlu0 %2568 }
0x1345   :  { %v2572_v54 = vmul.f32 0.0078125, %v2569_v5 }
0x1346   :  { %v2571_v23 = vpop.xlane.xlu1 %2570 }
0x1347   :  { %v2574_v46 = vadd.f32 1e-12, %v2572_v54  ;;  %v2573_v57 = vmul.f32 0.0078125, %v2571_v23 }
0x1349   :  { %6391 = vrsqrt.f32 %v2574_v46  ;;  %v2575_v44 = vadd.f32 1e-12, %v2573_v57 }
0x134b   :  { %6393 = vrsqrt.f32 %v2575_v44 }
0x1353   :  { %v6392_v52 = vpop.eup %6391 }
0x1354   :  { %v2578_v18 = vmul.f32 %v6392_v52, %v2564_v51 }
0x1355   :  { %v6394_v63 = vpop.eup %6393 }
0x1356   :  { %v2579_v24 = vmul.f32 %v6394_v63, %v2565_v50  ;;  %v2586_v36 = vmul.f32 %v5165_v17, %v2578_v18 }
0x1358   :  { %v2587_v58 = vmul.f32 %v5165_v17, %v2579_v24  ;;  %v7373_v62 = vadd.f32 %v5166_v21, %v2586_v36 }
0x135a   :  { %v7375_v9 = vadd.f32 %v5166_v21, %v2587_v58 }
0x135c   :  { %v2596_v60 = vpack.c.bf16 %v7375_v9, %v7373_v62 }
0x135e   :  { %2807 = vmatmul.mubr.bf16.vlgmr.msra.gmra.mrb[28].mxu1 %v2596_v60  ;;  %5683 = vmatmul.mubr.bf16.vlgmr.msra.gmra.mrb[20].mxu0 %v2596_v60 }
0x135f   :  { %5758 = vmatprep.mubr.msk.bf16.mxu0 %vm6736_vm2, %v6735_v42 }
0x1431   :  { %v2808_v4 = vpop.f32.mrb[28].mxu1  ;;  %v2851_v13 = vpop.f32.mrb[20].mxu0 }
0x1432   :  { %v7385_v11 = vadd.f32 %v2808_v4, %v2634_v33  ;;  %v2810_v40 = vpop.f32.mrb[29].mxu1  ;;  %v5684_v16 = vpop.f32.mrb[21].mxu0  ;;  %v2852_v25 = vadd.f32 %v2851_v13, %v2642_v37 }
0x1433   :  { %v2812_v43 = vpop.f32.mrb[30].mxu1  ;;  %v2854_v45 = vpop.f32.mrb[22].mxu0  ;;  %v2811_v10 = vadd.f32 %v2810_v40, %v2638_v38 }
0x1434   :  { %v2855_v47 = vadd.f32 %v2854_v45, %v2642_v37  ;;  %v2814_v7 = vpop.f32.mrb[31].mxu1  ;;  %v5685_v8 = vpop.f32.mrb[23].mxu0  ;;  %5690 = vmatprep.mubr.msk.f32.mxu1 %vm691_vm3, %v7385_v11  ;;  %v7397_v34 = vadd.f32 %v2812_v43, %v2634_v33 }
0x1435   :  { %v2815_v51 = vadd.f32 %v2814_v7, %v2638_v38 }
0x1436   :  { %v5880_v22 = vpack.c.bf16 %v2855_v47, %v2852_v25  ;;  %v7389_v50 = vpack.i.bf16 %v2855_v47, %v2852_v25 }
0x1437   :  { %v5874_v19 = vpack.c.bf16 %v2815_v51, %v2811_v10  ;;  %v7391_v59 = vpack.i.bf16 %v2815_v51, %v2811_v10 }
0x1439   :  { %5876 = vmatprep.subr.msk.bf16.mxu1 %vm7050_vm4, %v5874_v19 }
0x143a   :  { %5879 = vmatpush3.bf16.xpose.msk.msra.mxu1 %vm7050_vm4, %v5874_v19 }
0x143b   :  { %5881 = vmatprep.subr.bf16.mxu1 %v5880_v22 }
0x1441   :  { %5691 = vmatmul.mubr.msk.f32.vlgmr.msra.gmra.mrb[32].mxu1 %vm691_vm3, %v7397_v34 }
0x1442   :  { %5883 = vmatpush3.bf16.msra.mxu1 %v5880_v22 }
0x1514   :  { %v5692_v61 = vpop.f32.mrb[32].mxu1 }
0x1515   :  { %v2946_v2 = vmul.f32 0.17677669, %v5692_v61  ;;  %v2936_v26 = vpop.f32.mrb[33].mxu1 }
0x1516   :  { %v2945_v6 = vmul.f32 0.17677669, %v2936_v26 }
0x1517   :  { %v2948_v1 = vadd.f32 %v7402_v35, %v2946_v2 }
0x1518   :  { %v2947_v20 = vadd.f32 %v7406_v55, %v2945_v6 }
0x1519   :  { %v2952_v30 = vsel %vm783_vm5, %v2948_v1, -inf }
0x151a   :  { %2953 = vmax.xlane.f32.xlu1 %v2952_v30  ;;  %v2949_v14 = vsel %vm783_vm5, %v2947_v20, -inf }
0x151b   :  { %2950 = vmax.xlane.f32.xlu0 %v2949_v14 }
0x15a7   :  { %v2954_v39 = vpop.xlane.xlu1 %2953 }
0x15a8   :  { %v2956_v27 = vsub.f32 %v2948_v1, %v2954_v39  ;;  %v2951_v56 = vpop.xlane.xlu0 %2950 }
0x15a9   :  { %v2955_v15 = vsub.f32 %v2947_v20, %v2951_v56 }
0x15aa   :  { %v2959_v12 = vmul.f32 1.442695, %v2956_v27 }
0x15ab   :  { %v2957_v53 = vmul.f32 1.442695, %v2955_v15 }
0x15ac   :  { %6395 = vpow2.f32 %v2959_v12 }
0x15ad   :  { %6397 = vpow2.f32 %v2957_v53 }
0x15b6   :  { %v6396_v41 = vpop.eup %6395 }
0x15b7   :  { %v6398_v5 = vpop.eup %6397  ;;  %v2964_v54 = vsel %vm783_vm5, %v6396_v41, 0.0 }
0x15b8   :  { %2965 = vadd.xlane.f32.xlu1 %v2964_v54  ;;  %v2961_v23 = vsel %vm783_vm5, %v6398_v5, 0.0 }
0x15b9   :  { %2962 = vadd.xlane.f32.xlu0 %v2961_v23 }
0x15c9   :  { %3052 = vrot.lane.b32.xlu1 %v7385_v11, %s6737_s9 }
0x15cd   :  { %3054 = vrot.lane.b32.xlu1 %v7397_v34, %s6737_s9 }
0x15cf   :  { %6019 = vrot.lane.b32.xlu0 %v7391_v59, %s6737_s9 }
0x1645   :  { %v2966_v46 = vpop.xlane.xlu1 %2965 }
0x1646   :  { %6399 = vrcp.f32 %v2966_v46  ;;  %v2963_v57 = vpop.xlane.xlu0 %2962 }
0x1647   :  { %6401 = vrcp.f32 %v2963_v57 }
0x1649   :  { %v3053_v58 = vpop.permute.xlu1 %3052 }
0x164a   :  { %v6020_v44 = vpop.permute.xlu0 %6019 }
0x164b   :  { %v6022_v52 = vunpack.i.h.bf16 %v6020_v44  ;;  %v6021_v17 = vunpack.i.l.bf16 %v6020_v44 }
0x164d   :  { %v5884_v18 = vpack.c.bf16 %v6022_v52, %v6021_v17  ;;  %v3055_v60 = vpop.permute.xlu1 %3054 }
0x164f   :  { %5886 = vmatprep.subr.msk.bf16.mxu1 %vm7050_vm4, %v5884_v18 }
0x1650   :  { %v6400_v63 = vpop.eup %6399 }
0x1651   :  { %v6402_v24 = vpop.eup %6401  ;;  %v2970_v21 = vmul.f32 %v6400_v63, %v6396_v41 }
0x1652   :  { %v2968_v36 = vmul.f32 %v6402_v24, %v6398_v5 }
0x1654   :  { %5697 = vmatprep.mubr.msk.f32.mxu1 %vm783_vm5, %v2968_v36 }
0x1655   :  { %5698 = vmatmul.mubr.msk.f32.vlgmr.msra.gmra.mrb[34].mxu1 %vm783_vm5, %v2970_v21 }
0x1656   :  { %5889 = vmatpush3.bf16.xpose.msk.msra.mxu1 %vm7050_vm4, %v5884_v18  ;;  %5704 = vmatprep.mubr.msk.f32.mxu1 %vm691_vm3, %v3053_v58 }
0x165d   :  { %5705 = vmatmul.mubr.msk.f32.vlgmr.msra.gmra.mrb[36].mxu1 %vm691_vm3, %v3055_v60 }
0x1728   :  { %v7427_v3 = vpop.f32.mrb[34].mxu1 }
0x1729   :  { %v7429_v33 = vpop.f32.mrb[35].mxu1 }
0x1730   :  { %v5706_v37 = vpop.f32.mrb[36].mxu1 }
0x1731   :  { %v3144_v4 = vmul.f32 0.17677669, %v5706_v37  ;;  %v3134_v13 = vpop.f32.mrb[37].mxu1 }
0x1732   :  { %v3143_v38 = vmul.f32 0.17677669, %v3134_v13 }
0x1733   :  { %v3146_v40 = vadd.f32 %v7402_v35, %v3144_v4 }
0x1734   :  { %v3145_v16 = vadd.f32 %v7406_v55, %v3143_v38 }
0x1735   :  { %v3150_v43 = vsel %vm783_vm5, %v3146_v40, -inf }
0x1736   :  { %3151 = vmax.xlane.f32.xlu1 %v3150_v43  ;;  %v3147_v45 = vsel %vm783_vm5, %v3145_v16, -inf }
0x1737   :  { %3148 = vmax.xlane.f32.xlu0 %v3147_v45 }
0x1747   :  { %6024 = vrot.lane.b32.xlu1 %v7389_v50, %s6737_s9 }
0x174b   :  { %3258 = vrot.lane.b32.xlu1 %v7385_v11, %s6724_s6 }
0x174f   :  { %3260 = vrot.lane.b32.xlu1 %v7397_v34, %s6724_s6 }
0x17c3   :  { %v3152_v25 = vpop.xlane.xlu1 %3151 }
0x17c4   :  { %v3154_v47 = vsub.f32 %v3146_v40, %v3152_v25  ;;  %v3149_v7 = vpop.xlane.xlu0 %3148 }
0x17c5   :  { %v3153_v8 = vsub.f32 %v3145_v16, %v3149_v7 }
0x17c6   :  { %v3157_v10 = vmul.f32 1.442695, %v3154_v47 }
0x17c7   :  { %v3155_v51 = vmul.f32 1.442695, %v3153_v8  ;;  %v6025_v22 = vpop.permute.xlu1 %6024 }
0x17c8   :  { %6403 = vpow2.f32 %v3157_v10  ;;  %v6027_v19 = vunpack.i.h.bf16 %v6025_v22  ;;  %v6026_v61 = vunpack.i.l.bf16 %v6025_v22 }
0x17c9   :  { %6405 = vpow2.f32 %v3155_v51 }
0x17ca   :  { %v5890_v2 = vpack.c.bf16 %v6027_v19, %v6026_v61 }
0x17cb   :  { %v3259_v54 = vpop.permute.xlu1 %3258 }
0x17cc   :  { %5891 = vmatprep.subr.bf16.mxu1 %v5890_v2 }
0x17cd   :  { %5893 = vmatpush3.bf16.msra.mxu1 %v5890_v2 }
0x17cf   :  { %v3261_v23 = vpop.permute.xlu1 %3260 }
0x17d2   :  { %v6404_v26 = vpop.eup %6403 }
0x17d3   :  { %v3162_v6 = vsel %vm783_vm5, %v6404_v26, 0.0  ;;  %v6406_v1 = vpop.eup %6405 }
0x17d4   :  { %3163 = vadd.xlane.f32.xlu0 %v3162_v6  ;;  %v3159_v20 = vsel %vm783_vm5, %v6406_v1, 0.0 }
0x17d8   :  { %3160 = vadd.xlane.f32.xlu0 %v3159_v20 }
0x17ee   :  { %6029 = vrot.lane.b32.xlu0 %v7391_v59, %s6724_s6 }
0x1861   :  { %v3164_v30 = vpop.xlane.xlu0 %3163 }
0x1862   :  { %6407 = vrcp.f32 %v3164_v30 }
0x1865   :  { %v3161_v14 = vpop.xlane.xlu0 %3160 }
0x1866   :  { %6409 = vrcp.f32 %v3161_v14 }
0x1869   :  { %v6030_v39 = vpop.permute.xlu0 %6029 }
0x186a   :  { %v6032_v27 = vunpack.i.h.bf16 %v6030_v39  ;;  %v6031_v56 = vunpack.i.l.bf16 %v6030_v39 }
0x186c   :  { %v5894_v15 = vpack.c.bf16 %v6032_v27, %v6031_v56  ;;  %v6408_v12 = vpop.eup %6407 }
0x186d   :  { %v3168_v5 = vmul.f32 %v6408_v12, %v6404_v26 }
0x186e   :  { %5896 = vmatprep.subr.msk.bf16.mxu1 %vm7050_vm4, %v5894_v15 }
0x1870   :  { %v6410_v53 = vpop.eup %6409 }
0x1871   :  { %v3166_v41 = vmul.f32 %v6410_v53, %v6406_v1 }
0x1873   :  { %5711 = vmatprep.mubr.msk.f32.mxu1 %vm783_vm5, %v3166_v41 }
0x1874   :  { %5712 = vmatmul.mubr.msk.f32.vlgmr.msra.gmra.mrb[38].mxu1 %vm783_vm5, %v3168_v5 }
0x1875   :  { %5899 = vmatpush3.bf16.xpose.msk.msra.mxu1 %vm7050_vm4, %v5894_v15  ;;  %5718 = vmatprep.mubr.msk.f32.mxu1 %vm691_vm3, %v3259_v54 }
0x187c   :  { %5719 = vmatmul.mubr.msk.f32.vlgmr.msra.gmra.mrb[40].mxu1 %vm691_vm3, %v3261_v23 }
0x1947   :  { %v7453_v46 = vpop.f32.mrb[38].mxu1 }
0x1948   :  { %v7455_v57 = vpop.f32.mrb[39].mxu1 }
0x1949   :  { %v6048_v44 = vpack.i.bf16 %v7453_v46, %v7455_v57  ;;  %v6217_v46 = vld [vmem:[#allocation10 + $0x10] sm:$0xff]   ;;  %v6218_v57 = vld [vmem:[#allocation10 + $0x18] sm:$0xff]  }
0x194f   :  { %v5720_v52 = vpop.f32.mrb[40].mxu1 }
0x1950   :  { %v3350_v17 = vmul.f32 0.17677669, %v5720_v52  ;;  %v3340_v18 = vpop.f32.mrb[41].mxu1 }
0x1951   :  { %v3349_v63 = vmul.f32 0.17677669, %v3340_v18 }
0x1952   :  { %v3352_v24 = vadd.f32 %v7402_v35, %v3350_v17 }
0x1953   :  { %v3351_v36 = vadd.f32 %v7406_v55, %v3349_v63 }
0x1954   :  { %v3356_v21 = vsel %vm783_vm5, %v3352_v24, -inf }
0x1955   :  { %3357 = vmax.xlane.f32.xlu1 %v3356_v21  ;;  %v3353_v58 = vsel %vm783_vm5, %v3351_v36, -inf }
0x1956   :  { %3354 = vmax.xlane.f32.xlu0 %v3353_v58 }
0x1966   :  { %6034 = vrot.lane.b32.xlu1 %v7389_v50, %s6724_s6 }
0x196a   :  { %3462 = vrot.lane.b32.xlu1 %v7385_v11, %s6738_s21 }
0x196e   :  { %3464 = vrot.lane.b32.xlu1 %v7397_v34, %s6738_s21 }
0x19e2   :  { %v3358_v60 = vpop.xlane.xlu1 %3357 }
0x19e3   :  { %v3360_v37 = vsub.f32 %v3352_v24, %v3358_v60  ;;  %v3355_v4 = vpop.xlane.xlu0 %3354 }
0x19e4   :  { %v3359_v13 = vsub.f32 %v3351_v36, %v3355_v4 }
0x19e5   :  { %v3363_v38 = vmul.f32 1.442695, %v3360_v37 }
0x19e6   :  { %v3361_v40 = vmul.f32 1.442695, %v3359_v13  ;;  %v6035_v16 = vpop.permute.xlu1 %6034 }
0x19e7   :  { %6411 = vpow2.f32 %v3363_v38  ;;  %v6037_v43 = vunpack.i.h.bf16 %v6035_v16  ;;  %v6036_v45 = vunpack.i.l.bf16 %v6035_v16 }
0x19e8   :  { %6413 = vpow2.f32 %v3361_v40 }
0x19e9   :  { %v5900_v25 = vpack.c.bf16 %v6037_v43, %v6036_v45  ;;  %v6215_v43 = vld [vmem:[#allocation10] sm:$0xff]   ;;  %v6216_v45 = vld [vmem:[#allocation10 + $0x8] sm:$0xff]  }
0x19ea   :  { %v3463_v20 = vpop.permute.xlu1 %3462  ;;  %5743 = vmatpush3.bf16.msra.mxu0 %v6215_v43  ;;  %v6241_v43 = vld [vmem:[#allocation12 + $0x60] ss:$16 sps:$4 sm:$0xff]  }
0x19eb   :  { %5901 = vmatprep.subr.bf16.mxu1 %v5900_v25  ;;  %5744 = vmatprep.subr.bf16.mxu0 %v6735_v42 }
0x19ec   :  { %5903 = vmatpush3.bf16.msra.mxu1 %v5900_v25  ;;  %v6220_v25 = vld [vmem:[#allocation10 + $0x28] sm:$0xff]  }
0x19ee   :  { %5745 = vmatpush3.bf16.msra.mxu0 %v6216_v45  ;;  %v6244_v45 = vld [vmem:[#allocation12 + $0x68] ss:$16 sps:$4 sm:$0xff]  }
0x19ef   :  { %5746 = vmatprep.subr.bf16.mxu0 %v6735_v42 }
0x19f1   :  { %v6412_v47 = vpop.eup %6411 }
0x19f2   :  { %v3368_v11 = vsel %vm783_vm5, %v6412_v47, 0.0  ;;  %v6414_v7 = vpop.eup %6413  ;;  %5747 = vmatpush3.bf16.msra.mxu0 %v6217_v46  ;;  %v6249_v46 = vld [vmem:[#allocation12 + $0x84] ss:$16 sps:$4 sm:$0xff]  }
0x19f3   :  { %3369 = vadd.xlane.f32.xlu0 %v3368_v11  ;;  %v3365_v34 = vsel %vm783_vm5, %v6414_v7, 0.0  ;;  %5748 = vmatprep.subr.bf16.mxu0 %v6735_v42  ;;  %v6222_v11 = vld [vmem:[#allocation10 + $0x38] sm:$0xff]  }
0x19f6   :  { %5749 = vmatpush3.bf16.msra.mxu0 %v6218_v57  ;;  %v6252_v57 = vld [vmem:[#allocation12 + $0x8c] ss:$16 sps:$4 sm:$0xff]  }
0x19f7   :  { %3366 = vadd.xlane.f32.xlu0 %v3365_v34  ;;  %5750 = vmatprep.subr.bf16.mxu0 %v6735_v42 }
0x1a0d   :  { %6039 = vrot.lane.b32.xlu0 %v7391_v59, %s6738_s21  ;;  %v3465_v59 = vpop.permute.xlu1 %3464 }
0x1a80   :  { %v3370_v8 = vpop.xlane.xlu0 %3369 }
0x1a81   :  { %6415 = vrcp.f32 %v3370_v8 }
0x1a84   :  { %v3367_v10 = vpop.xlane.xlu0 %3366 }
0x1a85   :  { %6417 = vrcp.f32 %v3367_v10 }
0x1a88   :  { %v6040_v51 = vpop.permute.xlu0 %6039 }
0x1a89   :  { %v6042_v22 = vunpack.i.h.bf16 %v6040_v51  ;;  %v6041_v19 = vunpack.i.l.bf16 %v6040_v51 }
0x1a8b   :  { %v5904_v61 = vpack.c.bf16 %v6042_v22, %v6041_v19  ;;  %v6416_v2 = vpop.eup %6415 }
0x1a8c   :  { %v3374_v1 = vmul.f32 %v6416_v2, %v6412_v47  ;;  %v6221_v47 = vld [vmem:[#allocation10 + $0x30] sm:$0xff]  }
0x1a8d   :  { %5906 = vmatprep.subr.msk.bf16.mxu1 %vm7050_vm4, %v5904_v61 }
0x1a8f   :  { %v6418_v26 = vpop.eup %6417 }
0x1a90   :  { %v3372_v6 = vmul.f32 %v6418_v26, %v6414_v7 }
0x1a92   :  { %5725 = vmatprep.mubr.msk.f32.mxu1 %vm783_vm5, %v3372_v6 }
0x1a93   :  { %5726 = vmatmul.mubr.msk.f32.vlgmr.msra.gmra.mrb[42].mxu1 %vm783_vm5, %v3374_v1 }
0x1a94   :  { %5909 = vmatpush3.bf16.xpose.msk.msra.mxu1 %vm7050_vm4, %v5904_v61  ;;  %5732 = vmatprep.mubr.msk.f32.mxu1 %vm691_vm3, %v3463_v20 }
0x1a9b   :  { %5733 = vmatmul.mubr.msk.f32.vlgmr.msra.gmra.mrb[44].mxu1 %vm691_vm3, %v3465_v59 }
0x1b66   :  { %v5727_v30 = vpop.f32.mrb[42].mxu1 }
0x1b67   :  { %v3453_v14 = vpop.f32.mrb[43].mxu1 }
0x1b68   :  { %v6053_v39 = vpack.i.bf16 %v5727_v30, %v3453_v14 }
0x1b6e   :  { %v5734_v27 = vpop.f32.mrb[44].mxu1 }
0x1b6f   :  { %v3554_v56 = vmul.f32 0.17677669, %v5734_v27  ;;  %v3544_v15 = vpop.f32.mrb[45].mxu1 }
0x1b70   :  { %v3553_v12 = vmul.f32 0.17677669, %v3544_v15 }
0x1b71   :  { %v3556_v53 = vadd.f32 %v7402_v35, %v3554_v56 }
0x1b72   :  { %v3555_v41 = vadd.f32 %v7406_v55, %v3553_v12 }
0x1b73   :  { %v3560_v5 = vsel %vm783_vm5, %v3556_v53, -inf }
0x1b74   :  { %3561 = vmax.xlane.f32.xlu1 %v3560_v5  ;;  %v3557_v49 = vsel %vm783_vm5, %v3555_v41, -inf }
0x1b75   :  { %3558 = vmax.xlane.f32.xlu0 %v3557_v49 }
0x1b85   :  { %6044 = vrot.lane.b32.xlu1 %v7389_v50, %s6738_s21 }
0x1b89   :  { %6054 = vrot.lane.b32.xlu1 %v6053_v39, %s6724_s6  ;;  %s7739_s6 = sld [smem:[#allocation32_spill]] }
0x1c01   :  { %v3562_v54 = vpop.xlane.xlu1 %3561 }
0x1c02   :  { %v3564_v23 = vsub.f32 %v3556_v53, %v3562_v54  ;;  %v3559_v52 = vpop.xlane.xlu0 %3558 }
0x1c03   :  { %v3563_v17 = vsub.f32 %v3555_v41, %v3559_v52  ;;  %v6225_v52 = vld [vmem:[#allocation12 + $0x4] ss:$16 sps:$4 sm:$0xff]  }
0x1c04   :  { %v3567_v18 = vmul.f32 1.442695, %v3564_v23  ;;  %v6223_v23 = vld [vmem:[#allocation12] ss:$16 sps:$4 sm:$0xff]  }
0x1c05   :  { %v3565_v63 = vmul.f32 1.442695, %v3563_v17  ;;  %v6045_v35 = vpop.permute.xlu1 %6044  ;;  %v6226_v17 = vld [vmem:[#allocation12 + $0x8] ss:$16 sps:$4 sm:$0xff]  }
0x1c06   :  { %v6047_v24 = vunpack.i.h.bf16 %v6045_v35  ;;  %v6046_v55 = vunpack.i.l.bf16 %v6045_v35  ;;  %v6229_v35 = vld [vmem:[#allocation12 + $0x20] ss:$16 sps:$4 sm:$0xff]  }
0x1c07   :  { %6419 = vpow2.f32 %v3565_v63  ;;  %v6231_v63 = vld [vmem:[#allocation12 + $0x24] ss:$16 sps:$4 sm:$0xff]  }
0x1c08   :  { %v5910_v36 = vpack.c.bf16 %v6047_v24, %v6046_v55  ;;  %6421 = vpow2.f32 %v3567_v18  ;;  %v6228_v18 = vld [vmem:[#allocation12 + $0xc] ss:$16 sps:$4 sm:$0xff]   ;;  %v6232_v24 = vld [vmem:[#allocation12 + $0x28] ss:$16 sps:$4 sm:$0xff]  }
0x1c09   :  { %v6055_v19 = vpop.permute.xlu1 %6054 }
0x1c0a   :  { %5911 = vmatprep.subr.bf16.mxu1 %v5910_v36  ;;  %v6057_v26 = vunpack.i.h.bf16 %v6055_v19  ;;  %v6056_v6 = vunpack.i.l.bf16 %v6055_v19  ;;  %v6267_v19 = vld [vmem:[#allocation12 + $0xe4] ss:$16 sps:$4 sm:$0xff]  }
0x1c0b   :  { %5913 = vmatpush3.bf16.msra.mxu1 %v5910_v36 }
0x1c0c   :  { %4066 = vmatprep.subr.bf16.mxu1 %v6225_v52  ;;  %v6273_v52 = vld [vmem:[#allocation13] sm:$0xff]  }
0x1c11   :  { %v6420_v21 = vpop.eup %6419 }
0x1c12   :  { %v3569_v58 = vsel %vm783_vm5, %v6420_v21, 0.0  ;;  %v6422_v50 = vpop.eup %6421 }
0x1c13   :  { %3570 = vadd.xlane.f32.xlu0 %v3569_v58  ;;  %v3572_v60 = vsel %vm783_vm5, %v6422_v50, 0.0 }
0x1c17   :  { %3573 = vadd.xlane.f32.xlu0 %v3572_v60 }
0x1c2d   :  { %6049 = vrot.lane.b32.xlu0 %v6048_v44, %s6738_s21  ;;  %v6219_v44 = vld [vmem:[#allocation10 + $0x20] sm:$0xff]  }
0x1c2e   :  { %5751 = vmatpush3.bf16.msra.mxu0 %v6219_v44  ;;  %v6247_v44 = vld [vmem:[#allocation12 + $0x80] ss:$16 sps:$4 sm:$0xff]  }
0x1c2f   :  { %5752 = vmatprep.subr.bf16.mxu0 %v6735_v42 }
0x1c32   :  { %5753 = vmatpush3.bf16.msra.mxu0 %v6220_v25  ;;  %v6250_v25 = vld [vmem:[#allocation12 + $0x88] ss:$16 sps:$4 sm:$0xff]  }
0x1c33   :  { %5754 = vmatprep.subr.bf16.mxu0 %v6735_v42 }
0x1c36   :  { %5755 = vmatpush3.bf16.msra.mxu0 %v6221_v47  ;;  %v6255_v47 = vld [vmem:[#allocation12 + $0xa4] ss:$16 sps:$4 sm:$0xff]  }
0x1c37   :  { %5756 = vmatprep.subr.bf16.mxu0 %v6735_v42 }
0x1c3a   :  { %5757 = vmatpush3.bf16.msra.mxu0 %v6222_v11  ;;  %v6258_v11 = vld [vmem:[#allocation12 + $0xac] ss:$16 sps:$4 sm:$0xff]  }
0x1c3b   :  { %4109 = vmatprep.subr.bf16.mxu0 %v6228_v18  ;;  %v6275_v18 = vld [vmem:[#allocation13 + $0x48] sm:$0xff]  }
0x1ca0   :  { %v3571_v37 = vpop.xlane.xlu0 %3570 }
0x1ca1   :  { %6423 = vrcp.f32 %v3571_v37  ;;  %v6237_v37 = vld [vmem:[#allocation12 + $0x44] ss:$16 sps:$4 sm:$0xff]  }
0x1ca4   :  { %v3574_v4 = vpop.xlane.xlu0 %3573 }
0x1ca5   :  { %6425 = vrcp.f32 %v3574_v4  ;;  %v6240_v4 = vld [vmem:[#allocation12 + $0x4c] ss:$16 sps:$4 sm:$0xff]  }
0x1ca8   :  { %v6050_v10 = vpop.permute.xlu0 %6049 }
0x1ca9   :  { %v6052_v51 = vunpack.i.h.bf16 %v6050_v10  ;;  %v6051_v22 = vunpack.i.l.bf16 %v6050_v10  ;;  %v6264_v10 = vld [vmem:[#allocation12 + $0xcc] ss:$16 sps:$4 sm:$0xff]  }
0x1cab   :  { %v6424_v13 = vpop.eup %6423  ;;  %v3691_v61 = vsel %vm691_vm3, %v7427_v3, %v6052_v51  ;;  %v3690_v2 = vsel %vm691_vm3, %v7429_v33, %v6051_v22  ;;  %v5215_v3 = vld [vmem:[%s7739_s6] ss:$0 sm:$0xff]  ;;  %v6262_v22 = vld [vmem:[#allocation12 + $0xc8] ss:$16 sps:$4 sm:$0xff]  }
0x1cac   :  { %v3576_v38 = vmul.f32 %v6424_v13, %v6420_v21  ;;  %v3692_v30 = vsel %vm1527_vm6, %v3690_v2, %v6056_v6  ;;  %v3693_v14 = vsel %vm1527_vm6, %v3691_v61, %v6057_v26  ;;  %v6235_v13 = vld [vmem:[#allocation12 + $0x40] ss:$16 sps:$4 sm:$0xff]   ;;  %v6268_v2 = vld [vmem:[#allocation12 + $0xe8] ss:$16 sps:$4 sm:$0xff]   ;;  %v6270_v26 = vld [vmem:[#allocation12 + $0xec] ss:$16 sps:$4 sm:$0xff]  }
0x1cad   :  { %v6259_v51 = vld [vmem:[#allocation12 + $0xc0] ss:$16 sps:$4 sm:$0xff]  }
0x1cae   :  { %5739 = vmatprep.mubr.msk.f32.mxu1 %vm783_vm5, %v3576_v38  ;;  %v6238_v38 = vld [vmem:[#allocation12 + $0x48] ss:$16 sps:$4 sm:$0xff]   ;;  %v6265_v61 = vld [vmem:[#allocation12 + $0xe0] ss:$16 sps:$4 sm:$0xff]  }
0x1caf   :  { %v6426_v40 = vpop.eup %6425 }
0x1cb0   :  { %v3578_v16 = vmul.f32 %v6426_v40, %v6422_v50  ;;  %v6243_v40 = vld [vmem:[#allocation12 + $0x64] ss:$16 sps:$4 sm:$0xff]  }
0x1cb2   :  { %5740 = vmatmul.mubr.msk.f32.vlgmr.msra.gmra.mrb[46].mxu1 %vm783_vm5, %v3578_v16  ;;  %v6246_v16 = vld [vmem:[#allocation12 + $0x6c] ss:$16 sps:$4 sm:$0xff]  }
0x1cb3   :  { %4098 = vmatprep.mubr.bf16.mxu1 %v6733_v0  ;;  %4067 = vmatpush1.bf16.msra.mxu1 %v6223_v23  ;;  %v6272_v23 = vld [vmem:[#allocation13 + $0xc0] sm:$0xff]  }
0x1cb4   :  { %4068 = vmatprep.subr.bf16.mxu1 %v6231_v63  ;;  %v6276_v63 = vld [vmem:[#allocation13 + $0xc8] sm:$0xff]  }
0x1cb7   :  { %4069 = vmatpush1.bf16.msra.mxu1 %v6229_v35  ;;  %v6278_v35 = vld [vmem:[#allocation13 + $0x88] sm:$0xff]  }
0x1cb8   :  { %4070 = vmatprep.subr.bf16.mxu1 %v6237_v37  ;;  %v6288_v37 = vld [vmem:[#allocation13 + $0xe0] sm:$0xff]  }
0x1cbb   :  { %4071 = vmatpush1.bf16.msra.mxu1 %v6235_v13  ;;  %v6290_v13 = vld [vmem:[#allocation13 + $0xa0] sm:$0xff]  }
0x1cbc   :  { %4072 = vmatprep.subr.bf16.mxu1 %v6243_v40  ;;  %v6292_v40 = vld [vmem:[#allocation13 + $0xe8] sm:$0xff]  }
0x1cbf   :  { %4073 = vmatpush1.bf16.msra.mxu1 %v6241_v43  ;;  %v6294_v43 = vld [vmem:[#allocation13 + $0xa8] sm:$0xff]  }
0x1cc0   :  { %4074 = vmatprep.subr.bf16.mxu1 %v6249_v46  ;;  %v6296_v46 = vld [vmem:[#allocation13 + $0xf0] sm:$0xff]  }
0x1cc3   :  { %4075 = vmatpush1.bf16.msra.mxu1 %v6247_v44  ;;  %v6298_v44 = vld [vmem:[#allocation13 + $0xb0] sm:$0xff]  }
0x1cc4   :  { %4076 = vmatprep.subr.bf16.mxu1 %v6255_v47  ;;  %v6300_v47 = vld [vmem:[#allocation13 + $0xf8] sm:$0xff]  }
0x1d85   :  { %v5741_v7 = vpop.f32.mrb[46].mxu1 }
0x1d86   :  { %v3657_v34 = vpop.f32.mrb[47].mxu1 }
0x1d87   :  { %v6058_v8 = vpack.i.bf16 %v5741_v7, %v3657_v34  ;;  %v6253_v7 = vld [vmem:[#allocation12 + $0xa0] ss:$16 sps:$4 sm:$0xff]   ;;  %v6256_v34 = vld [vmem:[#allocation12 + $0xa8] ss:$16 sps:$4 sm:$0xff]  }
0x1d88   :  { %4077 = vmatpush1.bf16.msra.mxu1 %v6253_v7  ;;  %v6302_v7 = vld [vmem:[#allocation13 + $0xb8] sm:$0xff]  }
0x1d89   :  { %6059 = vrot.lane.b32.xlu1 %v6058_v8, %s6737_s9  ;;  %v6261_v8 = vld [vmem:[#allocation12 + $0xc4] ss:$16 sps:$4 sm:$0xff]  }
0x1d8a   :  { %4078 = vmatprep.subr.bf16.mxu1 %v6261_v8 }
0x1d8c   :  { %4079 = vmatpush1.bf16.msra.mxu1 %v6259_v51 }
0x1d8d   :  { %4080 = vmatprep.subr.bf16.mxu1 %v6267_v19 }
0x1d90   :  { %4081 = vmatpush1.bf16.msra.mxu1 %v6265_v61 }
0x1dfb   :  { %v6060_v1 = vpop.permute.xlu1 %6059 }
0x1dfc   :  { %v6062_v20 = vunpack.i.h.bf16 %v6060_v1  ;;  %v6061_v59 = vunpack.i.l.bf16 %v6060_v1 }
0x1dfe   :  { %v3694_v39 = vsel %vm1530_vm7, %v3692_v30, %v6061_v59  ;;  %v3695_v27 = vsel %vm1530_vm7, %v3693_v14, %v6062_v20 }
0x1dff   :  { %v3696_v56 = vpack.c.bf16 %v3695_v27, %v3694_v39 }
0x1e01   :  { %5759 = vmatmul.mubr.bf16.vlgmr.msra.gmra.mrb[24].mxu0 %v3696_v56  ;;  %v5224_v56 = vld [vmem:[%s7740_s26] ss:$0 sm:$0xff] }
0x1e02   :  { %4141 = vmatprep.mubr.bf16.mxu0 %v6733_v0  ;;  %v6234_v0 = vld [vmem:[#allocation12 + $0x2c] ss:$16 sps:$4 sm:$0xff]   ;;  %4110 = vmatpush1.bf16.msra.mxu0 %v6226_v17  ;;  %v6274_v17 = vld [vmem:[#allocation13 + $0x80] sm:$0xff]  }
0x1e03   :  { %4111 = vmatprep.subr.bf16.mxu0 %v6234_v0  ;;  %v6277_v0 = vld [vmem:[#allocation13 + $0x8] sm:$0xff]  }
0x1e06   :  { %4112 = vmatpush1.bf16.msra.mxu0 %v6232_v24  ;;  %v6279_v24 = vld [vmem:[#allocation13 + $0x50] sm:$0xff]  }
0x1e07   :  { %4113 = vmatprep.subr.bf16.mxu0 %v6240_v4  ;;  %v6289_v4 = vld [vmem:[#allocation13 + $0x20] sm:$0xff]  }
0x1e0a   :  { %4114 = vmatpush1.bf16.msra.mxu0 %v6238_v38  ;;  %v6291_v38 = vld [vmem:[#allocation13 + $0x68] sm:$0xff]  }
0x1e0b   :  { %4115 = vmatprep.subr.bf16.mxu0 %v6246_v16  ;;  %v6293_v16 = vld [vmem:[#allocation13 + $0x28] sm:$0xff]  }
0x1e0e   :  { %4116 = vmatpush1.bf16.msra.mxu0 %v6244_v45  ;;  %v6295_v45 = vld [vmem:[#allocation13 + $0x70] sm:$0xff]  }
0x1e0f   :  { %4117 = vmatprep.subr.bf16.mxu0 %v6252_v57  ;;  %v6297_v57 = vld [vmem:[#allocation13 + $0x30] sm:$0xff]  }
0x1e12   :  { %4118 = vmatpush1.bf16.msra.mxu0 %v6250_v25  ;;  %v6299_v25 = vld [vmem:[#allocation13 + $0x78] sm:$0xff]  }
0x1e13   :  { %4119 = vmatprep.subr.bf16.mxu0 %v6258_v11  ;;  %v6301_v11 = vld [vmem:[#allocation13 + $0x38] sm:$0xff]  }
0x1e16   :  { %4120 = vmatpush1.bf16.msra.mxu0 %v6256_v34  ;;  %v3884_v34 = vld [vmem:[%s7742_s1] sm:$0xf] }
0x1e17   :  { %4121 = vmatprep.subr.bf16.mxu0 %v6264_v10  ;;  %v3889_v8 = vrot.slane %v3884_v34, %v7030_v29  ;;  %v3897_v10 = vrot.slane %v3884_v34, %v7034_v31  ;;  %v3893_v51 = vrot.slane %v3884_v34, %v7037_v32 }
0x1e1a   :  { %4122 = vmatpush1.bf16.msra.mxu0 %v6262_v22  ;;  %v3901_v22 = vrot.slane %v3884_v34, %v1737_v48 }
0x1e1b   :  { %4123 = vmatprep.subr.bf16.mxu0 %v6270_v26 }
0x1e1e   :  { %4124 = vmatpush1.bf16.msra.mxu0 %v6268_v2 }
0x1e1f   :  { %5495 = vmatprep.subr.bf16.mxu0 %v6272_v23 }
0x1ed4   :  { %v3802_v15 = vpop.f32.mrb[24].mxu0 }
0x1ed5   :  { %v3803_v33 = vadd.f32 %v5215_v3, %v3802_v15  ;;  %v5760_v12 = vpop.f32.mrb[25].mxu0 }
0x1ed6   :  { %v3805_v53 = vpop.f32.mrb[26].mxu0  ;;  %v5225_v12 = vld [vmem:[%s7741_s28] ss:$0 sm:$0xff] }
0x1ed7   :  { %v3806_v41 = vadd.f32 %v5215_v3, %v3805_v53  ;;  %v5761_v5 = vpop.f32.mrb[27].mxu0  ;;  %v3809_v49 = vadd.f32 %v3803_v33, %v7373_v62 }
0x1ed9   :  { %3813 = vadd.xlane.f32.xlu0 %v3809_v49  ;;  %v3810_v54 = vadd.f32 %v3806_v41, %v7375_v9 }
0x1edb   :  { %3815 = vadd.xlane.f32.xlu1 %v3810_v54 }
0x1f66   :  { %v3814_v62 = vpop.xlane.xlu0 %3813 }
0x1f67   :  { %v3817_v55 = vmul.f32 0.0078125, %v3814_v62  ;;  %v6280_v62 = vld [vmem:[#allocation13 + $0xd0] sm:$0xff]  }
0x1f68   :  { %v3816_v9 = vpop.xlane.xlu1 %3815 }
0x1f69   :  { %v7517_v36 = vsub.f32 %v3809_v49, %v3817_v55  ;;  %v3818_v21 = vmul.f32 0.0078125, %v3816_v9  ;;  %v6281_v55 = vld [vmem:[#allocation13 + $0x10] sm:$0xff]  }
0x1f6a   :  { %v6282_v9 = vld [vmem:[#allocation13 + $0x90] sm:$0xff]  }
0x1f6b   :  { %v7519_v58 = vsub.f32 %v3810_v54, %v3818_v21  ;;  %v3821_v50 = vmul.f32 %v7517_v36, %v7517_v36  ;;  %v6271_v54 = vld [vmem:[#allocation13 + $0x40] sm:$0xff]   ;;  %v6284_v21 = vld [vmem:[#allocation13 + $0xd8] sm:$0xff]  }
0x1f6c   :  { %5473 = vmatprep.subr.bf16.mxu1 %v6271_v54 }
0x1f6d   :  { %3823 = vadd.xlane.f32.xlu0 %v3821_v50  ;;  %v3822_v60 = vmul.f32 %v7519_v58, %v7519_v58  ;;  %v6286_v50 = vld [vmem:[#allocation13 + $0x98] sm:$0xff]  }
0x1f71   :  { %3825 = vadd.xlane.f32.xlu0 %v3822_v60  ;;  %v6287_v60 = vld [vmem:[#allocation13 + $0x60] sm:$0xff]  }
0x1ffa   :  { %v3824_v6 = vpop.xlane.xlu0 %3823 }
0x1ffb   :  { %v3827_v1 = vmul.f32 0.0078125, %v3824_v6 }
0x1ffd   :  { %v3829_v20 = vadd.f32 1e-12, %v3827_v1 }
0x1ffe   :  { %v3826_v59 = vpop.xlane.xlu0 %3825 }
0x1fff   :  { %6427 = vrsqrt.f32 %v3829_v20  ;;  %v3828_v30 = vmul.f32 0.0078125, %v3826_v59 }
0x2001   :  { %v3830_v14 = vadd.f32 1e-12, %v3828_v30 }
0x2003   :  { %6429 = vrsqrt.f32 %v3830_v14 }
0x2009   :  { %v6428_v39 = vpop.eup %6427 }
0x200a   :  { %v3833_v27 = vmul.f32 %v6428_v39, %v7517_v36  ;;  %v6283_v36 = vld [vmem:[#allocation13 + $0x58] sm:$0xff]  }
0x200c   :  { %v3841_v33 = vmul.f32 %v5224_v56, %v3833_v27 }
0x200d   :  { %v6430_v3 = vpop.eup %6429 }
0x200e   :  { %v3834_v15 = vmul.f32 %v6430_v3, %v7519_v58  ;;  %v7529_v41 = vadd.f32 %v5225_v12, %v3841_v33  ;;  %v6285_v58 = vld [vmem:[#allocation13 + $0x18] sm:$0xff]  }
0x2010   :  { %v3842_v53 = vmul.f32 %v5224_v56, %v3834_v15 }
0x2012   :  { %v7531_v5 = vadd.f32 %v5225_v12, %v3842_v53 }
0x2014   :  { %v3851_v49 = vpack.c.bf16 %v7531_v5, %v7529_v41 }
0x2016   :  { %4099 = vmatmul.mubr.bf16.vlgmr.msra.gmra.mrb[48].mxu1 %v3851_v49  ;;  %4142 = vmatmul.mubr.bf16.vlgmr.msra.gmra.mrb[28].mxu0 %v3851_v49 }
0x2017   :  { %5474 = vmatpush3.bf16.msra.mxu1 %v6273_v52  ;;  %5496 = vmatpush3.bf16.msra.mxu0 %v6274_v17 }
0x2018   :  { %5475 = vmatprep.subr.bf16.mxu1 %v6275_v18  ;;  %5497 = vmatprep.subr.bf16.mxu0 %v6276_v63 }
0x201b   :  { %5476 = vmatpush3.bf16.msra.mxu1 %v6277_v0  ;;  %5498 = vmatpush3.bf16.msra.mxu0 %v6278_v35 }
0x201c   :  { %5477 = vmatprep.subr.bf16.mxu1 %v6279_v24  ;;  %5499 = vmatprep.subr.bf16.mxu0 %v6280_v62 }
0x201f   :  { %5478 = vmatpush3.bf16.msra.mxu1 %v6281_v55  ;;  %5500 = vmatpush3.bf16.msra.mxu0 %v6282_v9 }
0x2020   :  { %5479 = vmatprep.subr.bf16.mxu1 %v6283_v36  ;;  %5501 = vmatprep.subr.bf16.mxu0 %v6284_v21 }
0x2023   :  { %5480 = vmatpush3.bf16.msra.mxu1 %v6285_v58  ;;  %5502 = vmatpush3.bf16.msra.mxu0 %v6286_v50 }
0x2024   :  { %5481 = vmatprep.subr.bf16.mxu1 %v6287_v60  ;;  %5503 = vmatprep.subr.bf16.mxu0 %v6288_v37 }
0x2027   :  { %5482 = vmatpush3.bf16.msra.mxu1 %v6289_v4  ;;  %5504 = vmatpush3.bf16.msra.mxu0 %v6290_v13 }
0x2028   :  { %5483 = vmatprep.subr.bf16.mxu1 %v6291_v38  ;;  %5505 = vmatprep.subr.bf16.mxu0 %v6292_v40 }
0x202b   :  { %5484 = vmatpush3.bf16.msra.mxu1 %v6293_v16  ;;  %5506 = vmatpush3.bf16.msra.mxu0 %v6294_v43 }
0x202c   :  { %5485 = vmatprep.subr.bf16.mxu1 %v6295_v45  ;;  %5507 = vmatprep.subr.bf16.mxu0 %v6296_v46 }
0x202f   :  { %5486 = vmatpush3.bf16.msra.mxu1 %v6297_v57  ;;  %5508 = vmatpush3.bf16.msra.mxu0 %v6298_v44 }
0x2030   :  { %5487 = vmatprep.subr.bf16.mxu1 %v6299_v25  ;;  %5509 = vmatprep.subr.bf16.mxu0 %v6300_v47 }
0x2033   :  { %5488 = vmatpush3.bf16.msra.mxu1 %v6301_v11  ;;  %5510 = vmatpush3.bf16.msra.mxu0 %v6302_v7 }
0x2034   :  { %5762 = vmatprep.subr.bf16.mxu1 %v6735_v42  ;;  %5782 = vmatprep.subr.bf16.mxu0 %v6735_v42 }
0x20e9   :  { %v4100_v19 = vpop.f32.mrb[48].mxu1  ;;  %v4143_v61 = vpop.f32.mrb[28].mxu0 }
0x20ea   :  { %v7543_v2 = vadd.f32 %v4100_v19, %v3889_v8  ;;  %v7545_v26 = vadd.f32 %v4143_v61, %v3897_v10  ;;  %v4102_v6 = vpop.f32.mrb[49].mxu1  ;;  %v4145_v1 = vpop.f32.mrb[29].mxu0 }
0x20eb   :  { %v7547_v20 = vadd.f32 %v4102_v6, %v3893_v51  ;;  %v7549_v59 = vadd.f32 %v4145_v1, %v3901_v22  ;;  %v4104_v29 = vpop.f32.mrb[50].mxu1  ;;  %v4147_v30 = vpop.f32.mrb[30].mxu0 }
0x20ec   :  { %v7552_v31 = vmul.f32 0.70710677, %v7543_v2  ;;  %v7555_v28 = vmul.f32 0.70710677, %v7545_v26  ;;  %v4106_v54 = vpop.f32.mrb[51].mxu1  ;;  %v4149_v23 = vpop.f32.mrb[31].mxu0  ;;  %v7567_v17 = vadd.f32 %v4104_v29, %v3889_v8  ;;  %v7569_v18 = vadd.f32 %v4147_v30, %v3897_v10 }
0x20ed   :  { %v7558_v32 = vmul.f32 0.70710677, %v7547_v20  ;;  %v7561_v48 = vmul.f32 0.70710677, %v7549_v59  ;;  %v7574_v35 = vadd.f32 %v4106_v54, %v3893_v51  ;;  %v7580_v9 = vadd.f32 %v4149_v23, %v3901_v22 }
0x20ee   :  { %v4168_v14 = vand.u32 2147483647, %v7552_v31  ;;  %v4170_v39 = vand.u32 2147483647, %v7555_v28  ;;  %v7572_v0 = vmul.f32 0.70710677, %v7567_v17 }
0x20ef   :  { %v4169_v27 = vand.u32 2147483647, %v7558_v32  ;;  %v4171_v56 = vand.u32 2147483647, %v7561_v48  ;;  %v7577_v62 = vmul.f32 0.70710677, %v7569_v18 }
0x20f0   :  { %v4176_v3 = vmul.f32 0.3275911, %v4168_v14  ;;  %v4178_v15 = vmul.f32 0.3275911, %v4170_v39  ;;  %v4280_v24 = vsub.f32 0.0, %v4168_v14  ;;  %v4282_v36 = vsub.f32 0.0, %v4170_v39 }
0x20f1   :  { %v4177_v33 = vmul.f32 0.3275911, %v4169_v27  ;;  %v4179_v49 = vmul.f32 0.3275911, %v4171_v56  ;;  %v4172_v55 = vand.u32 2147483647, %v7572_v0 }
0x20f2   :  { %v4184_v12 = vadd.f32 1.0, %v4176_v3  ;;  %v4186_v53 = vadd.f32 1.0, %v4178_v15  ;;  %v4281_v21 = vsub.f32 0.0, %v4169_v27  ;;  %v4174_v58 = vand.u32 2147483647, %v7577_v62 }
0x20f3   :  { %v4185_v52 = vadd.f32 1.0, %v4177_v33  ;;  %v4187_v63 = vadd.f32 1.0, %v4179_v49  ;;  %v7584_v50 = vmul.f32 0.70710677, %v7574_v35  ;;  %v4283_v60 = vsub.f32 0.0, %v4171_v56 }
0x20f4   :  { %6431 = vrcp.f32 %v4184_v12  ;;  %v4180_v37 = vmul.f32 0.3275911, %v4172_v55  ;;  %v4288_v4 = vmul.f32 %v4280_v24, %v4168_v14  ;;  %v4182_v13 = vmul.f32 0.3275911, %v4174_v58 }
0x20f5   :  { %6433 = vrcp.f32 %v4186_v53  ;;  %v4173_v38 = vand.u32 2147483647, %v7584_v50  ;;  %v7588_v16 = vmul.f32 0.70710677, %v7580_v9  ;;  %v4290_v43 = vmul.f32 %v4282_v36, %v4170_v39 }
0x20f6   :  { %6435 = vrcp.f32 %v4185_v52  ;;  %v4188_v40 = vadd.f32 1.0, %v4180_v37  ;;  %v4289_v45 = vmul.f32 %v4281_v21, %v4169_v27  ;;  %v4190_v46 = vadd.f32 1.0, %v4182_v13 }
0x20f7   :  { %6437 = vrcp.f32 %v4187_v63  ;;  %v4181_v57 = vmul.f32 0.3275911, %v4173_v38  ;;  %v4291_v25 = vmul.f32 %v4283_v60, %v4171_v56  ;;  %v4284_v47 = vsub.f32 0.0, %v4172_v55 }
0x20f8   :  { %6439 = vrcp.f32 %v4188_v40  ;;  %v7593_v11 = vand.u32 2147483647, %v7588_v16  ;;  %v4296_v8 = vmul.f32 1.442695, %v4288_v4  ;;  %v4286_v22 = vsub.f32 0.0, %v4174_v58 }
0x20f9   :  { %6441 = vrcp.f32 %v4190_v46  ;;  %v4189_v10 = vadd.f32 1.0, %v4181_v57  ;;  %v4300_v6 = vmul.f32 1.442695, %v4290_v43  ;;  %v4292_v30 = vmul.f32 %v4284_v47, %v4172_v55 }
0x20fa   :  { %v4183_v19 = vmul.f32 0.3275911, %v7593_v11  ;;  %v4298_v56 = vmul.f32 1.442695, %v4289_v45  ;;  %v4302_v3 = vmul.f32 1.442695, %v4291_v25  ;;  %v4294_v12 = vmul.f32 %v4286_v22, %v4174_v58 }
0x20fb   :  { %6443 = vrcp.f32 %v4189_v10  ;;  %v4285_v53 = vsub.f32 0.0, %v4173_v38  ;;  %v4304_v63 = vmul.f32 1.442695, %v4292_v30  ;;  %v4287_v25 = vsub.f32 0.0, %v7593_v11 }
0x20fc   :  { %v4191_v14 = vadd.f32 1.0, %v4183_v19  ;;  %6445 = vpow2.f32 %v4296_v8  ;;  %v4308_v58 = vmul.f32 1.442695, %v4294_v12  ;;  %vm4328_vm0 = vcmp.ge.f32.partialorder %v7552_v31, 0.0 }
0x20fd   :  { %v4293_v37 = vmul.f32 %v4285_v53, %v4173_v38  ;;  %vm4330_vm1 = vcmp.ge.f32.partialorder %v7555_v28, 0.0  ;;  %vm4329_vm3 = vcmp.ge.f32.partialorder %v7558_v32, 0.0  ;;  %vm4332_vm4 = vcmp.ge.f32.partialorder %v7572_v0, 0.0 }
0x20fe   :  { %v7590_v44 = vpop.eup %6431  ;;  %6447 = vrcp.f32 %v4191_v14  ;;  %vm4334_vm5 = vcmp.ge.f32.partialorder %v7577_v62, 0.0  ;;  %vm4333_vm6 = vcmp.ge.f32.partialorder %v7584_v50, 0.0  ;;  %vm4331_vm7 = vcmp.ge.f32.partialorder %v7561_v48, 0.0 }
0x20ff   :  { %v7595_v7 = vpop.eup %6433  ;;  %v4208_v34 = vmul.f32 1.0614054, %v7590_v44  ;;  %6449 = vpow2.f32 %v4300_v6  ;;  %v4306_v19 = vmul.f32 1.442695, %v4293_v37  ;;  %vm4335_vm8 = vcmp.ge.f32.partialorder %v7588_v16, 0.0 }
0x2100   :  { %v4210_v51 = vmul.f32 1.0614054, %v7595_v7  ;;  %v7600_v1 = vpop.eup %6435  ;;  %6451 = vpow2.f32 %v4298_v56  ;;  %v4159_v48 = vmul.f32 0.5, %v7580_v9 }
0x2101   :  { %v4216_v61 = vadd.f32 -1.4531521, %v4208_v34  ;;  %v4209_v27 = vmul.f32 1.0614054, %v7600_v1  ;;  %v7604_v15 = vpop.eup %6437  ;;  %6453 = vpow2.f32 %v4302_v3  ;;  %v4295_v3 = vmul.f32 %v4287_v25, %v7593_v11 }
0x2102   :  { %v4218_v29 = vadd.f32 -1.4531521, %v4210_v51  ;;  %v4211_v23 = vmul.f32 1.0614054, %v7604_v15  ;;  %v7610_v21 = vpop.eup %6439  ;;  %6455 = vpow2.f32 %v4304_v63 }
0x2103   :  { %v4224_v39 = vmul.f32 %v7590_v44, %v4216_v61  ;;  %v4217_v54 = vadd.f32 -1.4531521, %v4209_v27  ;;  %v7613_v4 = vpop.eup %6441  ;;  %v4212_v45 = vmul.f32 1.0614054, %v7610_v21  ;;  %6457 = vpow2.f32 %v4308_v58 }
0x2104   :  { %v4226_v33 = vmul.f32 %v7595_v7, %v4218_v29  ;;  %v4219_v36 = vadd.f32 -1.4531521, %v4211_v23  ;;  %v4214_v57 = vmul.f32 1.0614054, %v7613_v4  ;;  %6459 = vpow2.f32 %v4306_v19 }
0x2105   :  { %v4232_v49 = vadd.f32 1.4214138, %v4224_v39  ;;  %v4225_v55 = vmul.f32 %v7600_v1, %v4217_v54  ;;  %v4220_v38 = vadd.f32 -1.4531521, %v4212_v45  ;;  %v7621_v10 = vpop.eup %6443 }
0x2106   :  { %v4234_v52 = vadd.f32 1.4214138, %v4226_v33  ;;  %v4227_v43 = vmul.f32 %v7604_v15, %v4219_v36  ;;  %v4222_v22 = vadd.f32 -1.4531521, %v4214_v57  ;;  %v6446_v14 = vpop.eup %6445  ;;  %v4213_v56 = vmul.f32 1.0614054, %v7621_v10 }
0x2107   :  { %v4240_v24 = vmul.f32 %v7590_v44, %v4232_v49  ;;  %v4233_v40 = vadd.f32 1.4214138, %v4225_v55  ;;  %v4228_v30 = vmul.f32 %v7610_v21, %v4220_v38 }
0x2108   :  { %v4242_v60 = vmul.f32 %v7595_v7, %v4234_v52  ;;  %v4235_v8 = vadd.f32 1.4214138, %v4227_v43  ;;  %v4230_v27 = vmul.f32 %v7613_v4, %v4222_v22  ;;  %v7629_v33 = vpop.eup %6447 }
0x2109   :  { %v4248_v13 = vadd.f32 -0.28449672, %v4240_v24  ;;  %v4241_v34 = vmul.f32 %v7600_v1, %v4233_v40  ;;  %v4236_v54 = vadd.f32 1.4214138, %v4228_v30  ;;  %v6450_v23 = vpop.eup %6449  ;;  %v4221_v24 = vadd.f32 -1.4531521, %v4213_v56 }
0x210a   :  { %v4250_v46 = vadd.f32 -0.28449672, %v4242_v60  ;;  %v4243_v29 = vmul.f32 %v7604_v15, %v4235_v8  ;;  %v4238_v63 = vadd.f32 1.4214138, %v4230_v27  ;;  %v4215_v55 = vmul.f32 1.0614054, %v7629_v33  ;;  %v6452_v36 = vpop.eup %6451 }
0x210b   :  { %v4256_v47 = vmul.f32 %v7590_v44, %v4248_v13  ;;  %v4249_v6 = vadd.f32 -0.28449672, %v4241_v34  ;;  %v4244_v37 = vmul.f32 %v7610_v21, %v4236_v54  ;;  %v6454_v13 = vpop.eup %6453  ;;  %v4229_v43 = vmul.f32 %v7621_v10, %v4221_v24 }
0x210c   :  { %v4258_v51 = vmul.f32 %v7595_v7, %v4250_v46  ;;  %v4251_v49 = vadd.f32 -0.28449672, %v4243_v29  ;;  %v4246_v40 = vmul.f32 %v7613_v4, %v4238_v63  ;;  %v4223_v45 = vadd.f32 -1.4531521, %v4215_v55  ;;  %v6456_v25 = vpop.eup %6455 }
0x210d   :  { %v4264_v61 = vadd.f32 0.2548296, %v4256_v47  ;;  %v4257_v53 = vmul.f32 %v7600_v1, %v4249_v6  ;;  %v4252_v57 = vadd.f32 -0.28449672, %v4244_v37  ;;  %v4237_v34 = vadd.f32 1.4214138, %v4229_v43  ;;  %v6458_v6 = vpop.eup %6457 }
0x210e   :  { %v4266_v39 = vadd.f32 0.2548296, %v4258_v51  ;;  %v4259_v11 = vmul.f32 %v7604_v15, %v4251_v49  ;;  %v4254_v47 = vadd.f32 -0.28449672, %v4246_v40  ;;  %v4231_v8 = vmul.f32 %v7629_v33, %v4223_v45 }
0x210f   :  { %v4272_v12 = vmul.f32 %v7590_v44, %v4264_v61  ;;  %v4265_v58 = vadd.f32 0.2548296, %v4257_v53  ;;  %v4260_v22 = vmul.f32 %v7610_v21, %v4252_v57  ;;  %v4310_v61 = vmul.f32 1.442695, %v4295_v3 }
0x2110   :  { %v4274_v52 = vmul.f32 %v7595_v7, %v4266_v39  ;;  %v4267_v46 = vadd.f32 0.2548296, %v4259_v11  ;;  %v4262_v30 = vmul.f32 %v7613_v4, %v4254_v47  ;;  %v4152_v56 = vmul.f32 0.5, %v7543_v2  ;;  %v6460_v11 = vpop.eup %6459 }
0x2111   :  { %v4312_v60 = vmul.f32 %v6446_v14, %v4272_v12  ;;  %v4273_v7 = vmul.f32 %v7600_v1, %v4265_v58  ;;  %v4245_v14 = vmul.f32 %v7621_v10, %v4237_v34  ;;  %v4239_v1 = vadd.f32 1.4214138, %v4231_v8 }
0x2112   :  { %v4314_v44 = vmul.f32 %v6450_v23, %v4274_v52  ;;  %v4275_v39 = vmul.f32 %v7604_v15, %v4267_v46  ;;  %v4268_v27 = vadd.f32 0.2548296, %v4260_v22  ;;  %v4270_v19 = vadd.f32 0.2548296, %v4262_v30 }
0x2113   :  { %v4320_v38 = vsub.f32 1.0, %v4312_v60  ;;  %v4313_v29 = vmul.f32 %v6452_v36, %v4273_v7  ;;  %v4253_v12 = vadd.f32 -0.28449672, %v4245_v14  ;;  %6461 = vpow2.f32 %v4310_v61 }
0x2114   :  { %v4322_v51 = vsub.f32 1.0, %v4314_v44  ;;  %v4276_v54 = vmul.f32 %v7610_v21, %v4268_v27  ;;  %v4278_v23 = vmul.f32 %v7613_v4, %v4270_v19  ;;  %v4247_v63 = vmul.f32 %v7629_v33, %v4239_v1 }
0x2115   :  { %v4336_v53 = vsub.f32 0.0, %v4320_v38  ;;  %v4321_v3 = vsub.f32 1.0, %v4313_v29  ;;  %v4261_v52 = vmul.f32 %v7621_v10, %v4253_v12  ;;  %v4154_v24 = vmul.f32 0.5, %v7545_v26 }
0x2116   :  { %v4338_v49 = vsub.f32 0.0, %v4322_v51  ;;  %v4153_v15 = vmul.f32 0.5, %v7547_v20  ;;  %v4315_v55 = vmul.f32 %v6454_v13, %v4275_v39  ;;  %v4316_v2 = vmul.f32 %v6456_v25, %v4276_v54 }
0x2117   :  { %v4318_v36 = vmul.f32 %v6458_v6, %v4278_v23  ;;  %v4269_v60 = vadd.f32 0.2548296, %v4261_v52  ;;  %v4255_v58 = vadd.f32 -0.28449672, %v4247_v63  ;;  %v4344_v21 = vsel %vm4328_vm0, %v4320_v38, %v4336_v53 }
0x2118   :  { %v4324_v4 = vsub.f32 1.0, %v4316_v2  ;;  %v4346_v37 = vsel %vm4330_vm1, %v4322_v51, %v4338_v49  ;;  %v4337_v44 = vsub.f32 0.0, %v4321_v3  ;;  %v4323_v20 = vsub.f32 1.0, %v4315_v55  ;;  %v5258_v55 = vld [vmem:[%s7743_s13] ss:$0 sm:$0xff] }
0x2119   :  { %v4326_v40 = vsub.f32 1.0, %v4318_v36  ;;  %v4277_v26 = vmul.f32 %v7621_v10, %v4269_v60  ;;  %v4156_v13 = vmul.f32 0.5, %v7567_v17  ;;  %v4263_v31 = vmul.f32 %v7629_v33, %v4255_v58 }
0x211a   :  { %v4340_v43 = vsub.f32 0.0, %v4324_v4  ;;  %v4352_v45 = vadd.f32 1.0, %v4344_v21  ;;  %v4354_v46 = vadd.f32 1.0, %v4346_v37  ;;  %v4345_v47 = vsel %vm4329_vm3, %v4321_v3, %v4337_v44 }
0x211b   :  { %v4342_v7 = vsub.f32 0.0, %v4326_v40  ;;  %v4317_v28 = vmul.f32 %v6460_v11, %v4277_v26  ;;  %v4271_v25 = vadd.f32 0.2548296, %v4263_v31  ;;  %v4339_v38 = vsub.f32 0.0, %v4323_v20  ;;  %v6303_v31 = vld [vmem:[#allocation15] sm:$0xff]  }
0x211c   :  { %v4348_v57 = vsel %vm4332_vm4, %v4324_v4, %v4340_v43  ;;  %v4158_v51 = vmul.f32 0.5, %v7569_v18  ;;  %v4360_v61 = vmul.f32 %v4352_v45, %v4152_v56  ;;  %v4362_v62 = vmul.f32 %v4354_v46, %v4154_v24  ;;  %v6304_v45 = vld [vmem:[#allocation15 + $0x8] sm:$0xff]  }
0x211d   :  { %v4356_v10 = vadd.f32 1.0, %v4348_v57  ;;  %v4350_v34 = vsel %vm4334_vm5, %v4326_v40, %v4342_v7  ;;  %v4325_v8 = vsub.f32 1.0, %v4317_v28  ;;  %v6462_v17 = vpop.eup %6461  ;;  %v4279_v0 = vmul.f32 %v7629_v33, %v4271_v25 }
0x211e   :  { %v4358_v22 = vadd.f32 1.0, %v4350_v34  ;;  %v4353_v30 = vadd.f32 1.0, %v4345_v47  ;;  %v4157_v39 = vmul.f32 0.5, %v7574_v35  ;;  %v4347_v19 = vsel %vm4331_vm7, %v4323_v20, %v4339_v38  ;;  %v6306_v34 = vld [vmem:[#allocation15 + $0x18] sm:$0xff]   ;;  %v6309_v38 = vld [vmem:[#allocation15 + $0x30] sm:$0xff]  }
0x211f   :  { %v4364_v6 = vmul.f32 %v4356_v10, %v4156_v13  ;;  %v4341_v29 = vsub.f32 0.0, %v4325_v8  ;;  %v4319_v32 = vmul.f32 %v6462_v17, %v4279_v0  ;;  %v4355_v54 = vadd.f32 1.0, %v4347_v19  ;;  %v6308_v17 = vld [vmem:[#allocation15 + $0x28] sm:$0xff]  }
0x2120   :  { %v4366_v14 = vmul.f32 %v4358_v22, %v4158_v51  ;;  %v4361_v33 = vmul.f32 %v4353_v30, %v4153_v15  ;;  %v4155_v23 = vmul.f32 0.5, %v7549_v59  ;;  %v6310_v51 = vld [vmem:[#allocation15 + $0x38] sm:$0xff]   ;;  %v6311_v22 = vld [vmem:[%s6912_s19] sm:$0xff]   ;;  %v6312_v0 = vld [vmem:[%s6912_s19 + $0x8] sm:$0xff]  }
0x2121   :  { %v4368_v1 = vpack.c.bf16 %v4364_v6, %v4360_v61  ;;  %v4349_v27 = vsel %vm4333_vm6, %v4325_v8, %v4341_v29  ;;  %v4327_v53 = vsub.f32 1.0, %v4319_v32  ;;  %v6307_v8 = vld [vmem:[#allocation15 + $0x20] sm:$0xff]   ;;  %v6313_v61 = vld [vmem:[%s6912_s19 + $0x10] sm:$0xff]   ;;  %v6314_v6 = vld [vmem:[%s6912_s19 + $0x18] sm:$0xff]  }
0x2122   :  { %v4370_v18 = vpack.c.bf16 %v4366_v14, %v4362_v62  ;;  %v4357_v12 = vadd.f32 1.0, %v4349_v27  ;;  %v4363_v35 = vmul.f32 %v4355_v54, %v4155_v23  ;;  %v5291_v27 = vld [vmem:[%s7744_s2] ss:$0 sm:$0xff]  ;;  %v6316_v23 = vld [vmem:[%s6912_s19 + $0x28] sm:$0xff]  }
0x2123   :  { %v4343_v49 = vsub.f32 0.0, %v4327_v53 }
0x2124   :  { %v4365_v56 = vmul.f32 %v4357_v12, %v4157_v39 }
0x2125   :  { %v4351_v50 = vsel %vm4335_vm8, %v4327_v53, %v4343_v49 }
0x2126   :  { %v4369_v3 = vpack.c.bf16 %v4365_v56, %v4361_v33  ;;  %v4359_v52 = vadd.f32 1.0, %v4351_v50  ;;  %v5292_v33 = vld [vmem:[%s7745_s14] ss:$0 sm:$0xff] }
0x2128   :  { %4667 = vmatprep.mubr.bf16.mxu1 %v4369_v3  ;;  %v4367_v63 = vmul.f32 %v4359_v52, %v4159_v48  ;;  %v6315_v3 = vld [vmem:[%s6912_s19 + $0x20] sm:$0xff]   ;;  %v6317_v48 = vld [vmem:[%s6912_s19 + $0x30] sm:$0xff]   ;;  %v6318_v52 = vld [vmem:[%s6912_s19 + $0x38] sm:$0xff]  }
0x2129   :  { %4668 = vmatmul.mubr.bf16.vlgmr.msra.gmra.mrb[52].mxu1 %v4368_v1 }
0x212a   :  { %5778 = vmatprep.mubr.msk.bf16.mxu1 %vm6736_vm2, %v6735_v42  ;;  %v4371_v24 = vpack.c.bf16 %v4367_v63, %v4363_v35  ;;  %5763 = vmatpush3.bf16.msra.mxu1 %v6303_v31  ;;  %v5293_v35 = vld [vmem:[%s6907_s27] ss:$0 sm:$0xff] }
0x212b   :  { %5764 = vmatprep.subr.bf16.mxu1 %v6735_v42 }
0x212c   :  { %4708 = vmatprep.mubr.bf16.mxu0 %v4371_v24 }
0x212d   :  { %4709 = vmatmul.mubr.bf16.vlgmr.msra.gmra.mrb[32].mxu0 %v4370_v18 }
0x212e   :  { %5798 = vmatprep.mubr.msk.bf16.mxu0 %vm6736_vm2, %v6735_v42  ;;  %5765 = vmatpush3.bf16.msra.mxu1 %v6304_v45  ;;  %vm4987_vm2 = vcmask 15360  }
0x212f   :  { %5766 = vmatprep.subr.bf16.mxu1 %v6735_v42  ;;  %5783 = vmatpush3.bf16.msra.mxu0 %v6311_v22 }
0x2130   :  { %5784 = vmatprep.subr.bf16.mxu0 %v6735_v42 }
0x2133   :  { %5785 = vmatpush3.bf16.msra.mxu0 %v6312_v0 }
0x2134   :  { %5786 = vmatprep.subr.bf16.mxu0 %v6735_v42 }
0x2137   :  { %5787 = vmatpush3.bf16.msra.mxu0 %v6313_v61 }
0x2138   :  { %5788 = vmatprep.subr.bf16.mxu0 %v6735_v42 }
0x213b   :  { %5789 = vmatpush3.bf16.msra.mxu0 %v6314_v6 }
0x213c   :  { %5790 = vmatprep.subr.bf16.mxu0 %v6735_v42 }
0x213f   :  { %5791 = vmatpush3.bf16.msra.mxu0 %v6315_v3 }
0x2140   :  { %5792 = vmatprep.subr.bf16.mxu0 %v6735_v42 }
0x2143   :  { %5793 = vmatpush3.bf16.msra.mxu0 %v6316_v23 }
0x2144   :  { %5794 = vmatprep.subr.bf16.mxu0 %v6735_v42 }
0x2147   :  { %5795 = vmatpush3.bf16.msra.mxu0 %v6317_v48 }
0x2148   :  { %5796 = vmatprep.subr.bf16.mxu0 %v6735_v42 }
0x214b   :  { %5797 = vmatpush3.bf16.msra.mxu0 %v6318_v52 }
0x21fc   :  { %v5489_v16 = vpop.f32.mrb[52].mxu1 }
0x21fd   :  { %v5490_v15 = vpop.f32.mrb[53].mxu1 }
0x21fe   :  { %v5491_v59 = vadd.f32 %v5490_v15, %v5489_v16  ;;  %v5492_v2 = vpop.f32.mrb[54].mxu1 }
0x21ff   :  { %v5493_v9 = vpop.f32.mrb[55].mxu1 }
0x2200   :  { %v5494_v36 = vadd.f32 %v5493_v9, %v5492_v2  ;;  %v5511_v60 = vpop.f32.mrb[32].mxu0  ;;  %v4670_v58 = vadd.f32 %v5491_v59, %v5258_v55 }
0x2201   :  { %v5512_v21 = vpop.f32.mrb[33].mxu0 }
0x2202   :  { %v5513_v4 = vadd.f32 %v5512_v21, %v5511_v60  ;;  %v5514_v11 = vpop.f32.mrb[34].mxu0  ;;  %v4673_v37 = vadd.f32 %v5494_v36, %v5258_v55  ;;  %v5302_v60 = vld [vmem:[%s6917_s12] ss:$0 sm:$0xff] }
0x2203   :  { %v5515_v44 = vpop.f32.mrb[35].mxu0 }
0x2204   :  { %v4711_v40 = vadd.f32 %v5513_v4, %v4670_v58  ;;  %v5516_v26 = vadd.f32 %v5515_v44, %v5514_v11 }
0x2206   :  { %v4714_v20 = vadd.f32 %v5516_v26, %v4673_v37  ;;  %v4717_v13 = vadd.f32 %v4711_v40, %v7529_v41 }
0x2208   :  { %4721 = vadd.xlane.f32.xlu1 %v4717_v13  ;;  %v4718_v43 = vadd.f32 %v4714_v20, %v7531_v5  ;;  %v6305_v5 = vld [vmem:[#allocation15 + $0x10] sm:$0xff]  }
0x2209   :  { %5767 = vmatpush3.bf16.msra.mxu1 %v6305_v5 }
0x220a   :  { %4723 = vadd.xlane.f32.xlu0 %v4718_v43  ;;  %5768 = vmatprep.subr.bf16.mxu1 %v6735_v42 }
0x220d   :  { %5769 = vmatpush3.bf16.msra.mxu1 %v6306_v34 }
0x220e   :  { %5770 = vmatprep.subr.bf16.mxu1 %v6735_v42 }
0x2211   :  { %5771 = vmatpush3.bf16.msra.mxu1 %v6307_v8 }
0x2212   :  { %5772 = vmatprep.subr.bf16.mxu1 %v6735_v42 }
0x2215   :  { %5773 = vmatpush3.bf16.msra.mxu1 %v6308_v17 }
0x2216   :  { %5774 = vmatprep.subr.bf16.mxu1 %v6735_v42 }
0x2219   :  { %5775 = vmatpush3.bf16.msra.mxu1 %v6309_v38 }
0x221a   :  { %5776 = vmatprep.subr.bf16.mxu1 %v6735_v42 }
0x221d   :  { %5777 = vmatpush3.bf16.msra.mxu1 %v6310_v51 }
0x2295   :  { %v4722_v7 = vpop.xlane.xlu1 %4721 }
0x2296   :  { %v4725_v28 = vmul.f32 0.0078125, %v4722_v7 }
0x2297   :  { %v4724_v46 = vpop.xlane.xlu0 %4723 }
0x2298   :  { %v4727_v57 = vsub.f32 %v4717_v13, %v4725_v28  ;;  %v4726_v25 = vmul.f32 0.0078125, %v4724_v46 }
0x229a   :  { %v4728_v47 = vsub.f32 %v4718_v43, %v4726_v25  ;;  %v4729_v10 = vmul.f32 %v4727_v57, %v4727_v57 }
0x229c   :  { %4731 = vadd.xlane.f32.xlu1 %v4729_v10  ;;  %v4730_v41 = vmul.f32 %v4728_v47, %v4728_v47 }
0x229e   :  { %4733 = vadd.xlane.f32.xlu0 %v4730_v41 }
0x2329   :  { %v4732_v29 = vpop.xlane.xlu1 %4731 }
0x232a   :  { %v4735_v62 = vmul.f32 0.0078125, %v4732_v29 }
0x232b   :  { %v4734_v30 = vpop.xlane.xlu0 %4733 }
0x232c   :  { %v4737_v14 = vadd.f32 1e-12, %v4735_v62  ;;  %v4736_v32 = vmul.f32 0.0078125, %v4734_v30 }
0x232e   :  { %6463 = vrsqrt.f32 %v4737_v14  ;;  %v4738_v1 = vadd.f32 1e-12, %v4736_v32 }
0x2330   :  { %6465 = vrsqrt.f32 %v4738_v1 }
0x2338   :  { %v6464_v39 = vpop.eup %6463 }
0x2339   :  { %v4741_v19 = vmul.f32 %v6464_v39, %v4727_v57 }
0x233a   :  { %v6466_v18 = vpop.eup %6465 }
0x233b   :  { %v4742_v12 = vmul.f32 %v6466_v18, %v4728_v47  ;;  %v4749_v53 = vmul.f32 %v5291_v27, %v4741_v19 }
0x233d   :  { %v4750_v56 = vmul.f32 %v5291_v27, %v4742_v12  ;;  %v4757_v49 = vadd.f32 %v5292_v33, %v4749_v53 }
0x233f   :  { %v4758_v54 = vadd.f32 %v5292_v33, %v4750_v56 }
0x2341   :  { %v4759_v50 = vpack.c.bf16 %v4758_v54, %v4757_v49 }
0x2343   :  { %5779 = vmatmul.mubr.bf16.vlgmr.msra.gmra.mrb[56].mxu1 %v4759_v50 }
0x2416   :  { %v4865_v63 = vpop.f32.mrb[56].mxu1 }
0x2417   :  { %v4866_v24 = vadd.f32 %v5293_v35, %v4865_v63  ;;  %v5780_v16 = vpop.f32.mrb[57].mxu1 }
0x2418   :  { %v4868_v15 = vpop.f32.mrb[58].mxu1 }
0x2419   :  { %v4869_v55 = vadd.f32 %v5293_v35, %v4868_v15  ;;  %v5781_v59 = vpop.f32.mrb[59].mxu1  ;;  %6467 = vtanh.f32 %v4866_v24 }
0x241b   :  { %6469 = vtanh.f32 %v4869_v55 }
0x2423   :  { %v6468_v2 = vpop.eup %6467 }
0x2425   :  { %v6470_v9 = vpop.eup %6469 }
0x2426   :  { %v4874_v36 = vpack.c.bf16 %v6470_v9, %v6468_v2 }
0x2428   :  { %5799 = vmatmul.mubr.bf16.vlgmr.msra.gmra.mrb[36].mxu0 %v4874_v36 }
0x24fb   :  { %v4980_v58 = vpop.f32.mrb[36].mxu0 }
0x24fc   :  { %v4981_v42 = vadd.f32 %v5302_v60, %v4980_v58  ;;  %v5800_v21 = vpop.f32.mrb[37].mxu0 }
0x24fd   :  { %v4983_v4 = vpop.f32.mrb[38].mxu0 }
0x24fe   :  { %4988 = vst.msk [vmem:[%s6922_s8] sm:$0xff] %vm4987_vm2, %v4981_v42  ;;  %v4984_v11 = vadd.f32 %v5302_v60, %v4983_v4  ;;  %v5801_v37 = vpop.f32.mrb[39].mxu0 }
0x2500   :  { %4989 = vst.msk [vmem:[%s6922_s8 + $0x8] sm:$0xff] %vm4987_vm2, %v4984_v11 }
0x2501   :  { %4994 = vsyncpa [#allocation3], 1 }
0x2502   :  { %4995 = vsyncpa [#allocation5], 1 }
0x2503   :  { %4996 = vsyncpa [#allocation8], 1 }
0x2504   :  { %4997 = vsyncpa [#allocation11], 1 }
0x2505   :  { %4998 = vsyncpa [#allocation14], 1 }

</bundles_post_ra>
